<compile_context>
chip_gen: v7x
topology: tpu7x:2x2x1
jax: 0.10.0
libtpu: 0.0.40
codegen_flags: <defaults>
</compile_context>

<pallas_src>
import functools

import numpy as np
import jax
import jax.numpy as jnp
from jax import lax
from jax.experimental import pallas as pl
from jax.experimental.pallas import tpu as pltpu

NBINS = 256   # uint8 histogram bins
LANE = 128    # TPU lane width
GROUP = 8     # rows processed per inner-loop step (one aligned (8,128) u8 slice)


def _floordiv(num, den):
    """Exact floor(num/den) for non-negative integer-valued f32 (< 2^24)."""
    q = jnp.floor(num / den)
    q = q - (q * den > num).astype(q.dtype)           # fix potential round-up
    q = q + ((q + 1.0) * den <= num).astype(q.dtype)  # fix potential round-down
    return q


def _equalize_kernel(x_ref, o_ref, part_ref, *, total, pad, row_groups):
    # x_ref:    (rows, LANE) uint8   -- one channel, zero-padded to rows*LANE pixels
    # o_ref:    (rows, LANE) uint8   -- equalized channel
    # part_ref: (NBINS, LANE) int32  -- scratch: per-lane counts of pixels < bin
    part_ref[...] = jnp.zeros_like(part_ref)
    bins = lax.broadcasted_iota(jnp.int32, (NBINS, LANE), 0)      # bins[b, l] = b

    # ---- pass 1: per-lane exclusive cumulative histogram (# pixels < bin) ----
    def hist_group(g, carry):
        base = pl.multiple_of(g * GROUP, GROUP)
        xt = x_ref[pl.ds(base, GROUP), :].astype(jnp.int32)       # (GROUP, LANE) in regs
        for r in range(GROUP):                                    # static unroll
            row = xt[r:r + 1, :]                                  # (1, LANE)
            part_ref[...] += (bins > row).astype(jnp.int32)
        return carry

    lax.fori_loop(0, row_groups, hist_group, 0)

    # ---- finalize: 256-entry LUT (int32 counts; f32 only for the divisions) ----
    excl = jnp.sum(part_ref[...], axis=1, keepdims=True)          # (NBINS, 1) int32
    excl = jnp.maximum(excl - pad, 0)                             # drop zero-pad pixels
    exclf = excl.astype(jnp.float32)
    # sum of all nonzero bins except the last == excl[max_pixel_value]
    before_last = jnp.max(jnp.where(excl < total, exclf, 0.0))
    step = _floordiv(before_last, jnp.float32(255.0))
    half = jnp.floor(step * 0.5)
    lut = jnp.clip(_floordiv(exclf + half, jnp.maximum(step, 1.0)), 0.0, 255.0)
    idx = lax.broadcasted_iota(jnp.int32, (NBINS, 1), 0).astype(jnp.float32)
    lut = jnp.where(step == 0.0, idx, lut)                        # step == 0 -> identity
    bins_b = bins.astype(jnp.bfloat16)                            # hoisted constants
    lutm_b = jnp.broadcast_to(lut.astype(jnp.bfloat16), (NBINS, LANE))

    # ---- pass 2: apply LUT (bf16 packed select/accumulate; exact for 0..255) ----
    def apply_group(g, carry):
        base = pl.multiple_of(g * GROUP, GROUP)
        xt = x_ref[pl.ds(base, GROUP), :].astype(jnp.bfloat16)    # (GROUP, LANE)
        out_rows = []
        for r in range(GROUP):                                    # static unroll
            row = xt[r:r + 1, :]                                  # (1, LANE)
            vals = jnp.where(bins_b == row, lutm_b, 0.0)          # exactly one hit / lane
            out_rows.append(jnp.sum(vals, axis=0, keepdims=True))
        tile = jnp.concatenate(out_rows, axis=0)                  # (GROUP, LANE) bf16
        o_ref[pl.ds(base, GROUP), :] = (
            tile.astype(jnp.float32).astype(jnp.int32).astype(jnp.uint8))
        return carry

    lax.fori_loop(0, row_groups, apply_group, 0)


def equalize(img_u8):
    """uint8 (N, C, H, W) -> uint8 (N, C, H, W), torchvision-equalize semantics."""
    if img_u8.dtype != jnp.uint8:
        img_u8 = img_u8.astype(jnp.uint8)
    N, C, H, W = img_u8.shape
    NC, HW = N * C, H * W

    rows = pl.cdiv(HW, LANE)
    rows = pl.cdiv(rows, GROUP) * GROUP          # whole row-groups
    pad = rows * LANE - HW

    x = img_u8.reshape(NC, HW)
    if pad:
        x = jnp.pad(x, ((0, 0), (0, pad)))       # zero pad; corrected inside the kernel
    x = x.reshape(NC, rows, LANE)

    # Whole channel resident in VMEM (input + output double-buffered) + histogram scratch.
    vmem_need = 4 * rows * LANE + NBINS * LANE * 4 + (2 << 20)
    params = dict(dimension_semantics=("parallel",))
    if vmem_need > (12 << 20):
        params["vmem_limit_bytes"] = int(min(vmem_need, 64 << 20))
    # TODO(synk): channels larger than ~16M pixels would need a chunked two-pass variant
    #             (VMEM residency + exact f32 divide range); irrelevant for augmentation sizes.
    # TODO(synk): for NC == 1 on v7x, additionally split the row axis across the two cores.

    out = pl.pallas_call(
        functools.partial(_equalize_kernel, total=HW, pad=pad, row_groups=rows // GROUP),
        out_shape=jax.ShapeDtypeStruct((NC, rows, LANE), jnp.uint8),
        grid=(NC,),
        in_specs=[pl.BlockSpec((None, rows, LANE), lambda i: (i, 0, 0))],
        out_specs=pl.BlockSpec((None, rows, LANE), lambda i: (i, 0, 0)),
        scratch_shapes=[pltpu.VMEM((NBINS, LANE), jnp.int32)],
        compiler_params=pltpu.CompilerParams(**params),
    )(x)

    out = out.reshape(NC, rows * LANE)
    if pad:
        out = out[:, :HW]
    return out.reshape(N, C, H, W)


class Equalize:
    """Pallas counterpart of ctaugment.Equalize (forward = tvf.equalize)."""

    def __init__(self, M):
        self.M = M / 16 * 10  # kept for parity with the PyTorch module; unused in forward

    def __call__(self, img):
        return equalize(img)


def _equalize_numpy_ref(img_u8):
    """Reference reproducing torchvision.functional.equalize semantics."""
    img = np.asarray(img_u8)
    out = np.empty_like(img)
    N, C, H, W = img.shape
    for n in range(N):
        for c in range(C):
            ch = img[n, c].astype(np.int64)
            hist = np.bincount(ch.ravel(), minlength=256)
            nonzero = hist[hist != 0]
            step = int(nonzero[:-1].sum()) // 255 if nonzero.size > 0 else 0
            if step == 0:
                out[n, c] = img[n, c]
            else:
                lut = (np.cumsum(hist) + step // 2) // step
                lut = np.concatenate([[0], lut[:-1]])
                lut = np.clip(lut, 0, 255)
                out[n, c] = lut[ch].astype(np.uint8)
    return out


if __name__ == "__main__":
    key = jax.random.PRNGKey(0)
    k1, k2, k3 = jax.random.split(key, 3)

    eq = Equalize(M=8)

    # small NCHW uint8 batch
    img = jax.random.randint(k1, (2, 4, 16, 16), 0, 256, dtype=jnp.int32).astype(jnp.uint8)
    out = jax.block_until_ready(eq(img))
    ref = _equalize_numpy_ref(np.asarray(img))
    if not np.array_equal(np.asarray(out), ref):
        raise AssertionError("Pallas equalize mismatch (small batch)")

    # larger single-channel image (pad-free, many row groups)
    img2 = jax.random.randint(k2, (1, 1, 192, 192), 0, 256, dtype=jnp.int32).astype(jnp.uint8)
    out2 = jax.block_until_ready(eq(img2))
    ref2 = _equalize_numpy_ref(np.asarray(img2))
    if not np.array_equal(np.asarray(out2), ref2):
        raise AssertionError("Pallas equalize mismatch (192x192)")

    # ragged spatial size (exercises the pad correction) + constant channel (step==0 path)
    rand_ch = jax.random.randint(k3, (1, 1, 20, 30), 0, 256, dtype=jnp.int32).astype(jnp.uint8)
    const_ch = jnp.full((1, 1, 20, 30), 9, jnp.uint8)
    img3 = jnp.concatenate([rand_ch, const_ch], axis=1)
    out3 = jax.block_until_ready(eq(img3))
    ref3 = _equalize_numpy_ref(np.asarray(img3))
    if not np.array_equal(np.asarray(out3), ref3):
        raise AssertionError("Pallas equalize mismatch (padded / identity path)")

    print("KERNEL_OK")
</pallas_src>

<mosaic_0001>
module attributes {stable_mosaic.version = 11 : i64} {
  func.func @_equalize_kernel(%arg0: i32, %arg1: memref<1x8x128xi8, #tpu.memory_space<vmem>>, %arg2: memref<1x8x128xi8, #tpu.memory_space<vmem>>, %arg3: memref<256x128xi32, #tpu.memory_space<vmem>>) attributes {dimension_semantics = [#tpu.dimension_semantics<parallel>], iteration_bounds = array<i64: 8>, scalar_prefetch = 0 : i64, scratch_operands = 1 : i64, tpu.core_type = #tpu.core_type<tc>, window_params = [{transform_indices = @transform_0, window_bounds = array<i64: 1, 8, 128>}, {transform_indices = @transform_1, window_bounds = array<i64: 1, 8, 128>}]} {
    %c0_i32 = arith.constant 0 : i32
    %0 = vector.broadcast %c0_i32 : i32 to vector<256x128xi32>
    %c0 = arith.constant 0 : index
    %c0_0 = arith.constant 0 : index
    %1 = vector.load %arg3[%c0, %c0_0] : memref<256x128xi32, #tpu.memory_space<vmem>>, vector<256x128xi32>
    tpu.vector_store %arg3[%c0, %c0_0], %0 {strides = array<i32>} : memref<256x128xi32, #tpu.memory_space<vmem>>, vector<256x128xi32>,
    %2 = tpu.iota {dimensions = array<i32: 0>} : vector<256x128xi32>
    %c0_i32_1 = arith.constant 0 : i32
    %c8_i32 = arith.constant 8 : i32
    %3 = arith.muli %c0_i32_1, %c8_i32 : i32
    %4 = tpu.assume_multiple %3, 8 : i32
    %c0_2 = arith.constant 0 : index
    %5 = arith.index_cast %4 : i32 to index
    %c0_3 = arith.constant 0 : index
    %6 = vector.load %arg1[%c0_2, %5, %c0_3] : memref<1x8x128xi8, #tpu.memory_space<vmem>>, vector<1x8x128xi8>
    %7 = vector.shape_cast %6 : vector<1x8x128xi8> to vector<8x128xi8>
    %8 = arith.extui %7 : vector<8x128xi8> to vector<8x128xi32>
    %9 = vector.extract_strided_slice %8 {offsets = [0, 0], sizes = [1, 128], strides = [1, 1]} : vector<8x128xi32> to vector<1x128xi32>
    %c0_4 = arith.constant 0 : index
    %c0_5 = arith.constant 0 : index
    %10 = vector.load %arg3[%c0_4, %c0_5] : memref<256x128xi32, #tpu.memory_space<vmem>>, vector<256x128xi32>
    %11 = vector.broadcast %9 : vector<1x128xi32> to vector<256x128xi32>
    %12 = arith.cmpi sgt, %2, %11 : vector<256x128xi32>
    %13 = arith.extui %12 : vector<256x128xi1> to vector<256x128xi32>
    %14 = arith.addi %10, %13 : vector<256x128xi32>
    %c0_6 = arith.constant 0 : index
    %c0_7 = arith.constant 0 : index
    %15 = vector.load %arg3[%c0_6, %c0_7] : memref<256x128xi32, #tpu.memory_space<vmem>>, vector<256x128xi32>
    tpu.vector_store %arg3[%c0_6, %c0_7], %14 {strides = array<i32>} : memref<256x128xi32, #tpu.memory_space<vmem>>, vector<256x128xi32>,
    %16 = vector.extract_strided_slice %8 {offsets = [1, 0], sizes = [1, 128], strides = [1, 1]} : vector<8x128xi32> to vector<1x128xi32>
    %c0_8 = arith.constant 0 : index
    %c0_9 = arith.constant 0 : index
    %17 = vector.load %arg3[%c0_8, %c0_9] : memref<256x128xi32, #tpu.memory_space<vmem>>, vector<256x128xi32>
    %18 = vector.broadcast %16 : vector<1x128xi32> to vector<256x128xi32>
    %19 = arith.cmpi sgt, %2, %18 : vector<256x128xi32>
    %20 = arith.extui %19 : vector<256x128xi1> to vector<256x128xi32>
    %21 = arith.addi %17, %20 : vector<256x128xi32>
    %c0_10 = arith.constant 0 : index
    %c0_11 = arith.constant 0 : index
    %22 = vector.load %arg3[%c0_10, %c0_11] : memref<256x128xi32, #tpu.memory_space<vmem>>, vector<256x128xi32>
    tpu.vector_store %arg3[%c0_10, %c0_11], %21 {strides = array<i32>} : memref<256x128xi32, #tpu.memory_space<vmem>>, vector<256x128xi32>,
    %23 = vector.extract_strided_slice %8 {offsets = [2, 0], sizes = [1, 128], strides = [1, 1]} : vector<8x128xi32> to vector<1x128xi32>
    %c0_12 = arith.constant 0 : index
    %c0_13 = arith.constant 0 : index
    %24 = vector.load %arg3[%c0_12, %c0_13] : memref<256x128xi32, #tpu.memory_space<vmem>>, vector<256x128xi32>
    %25 = vector.broadcast %23 : vector<1x128xi32> to vector<256x128xi32>
    %26 = arith.cmpi sgt, %2, %25 : vector<256x128xi32>
    %27 = arith.extui %26 : vector<256x128xi1> to vector<256x128xi32>
    %28 = arith.addi %24, %27 : vector<256x128xi32>
    %c0_14 = arith.constant 0 : index
    %c0_15 = arith.constant 0 : index
    %29 = vector.load %arg3[%c0_14, %c0_15] : memref<256x128xi32, #tpu.memory_space<vmem>>, vector<256x128xi32>
    tpu.vector_store %arg3[%c0_14, %c0_15], %28 {strides = array<i32>} : memref<256x128xi32, #tpu.memory_space<vmem>>, vector<256x128xi32>,
    %30 = vector.extract_strided_slice %8 {offsets = [3, 0], sizes = [1, 128], strides = [1, 1]} : vector<8x128xi32> to vector<1x128xi32>
    %c0_16 = arith.constant 0 : index
    %c0_17 = arith.constant 0 : index
    %31 = vector.load %arg3[%c0_16, %c0_17] : memref<256x128xi32, #tpu.memory_space<vmem>>, vector<256x128xi32>
    %32 = vector.broadcast %30 : vector<1x128xi32> to vector<256x128xi32>
    %33 = arith.cmpi sgt, %2, %32 : vector<256x128xi32>
    %34 = arith.extui %33 : vector<256x128xi1> to vector<256x128xi32>
    %35 = arith.addi %31, %34 : vector<256x128xi32>
    %c0_18 = arith.constant 0 : index
    %c0_19 = arith.constant 0 : index
    %36 = vector.load %arg3[%c0_18, %c0_19] : memref<256x128xi32, #tpu.memory_space<vmem>>, vector<256x128xi32>
    tpu.vector_store %arg3[%c0_18, %c0_19], %35 {strides = array<i32>} : memref<256x128xi32, #tpu.memory_space<vmem>>, vector<256x128xi32>,
    %37 = vector.extract_strided_slice %8 {offsets = [4, 0], sizes = [1, 128], strides = [1, 1]} : vector<8x128xi32> to vector<1x128xi32>
    %c0_20 = arith.constant 0 : index
    %c0_21 = arith.constant 0 : index
    %38 = vector.load %arg3[%c0_20, %c0_21] : memref<256x128xi32, #tpu.memory_space<vmem>>, vector<256x128xi32>
    %39 = vector.broadcast %37 : vector<1x128xi32> to vector<256x128xi32>
    %40 = arith.cmpi sgt, %2, %39 : vector<256x128xi32>
    %41 = arith.extui %40 : vector<256x128xi1> to vector<256x128xi32>
    %42 = arith.addi %38, %41 : vector<256x128xi32>
    %c0_22 = arith.constant 0 : index
    %c0_23 = arith.constant 0 : index
    %43 = vector.load %arg3[%c0_22, %c0_23] : memref<256x128xi32, #tpu.memory_space<vmem>>, vector<256x128xi32>
    tpu.vector_store %arg3[%c0_22, %c0_23], %42 {strides = array<i32>} : memref<256x128xi32, #tpu.memory_space<vmem>>, vector<256x128xi32>,
    %44 = vector.extract_strided_slice %8 {offsets = [5, 0], sizes = [1, 128], strides = [1, 1]} : vector<8x128xi32> to vector<1x128xi32>
    %c0_24 = arith.constant 0 : index
    %c0_25 = arith.constant 0 : index
    %45 = vector.load %arg3[%c0_24, %c0_25] : memref<256x128xi32, #tpu.memory_space<vmem>>, vector<256x128xi32>
    %46 = vector.broadcast %44 : vector<1x128xi32> to vector<256x128xi32>
    %47 = arith.cmpi sgt, %2, %46 : vector<256x128xi32>
    %48 = arith.extui %47 : vector<256x128xi1> to vector<256x128xi32>
    %49 = arith.addi %45, %48 : vector<256x128xi32>
    %c0_26 = arith.constant 0 : index
    %c0_27 = arith.constant 0 : index
    %50 = vector.load %arg3[%c0_26, %c0_27] : memref<256x128xi32, #tpu.memory_space<vmem>>, vector<256x128xi32>
    tpu.vector_store %arg3[%c0_26, %c0_27], %49 {strides = array<i32>} : memref<256x128xi32, #tpu.memory_space<vmem>>, vector<256x128xi32>,
    %51 = vector.extract_strided_slice %8 {offsets = [6, 0], sizes = [1, 128], strides = [1, 1]} : vector<8x128xi32> to vector<1x128xi32>
    %c0_28 = arith.constant 0 : index
    %c0_29 = arith.constant 0 : index
    %52 = vector.load %arg3[%c0_28, %c0_29] : memref<256x128xi32, #tpu.memory_space<vmem>>, vector<256x128xi32>
    %53 = vector.broadcast %51 : vector<1x128xi32> to vector<256x128xi32>
    %54 = arith.cmpi sgt, %2, %53 : vector<256x128xi32>
    %55 = arith.extui %54 : vector<256x128xi1> to vector<256x128xi32>
    %56 = arith.addi %52, %55 : vector<256x128xi32>
    %c0_30 = arith.constant 0 : index
    %c0_31 = arith.constant 0 : index
    %57 = vector.load %arg3[%c0_30, %c0_31] : memref<256x128xi32, #tpu.memory_space<vmem>>, vector<256x128xi32>
    tpu.vector_store %arg3[%c0_30, %c0_31], %56 {strides = array<i32>} : memref<256x128xi32, #tpu.memory_space<vmem>>, vector<256x128xi32>,
    %58 = vector.extract_strided_slice %8 {offsets = [7, 0], sizes = [1, 128], strides = [1, 1]} : vector<8x128xi32> to vector<1x128xi32>
    %c0_32 = arith.constant 0 : index
    %c0_33 = arith.constant 0 : index
    %59 = vector.load %arg3[%c0_32, %c0_33] : memref<256x128xi32, #tpu.memory_space<vmem>>, vector<256x128xi32>
    %60 = vector.broadcast %58 : vector<1x128xi32> to vector<256x128xi32>
    %61 = arith.cmpi sgt, %2, %60 : vector<256x128xi32>
    %62 = arith.extui %61 : vector<256x128xi1> to vector<256x128xi32>
    %63 = arith.addi %59, %62 : vector<256x128xi32>
    %c0_34 = arith.constant 0 : index
    %c0_35 = arith.constant 0 : index
    %64 = vector.load %arg3[%c0_34, %c0_35] : memref<256x128xi32, #tpu.memory_space<vmem>>, vector<256x128xi32>
    tpu.vector_store %arg3[%c0_34, %c0_35], %63 {strides = array<i32>} : memref<256x128xi32, #tpu.memory_space<vmem>>, vector<256x128xi32>,
    %c1_i32 = arith.constant 1 : i32
    %c0_36 = arith.constant 0 : index
    %c0_37 = arith.constant 0 : index
    %65 = vector.load %arg3[%c0_36, %c0_37] : memref<256x128xi32, #tpu.memory_space<vmem>>, vector<256x128xi32>
    %cst = arith.constant dense<0> : vector<256xi32>
    %66 = vector.multi_reduction <add>, %65, %cst [1] : vector<256x128xi32> to vector<256xi32>
    %67 = vector.shape_cast %66 : vector<256xi32> to vector<256x1xi32>
    %c768_i32 = arith.constant 768 : i32
    %68 = vector.broadcast %c768_i32 : i32 to vector<256x1xi32>
    %69 = arith.subi %67, %68 : vector<256x1xi32>
    %c0_i32_38 = arith.constant 0 : i32
    %70 = vector.broadcast %c0_i32_38 : i32 to vector<256x1xi32>
    %71 = arith.maxsi %69, %70 : vector<256x1xi32>
    %72 = arith.sitofp %71 : vector<256x1xi32> to vector<256x1xf32>
    %c256_i32 = arith.constant 256 : i32
    %73 = vector.broadcast %c256_i32 : i32 to vector<256x1xi32>
    %74 = arith.cmpi slt, %71, %73 : vector<256x1xi32>
    %cst_39 = arith.constant 0.000000e+00 : f32
    %75 = vector.broadcast %cst_39 : f32 to vector<256x1xf32>
    %76 = arith.select %74, %72, %75 : vector<256x1xi1>, vector<256x1xf32>
    %77 = vector.shape_cast %76 : vector<256x1xf32> to vector<1x256x1xf32>
    %cst_40 = arith.constant dense<0xFF800000> : vector<1xf32>
    %78 = vector.multi_reduction <maximumf>, %77, %cst_40 [1, 2] : vector<1x256x1xf32> to vector<1xf32>
    %79 = vector.shape_cast %78 : vector<1xf32> to vector<1x1x1xf32>
    %80 = vector.extract %79[0, 0, 0] : f32 from vector<1x1x1xf32>
    %cst_41 = arith.constant 2.550000e+02 : f32
    %81 = arith.divf %80, %cst_41 : f32
    %82 = math.floor %81 : f32
    %cst_42 = arith.constant 2.550000e+02 : f32
    %83 = arith.mulf %82, %cst_42 : f32
    %84 = arith.cmpf ogt, %83, %80 : f32
    %85 = arith.extui %84 : i1 to i32
    %86 = arith.sitofp %85 : i32 to f32
    %87 = arith.subf %82, %86 : f32
    %cst_43 = arith.constant 1.000000e+00 : f32
    %88 = arith.addf %87, %cst_43 : f32
    %cst_44 = arith.constant 2.550000e+02 : f32
    %89 = arith.mulf %88, %cst_44 : f32
    %90 = arith.cmpf ole, %89, %80 : f32
    %91 = arith.extui %90 : i1 to i32
    %92 = arith.sitofp %91 : i32 to f32
    %93 = arith.addf %87, %92 : f32
    %cst_45 = arith.constant 5.000000e-01 : f32
    %94 = arith.mulf %93, %cst_45 : f32
    %95 = math.floor %94 : f32
    %96 = vector.broadcast %95 : f32 to vector<256x1xf32>
    %97 = arith.addf %72, %96 : vector<256x1xf32>
    %cst_46 = arith.constant 1.000000e+00 : f32
    %98 = arith.maximumf %93, %cst_46 : f32
    %99 = vector.broadcast %98 : f32 to vector<256x1xf32>
    %100 = arith.divf %97, %99 : vector<256x1xf32>
    %101 = math.floor %100 : vector<256x1xf32>
    %102 = vector.broadcast %98 : f32 to vector<256x1xf32>
    %103 = arith.mulf %101, %102 : vector<256x1xf32>
    %104 = arith.cmpf ogt, %103, %97 : vector<256x1xf32>
    %105 = arith.extui %104 : vector<256x1xi1> to vector<256x1xi32>
    %106 = arith.sitofp %105 : vector<256x1xi32> to vector<256x1xf32>
    %107 = arith.subf %101, %106 : vector<256x1xf32>
    %cst_47 = arith.constant 1.000000e+00 : f32
    %108 = vector.broadcast %cst_47 : f32 to vector<256x1xf32>
    %109 = arith.addf %107, %108 : vector<256x1xf32>
    %110 = vector.broadcast %98 : f32 to vector<256x1xf32>
    %111 = arith.mulf %109, %110 : vector<256x1xf32>
    %112 = arith.cmpf ole, %111, %97 : vector<256x1xf32>
    %113 = arith.extui %112 : vector<256x1xi1> to vector<256x1xi32>
    %114 = arith.sitofp %113 : vector<256x1xi32> to vector<256x1xf32>
    %115 = arith.addf %107, %114 : vector<256x1xf32>
    %cst_48 = arith.constant 0.000000e+00 : f32
    %cst_49 = arith.constant 2.550000e+02 : f32
    %116 = vector.broadcast %cst_48 : f32 to vector<256x1xf32>
    %117 = arith.maximumf %116, %115 : vector<256x1xf32>
    %118 = vector.broadcast %cst_49 : f32 to vector<256x1xf32>
    %119 = arith.minimumf %118, %117 : vector<256x1xf32>
    %120 = tpu.iota {dimensions = array<i32: 0>} : vector<256x1xi32>
    %121 = arith.sitofp %120 : vector<256x1xi32> to vector<256x1xf32>
    %cst_50 = arith.constant 0.000000e+00 : f32
    %122 = arith.cmpf oeq, %93, %cst_50 : f32
    %123 = arith.select %122, %121, %119 : vector<256x1xf32>
    %124 = arith.sitofp %2 : vector<256x128xi32> to vector<256x128xbf16>
    %125 = arith.truncf %123 : vector<256x1xf32> to vector<256x1xbf16>
    %126 = vector.shape_cast %125 : vector<256x1xbf16> to vector<256x1xbf16>
    %127 = vector.broadcast %126 : vector<256x1xbf16> to vector<256x128xbf16>
    %c0_i32_51 = arith.constant 0 : i32
    %c8_i32_52 = arith.constant 8 : i32
    %128 = arith.muli %c0_i32_51, %c8_i32_52 : i32
    %129 = tpu.assume_multiple %128, 8 : i32
    %c0_53 = arith.constant 0 : index
    %130 = arith.index_cast %129 : i32 to index
    %c0_54 = arith.constant 0 : index
    %131 = vector.load %arg1[%c0_53, %130, %c0_54] : memref<1x8x128xi8, #tpu.memory_space<vmem>>, vector<1x8x128xi8>
    %132 = vector.shape_cast %131 : vector<1x8x128xi8> to vector<8x128xi8>
    %133 = arith.uitofp %132 : vector<8x128xi8> to vector<8x128xbf16>
    %134 = vector.extract_strided_slice %133 {offsets = [0, 0], sizes = [1, 128], strides = [1, 1]} : vector<8x128xbf16> to vector<1x128xbf16>
    %135 = vector.broadcast %134 : vector<1x128xbf16> to vector<256x128xbf16>
    %136 = arith.cmpf oeq, %124, %135 : vector<256x128xbf16>
    %cst_55 = arith.constant 0.000000e+00 : f32
    %137 = arith.truncf %cst_55 : f32 to bf16
    %138 = vector.broadcast %137 : bf16 to vector<256x128xbf16>
    %139 = arith.select %136, %127, %138 : vector<256x128xi1>, vector<256x128xbf16>
    %140 = arith.extf %139 : vector<256x128xbf16> to vector<256x128xf32>
    %cst_56 = arith.constant dense<0.000000e+00> : vector<128xf32>
    %141 = vector.multi_reduction <add>, %140, %cst_56 [0] : vector<256x128xf32> to vector<128xf32>
    %142 = vector.shape_cast %141 : vector<128xf32> to vector<1x128xf32>
    %143 = arith.truncf %142 : vector<1x128xf32> to vector<1x128xbf16>
    %144 = vector.extract_strided_slice %133 {offsets = [1, 0], sizes = [1, 128], strides = [1, 1]} : vector<8x128xbf16> to vector<1x128xbf16>
    %145 = vector.broadcast %144 : vector<1x128xbf16> to vector<256x128xbf16>
    %146 = arith.cmpf oeq, %124, %145 : vector<256x128xbf16>
    %cst_57 = arith.constant 0.000000e+00 : f32
    %147 = arith.truncf %cst_57 : f32 to bf16
    %148 = vector.broadcast %147 : bf16 to vector<256x128xbf16>
    %149 = arith.select %146, %127, %148 : vector<256x128xi1>, vector<256x128xbf16>
    %150 = arith.extf %149 : vector<256x128xbf16> to vector<256x128xf32>
    %cst_58 = arith.constant dense<0.000000e+00> : vector<128xf32>
    %151 = vector.multi_reduction <add>, %150, %cst_58 [0] : vector<256x128xf32> to vector<128xf32>
    %152 = vector.shape_cast %151 : vector<128xf32> to vector<1x128xf32>
    %153 = arith.truncf %152 : vector<1x128xf32> to vector<1x128xbf16>
    %154 = vector.extract_strided_slice %133 {offsets = [2, 0], sizes = [1, 128], strides = [1, 1]} : vector<8x128xbf16> to vector<1x128xbf16>
    %155 = vector.broadcast %154 : vector<1x128xbf16> to vector<256x128xbf16>
    %156 = arith.cmpf oeq, %124, %155 : vector<256x128xbf16>
    %cst_59 = arith.constant 0.000000e+00 : f32
    %157 = arith.truncf %cst_59 : f32 to bf16
    %158 = vector.broadcast %157 : bf16 to vector<256x128xbf16>
    %159 = arith.select %156, %127, %158 : vector<256x128xi1>, vector<256x128xbf16>
    %160 = arith.extf %159 : vector<256x128xbf16> to vector<256x128xf32>
    %cst_60 = arith.constant dense<0.000000e+00> : vector<128xf32>
    %161 = vector.multi_reduction <add>, %160, %cst_60 [0] : vector<256x128xf32> to vector<128xf32>
    %162 = vector.shape_cast %161 : vector<128xf32> to vector<1x128xf32>
    %163 = arith.truncf %162 : vector<1x128xf32> to vector<1x128xbf16>
    %164 = vector.extract_strided_slice %133 {offsets = [3, 0], sizes = [1, 128], strides = [1, 1]} : vector<8x128xbf16> to vector<1x128xbf16>
    %165 = vector.broadcast %164 : vector<1x128xbf16> to vector<256x128xbf16>
    %166 = arith.cmpf oeq, %124, %165 : vector<256x128xbf16>
    %cst_61 = arith.constant 0.000000e+00 : f32
    %167 = arith.truncf %cst_61 : f32 to bf16
    %168 = vector.broadcast %167 : bf16 to vector<256x128xbf16>
    %169 = arith.select %166, %127, %168 : vector<256x128xi1>, vector<256x128xbf16>
    %170 = arith.extf %169 : vector<256x128xbf16> to vector<256x128xf32>
    %cst_62 = arith.constant dense<0.000000e+00> : vector<128xf32>
    %171 = vector.multi_reduction <add>, %170, %cst_62 [0] : vector<256x128xf32> to vector<128xf32>
    %172 = vector.shape_cast %171 : vector<128xf32> to vector<1x128xf32>
    %173 = arith.truncf %172 : vector<1x128xf32> to vector<1x128xbf16>
    %174 = vector.extract_strided_slice %133 {offsets = [4, 0], sizes = [1, 128], strides = [1, 1]} : vector<8x128xbf16> to vector<1x128xbf16>
    %175 = vector.broadcast %174 : vector<1x128xbf16> to vector<256x128xbf16>
    %176 = arith.cmpf oeq, %124, %175 : vector<256x128xbf16>
    %cst_63 = arith.constant 0.000000e+00 : f32
    %177 = arith.truncf %cst_63 : f32 to bf16
    %178 = vector.broadcast %177 : bf16 to vector<256x128xbf16>
    %179 = arith.select %176, %127, %178 : vector<256x128xi1>, vector<256x128xbf16>
    %180 = arith.extf %179 : vector<256x128xbf16> to vector<256x128xf32>
    %cst_64 = arith.constant dense<0.000000e+00> : vector<128xf32>
    %181 = vector.multi_reduction <add>, %180, %cst_64 [0] : vector<256x128xf32> to vector<128xf32>
    %182 = vector.shape_cast %181 : vector<128xf32> to vector<1x128xf32>
    %183 = arith.truncf %182 : vector<1x128xf32> to vector<1x128xbf16>
    %184 = vector.extract_strided_slice %133 {offsets = [5, 0], sizes = [1, 128], strides = [1, 1]} : vector<8x128xbf16> to vector<1x128xbf16>
    %185 = vector.broadcast %184 : vector<1x128xbf16> to vector<256x128xbf16>
    %186 = arith.cmpf oeq, %124, %185 : vector<256x128xbf16>
    %cst_65 = arith.constant 0.000000e+00 : f32
    %187 = arith.truncf %cst_65 : f32 to bf16
    %188 = vector.broadcast %187 : bf16 to vector<256x128xbf16>
    %189 = arith.select %186, %127, %188 : vector<256x128xi1>, vector<256x128xbf16>
    %190 = arith.extf %189 : vector<256x128xbf16> to vector<256x128xf32>
    %cst_66 = arith.constant dense<0.000000e+00> : vector<128xf32>
    %191 = vector.multi_reduction <add>, %190, %cst_66 [0] : vector<256x128xf32> to vector<128xf32>
    %192 = vector.shape_cast %191 : vector<128xf32> to vector<1x128xf32>
    %193 = arith.truncf %192 : vector<1x128xf32> to vector<1x128xbf16>
    %194 = vector.extract_strided_slice %133 {offsets = [6, 0], sizes = [1, 128], strides = [1, 1]} : vector<8x128xbf16> to vector<1x128xbf16>
    %195 = vector.broadcast %194 : vector<1x128xbf16> to vector<256x128xbf16>
    %196 = arith.cmpf oeq, %124, %195 : vector<256x128xbf16>
    %cst_67 = arith.constant 0.000000e+00 : f32
    %197 = arith.truncf %cst_67 : f32 to bf16
    %198 = vector.broadcast %197 : bf16 to vector<256x128xbf16>
    %199 = arith.select %196, %127, %198 : vector<256x128xi1>, vector<256x128xbf16>
    %200 = arith.extf %199 : vector<256x128xbf16> to vector<256x128xf32>
    %cst_68 = arith.constant dense<0.000000e+00> : vector<128xf32>
    %201 = vector.multi_reduction <add>, %200, %cst_68 [0] : vector<256x128xf32> to vector<128xf32>
    %202 = vector.shape_cast %201 : vector<128xf32> to vector<1x128xf32>
    %203 = arith.truncf %202 : vector<1x128xf32> to vector<1x128xbf16>
    %204 = vector.extract_strided_slice %133 {offsets = [7, 0], sizes = [1, 128], strides = [1, 1]} : vector<8x128xbf16> to vector<1x128xbf16>
    %205 = vector.broadcast %204 : vector<1x128xbf16> to vector<256x128xbf16>
    %206 = arith.cmpf oeq, %124, %205 : vector<256x128xbf16>
    %cst_69 = arith.constant 0.000000e+00 : f32
    %207 = arith.truncf %cst_69 : f32 to bf16
    %208 = vector.broadcast %207 : bf16 to vector<256x128xbf16>
    %209 = arith.select %206, %127, %208 : vector<256x128xi1>, vector<256x128xbf16>
    %210 = arith.extf %209 : vector<256x128xbf16> to vector<256x128xf32>
    %cst_70 = arith.constant dense<0.000000e+00> : vector<128xf32>
    %211 = vector.multi_reduction <add>, %210, %cst_70 [0] : vector<256x128xf32> to vector<128xf32>
    %212 = vector.shape_cast %211 : vector<128xf32> to vector<1x128xf32>
    %213 = arith.truncf %212 : vector<1x128xf32> to vector<1x128xbf16>
    %214 = tpu.concatenate %143, %153, %163, %173, %183, %193, %203, %213 in 0 : vector<1x128xbf16>, vector<1x128xbf16>, vector<1x128xbf16>, vector<1x128xbf16>, vector<1x128xbf16>, vector<1x128xbf16>, vector<1x128xbf16>, vector<1x128xbf16> -> vector<8x128xbf16>
    %215 = arith.extf %214 : vector<8x128xbf16> to vector<8x128xf32>
    %216 = arith.fptosi %215 : vector<8x128xf32> to vector<8x128xi32>
    %217 = arith.trunci %216 : vector<8x128xi32> to vector<8x128xi8>
    %c0_71 = arith.constant 0 : index
    %218 = arith.index_cast %129 : i32 to index
    %c0_72 = arith.constant 0 : index
    %219 = vector.load %arg2[%c0_71, %218, %c0_72] : memref<1x8x128xi8, #tpu.memory_space<vmem>>, vector<1x8x128xi8>
    %220 = vector.shape_cast %219 : vector<1x8x128xi8> to vector<8x128xi8>
    %221 = vector.shape_cast %217 : vector<8x128xi8> to vector<1x8x128xi8>
    tpu.vector_store %arg2[%c0_71, %218, %c0_72], %221 {strides = array<i32>} : memref<1x8x128xi8, #tpu.memory_space<vmem>>, vector<1x8x128xi8>,
    %c1_i32_73 = arith.constant 1 : i32
    return
  }
  func.func @transform_0(%arg0: i32) -> (i32, i32, i32) {
    %c0_i32 = arith.constant 0 : i32
    %c0_i32_0 = arith.constant 0 : i32
    %c0_i32_1 = arith.constant 0 : i32
    return %arg0, %c0_i32, %c0_i32_0 : i32, i32, i32
  }
  func.func @transform_1(%arg0: i32) -> (i32, i32, i32) {
    %c0_i32 = arith.constant 0 : i32
    %c0_i32_0 = arith.constant 0 : i32
    %c0_i32_1 = arith.constant 0 : i32
    return %arg0, %c0_i32, %c0_i32_0 : i32, i32, i32
  }
}

</mosaic_0001>

<bundles_post_ra>
// kernel: tpu_custom_call.1
= control target key start
LH: loop header
LB: loop body
LE: loop exit
PB: predicated region body
PF: predicated region fallthrough
CT: control target
= control target key end

     0   :  { %6 = vsyncpa [#allocation4], 0  ;;  %s7997_s0 = inlined_call_operand.hbm [shape: u8[8,8,128], index: 0, kind: input, shape index: {}]   ;;  %s7998_s1 = inlined_call_operand.hbm [shape: u8[8,8,128], index: 1, kind: output, shape index: {}]  }
   0x1   :  { %8 = vsyncpa [#allocation4 + $0x1], 0 }
   0x2   :  { %9 = vsyncpa [#allocation5], 0 }
   0x3   :  { %11 = vsyncpa [#allocation5 + $0x1], 0  ;;  %s4044_s6 = smov 0   ;;  %s4046_s7 = smov 0  }
   0x4   :  { %s4048_s8 = smov 0   ;;  %s4050_s9 = smov 0  }
   0x5 LB: > { %s4065_s10 = sadd.s32 4294967295, %s4027_s9   ;;  %s3768_s11 = sadd.s32 4294967294, %s4027_s9   ;;  %s4027_s9 = sphi %s4050_s9, %s8869_s9   ;;  %s4023_s8 = sphi %s4048_s8, %s8868_s8   ;;  %s4019_s7 = sphi %s4046_s7, %s8867_s7   ;;  %s4015_s6 = sphi %s4044_s6, %s8866_s6  }
   0x6   : > { %s4069_s12 = sadd.s32 1, %s4027_s9   ;;  %s24_s13 = sadd.s32 1, %s4023_s8 }
   0x7   : > { %s21_s14 = ssub.s32 %s4027_s9, %s4069_s12  ;;  %p31_p0 = scmp.ne.s32.totalorder %s4023_s8, %s4019_s7 }
   0x8   : > { %p22_p1 = scmp.eq.s32.totalorder %s21_s14, 0  ;;  %p32_p2 = scmp.eq.s32.totalorder %s4027_s9, 0 }
   0x9   : > { %p37_p3 = scmp.ne.s32.totalorder %s4019_s7, %s4015_s6  ;;  %p38_p4 = scmp.eq.s32.totalorder %s4065_s10, 0 }
   0xa   : > { %s4081_s15 = scalar_select %p22_p1, %s4023_s8, %s24_s13  }
   0xb   : > { %p4083_p5 = por %p32_p2, %p31_p0  ;;  %p4087_p6 = por %p38_p4, %p37_p3 }
   0xc   : > { %p61_p7 = scmp.eq.s32.totalorder %s4065_s10, 7  ;;  %p67_p8 = scmp.eq.s32.totalorder %s3768_s11, 7 }
   0xd   : > { %p3892_p9 = scmp.lt.s32.totalorder %s4027_s9, 8  ;;  %s87_s20 = sand.u32 1, %s4023_s8  }
   0xe   : > { %p4093_p10 = por %p61_p7, %p31_p0  ;;  %p4097_p11 = por %p67_p8, %p37_p3 }
   0xf   : > { %s3772_s21 = sshll.u32 %s4027_s9, 5  ;;  %s3771_s22 = sshll.u32 %s87_s20, 1 }
  0x10   : > { %s8263_s18 = scalar_select %p4093_p10, 1, 0 }
  0x11   : > { %s8264_s19 = scalar_select %p4097_p11, 1, 0 }
  0x12   : > { %s4106_s25 = scalar_lea.hbm %s7997_s0, %s3772_s21  ;;  %s91_s26 = scalar_lea.vmem [#allocation3], %s3771_s22 }
  0x13   : > { %s98_s27 = sshll.u32 %s91_s26, 4  ;;  %p4110_p12 = pnand %p3892_p9, %p4083_p5  ;;  %s4114_s27 = int_to_ptr.vmem [resolvable:$true] %s98_s27 }
  0x14   : > { %s88_s29 = scalar_lea.sflag [#allocation4], %s87_s20  ;;  %s3931_s30 = scalar_lea.hbm %s4106_s25, 32 }
  0x15   : > { %p3932_p1 = scmp.ne.s32.totalorder %s4106_s25, %s3931_s30  ;;  %p3933_p2 = pneg %p4110_p12 }
  0x16   : > { %s3936_s4 = scalar_lea.hbm %s7997_s0, 256  ;;  %p3937_p5 = scmp.lt.u32.totalorder %s4106_s25, %s7997_s0 }
  0x17   : > { %p3934_p3 = pnand %p3933_p2, %p3932_p1  ;;  %p3938_p7 = scmp.lt.u32.totalorder %s3936_s4, %s3931_s30 }
  0x18   : > { %p3940_p9 = scmp.lt.u32.totalorder %s3931_s30, %s4106_s25 }
  0x19   : > { %p3935_p4 = pneg %p3934_p3  ;;  %p3939_p8 = por %p3938_p7, %p3937_p5 }
  0x1b   : > { %p3941_p13 = por %p3940_p9, %p3939_p8 }
  0x1d   : > { %p3942_p0 = pnand %p3941_p13, %p3935_p4 }
  0x1f   : > { %3945 = shalt.err (!%p3942_p0)
}
  0x20   : > { %s3946_s13 = scalar_lea.vmem %s4114_s27, 32  ;;  %s4029_s14 = smov [#allocation3]  }
  0x21   : > { %p3947_p1 = scmp.ne.s32.totalorder %s4114_s27, %s3946_s13  ;;  %s3951_s16 = sshll.u32 %s4029_s14, 4  ;;  %s3952_s16 = int_to_ptr.vmem [resolvable:$false] %s3951_s16 }
  0x22   : > { %s3953_s20 = scalar_lea.vmem %s3952_s16, 64  ;;  %p3954_p10 = scmp.lt.s32.totalorder %s4114_s27, %s3952_s16 }
  0x23   : > { %p3949_p3 = pnand %p3947_p1, %p3933_p2  ;;  %p3955_p5 = scmp.lt.s32.totalorder %s3953_s20, %s3946_s13 }
  0x25   : > { %p3950_p11 = pneg %p3949_p3  ;;  %p3956_p7 = por %p3955_p5, %p3954_p10 }
  0x27   : > { %p3957_p8 = pnand %p3956_p7, %p3950_p11 }
  0x29   : > { %3960 = shalt.err (!%p3957_p8)
}
  0x2a   : > { %3887 = dma.hbm_to_vmem [thread:$0]  (!%p4110_p12), %s4106_s25, 32, %s4114_s27, %s88_s29  }
  0x2b   : > { %p8266_p13 = scmp.lt.s32.totalorder %s4027_s9, 9  ;;  %p8267_p0 = scmp.ge.s32.totalorder %s4027_s9, 1 }
  0x2d   : > { %p104_p2 = pnand %p8267_p0, %p8266_p13 }
  0x2f   : > { %107 = sbr.rel (%p104_p2) target bundleno = 968 (0x3c8), region = 24 }
  0x36   : > { %s4148_s21 = sand.u32 1, %s4019_s7  }
  0x37   : > { %s3774_s22 = sshll.u32 %s4148_s21, 1  ;;  %s110_s23 = scalar_lea.sflag [#allocation4], %s4148_s21 }
  0x38   : > { %s4154_s24 = scalar_lea.vmem [#allocation3], %s3774_s22 }
  0x39   : > { %4006 = dma.done.wait (%p4087_p6), %s110_s23, 32  }
  0x3a   : > { %4008 = vsyncadd (%p4087_p6), %s110_s23, 4294967264  ;;  %v165_v0 = vlaneseq  ;;  %v198_v2 = vld [vmem:[%s4154_s24] sm:$0x3]  ;;  %v4030_v36 = vmov 0   ;;  %s4031_s13 = smov 1.0   ;;  %p8864_p4 = scmp.ne.s32.totalorder %s8263_s18, 0 }
  0x3b   : > { %v199_v3 = vunpack.c.0.s8 %v198_v2 }
  0x3c   : > { %v4160_v1 = vshrl.u32 %v165_v0, 7 }
  0x3d   : > { %v200_v11 = vand.u32 255, %v199_v3 }
  0x3e   : > { %8268 = vst [vmem:[#allocation9_spill] sm:$0xff] %v4160_v1  ;;  %v4164_v4 = vsub.s32 0, %v4160_v1  ;;  %v4167_v5 = vsub.s32 1, %v4160_v1  ;;  %v4170_v6 = vsub.s32 2, %v4160_v1  ;;  %v4173_v7 = vsub.s32 3, %v4160_v1 }
  0x3f   : > { %v891_v8 = vsub.s32 4, %v4160_v1  ;;  %v1055_v9 = vsub.s32 5, %v4160_v1  ;;  %v1219_v10 = vsub.s32 6, %v4160_v1  ;;  %v1383_v12 = vsub.s32 7, %v4160_v1 }
  0x40   : > { %v4180_v13 = vadd.s32 16, %v4160_v1  ;;  %v4183_v14 = vadd.s32 24, %v4160_v1  ;;  %v4186_v15 = vadd.s32 8, %v4160_v1  ;;  %v4189_v16 = vadd.s32 40, %v4160_v1 }
  0x41   : > { %v4192_v17 = vadd.s32 32, %v4160_v1  ;;  %v4195_v18 = vadd.s32 56, %v4160_v1  ;;  %v4198_v19 = vrot.slane %v200_v11, %v4164_v4  ;;  %v4201_v20 = vrot.slane %v200_v11, %v4167_v5 }
  0x42   : > { %8269 = vst [vmem:[#allocation10_spill] sm:$0xff] %v4180_v13  ;;  %8270 = vst [vmem:[#allocation11_spill] sm:$0xff] %v4183_v14  ;;  %v4204_v21 = vrot.slane %v200_v11, %v4170_v6  ;;  %v4207_v22 = vadd.s32 48, %v4160_v1  ;;  %v4210_v23 = vrot.slane %v200_v11, %v4173_v7  ;;  %v4213_v24 = vadd.s32 72, %v4160_v1 }
  0x43   : > { %8271 = vst [vmem:[#allocation12_spill] sm:$0xff] %v4186_v15  ;;  %8272 = vst [vmem:[#allocation13_spill] sm:$0xff] %v4189_v16  ;;  %v4216_v25 = vadd.s32 64, %v4160_v1  ;;  %v4219_v26 = vadd.s32 88, %v4160_v1  ;;  %v4221_v27 = vrot.slane %v200_v11, %v891_v8  ;;  %v4223_v28 = vrot.slane %v200_v11, %v1055_v9 }
  0x44   : > { %8273 = vst [vmem:[#allocation14_spill] sm:$0xff] %v4192_v17  ;;  %8274 = vst [vmem:[#allocation15_spill] sm:$0xff] %v4195_v18  ;;  %v4225_v29 = vrot.slane %v200_v11, %v1219_v10  ;;  %v4228_v30 = vadd.s32 80, %v4160_v1  ;;  %v4230_v31 = vrot.slane %v200_v11, %v1383_v12  ;;  %vm239_vm0 = vcmp.gt.s32.totalorder %v4180_v13, %v4198_v19 }
  0x45   : > { %8275 = vst [vmem:[#allocation16_spill] sm:$0xff] %v4207_v22  ;;  %8276 = vst [vmem:[#allocation17_spill] sm:$0xff] %v4213_v24  ;;  %vm403_vm1 = vcmp.gt.s32.totalorder %v4180_v13, %v4201_v20  ;;  %vm567_vm2 = vcmp.gt.s32.totalorder %v4180_v13, %v4204_v21  ;;  %v4239_v32 = vadd.s32 104, %v4160_v1  ;;  %v4242_v33 = vadd.s32 96, %v4160_v1 }
  0x46   : > { %8277 = vst [vmem:[#allocation18_spill] sm:$0xff] %v4216_v25  ;;  %8278 = vst [vmem:[#allocation19_spill] sm:$0xff] %v4219_v26  ;;  %v4245_v34 = vadd.s32 120, %v4160_v1  ;;  %v4248_v35 = vadd.s32 112, %v4160_v1  ;;  %v271_v37 = vsel %vm239_vm0, 1, %v4030_v36  ;;  %v435_v38 = vsel %vm403_vm1, 1, %v4030_v36 }
  0x47   : > { %8279 = vst [vmem:[#allocation20_spill] sm:$0xff] %v4228_v30  ;;  %8280 = vst [vmem:[#allocation21_spill] sm:$0xff] %v4239_v32  ;;  %v599_v39 = vsel %vm567_vm2, 1, %v4030_v36  ;;  %vm731_vm3 = vcmp.gt.s32.totalorder %v4180_v13, %v4210_v23  ;;  %v467_v40 = vadd.s32 %v435_v38, %v271_v37  ;;  %vm895_vm4 = vcmp.gt.s32.totalorder %v4180_v13, %v4221_v27 }
  0x48   : > { %8281 = vst [vmem:[#allocation22_spill] sm:$0xff] %v4242_v33  ;;  %8282 = vst [vmem:[#allocation23_spill] sm:$0xff] %v4245_v34  ;;  %vm1059_vm5 = vcmp.gt.s32.totalorder %v4180_v13, %v4223_v28  ;;  %v4260_v41 = vadd.s32 136, %v4160_v1  ;;  %v763_v42 = vsel %vm731_vm3, 1, %v4030_v36  ;;  %v927_v43 = vsel %vm895_vm4, 1, %v4030_v36 }
  0x49   : > { %8283 = vst [vmem:[#allocation24_spill] sm:$0xff] %v4248_v35  ;;  %vm1223_vm6 = vcmp.gt.s32.totalorder %v4180_v13, %v4225_v29  ;;  %vm1387_vm7 = vcmp.gt.s32.totalorder %v4180_v13, %v4230_v31  ;;  %v631_v44 = vadd.s32 %v599_v39, %v467_v40  ;;  %v1091_v45 = vsel %vm1059_vm5, 1, %v4030_v36 }
  0x4a   : > { %8284 = vst [vmem:[#allocation25_spill] sm:$0xff] %v4260_v41  ;;  %v1255_v46 = vsel %vm1223_vm6, 1, %v4030_v36  ;;  %vm237_vm8 = vcmp.gt.s32.totalorder %v4160_v1, %v4198_v19  ;;  %vm401_vm9 = vcmp.gt.s32.totalorder %v4160_v1, %v4201_v20  ;;  %vm565_vm10 = vcmp.gt.s32.totalorder %v4160_v1, %v4204_v21 }
  0x4b   : > { %v269_v47 = vsel %vm237_vm8, 1, %v4030_v36  ;;  %vm729_vm11 = vcmp.gt.s32.totalorder %v4160_v1, %v4210_v23  ;;  %v795_v48 = vadd.s32 %v763_v42, %v631_v44  ;;  %v1419_v49 = vsel %vm1387_vm7, 1, %v4030_v36 }
  0x4c   : > { %v433_v50 = vsel %vm401_vm9, 1, %v4030_v36  ;;  %v597_v51 = vsel %vm565_vm10, 1, %v4030_v36  ;;  %vm893_vm12 = vcmp.gt.s32.totalorder %v4160_v1, %v4221_v27  ;;  %vm1057_vm13 = vcmp.gt.s32.totalorder %v4160_v1, %v4223_v28 }
  0x4d   : > { %v465_v52 = vadd.s32 %v433_v50, %v269_v47  ;;  %vm1221_vm14 = vcmp.gt.s32.totalorder %v4160_v1, %v4225_v29  ;;  %v959_v53 = vadd.s32 %v927_v43, %v795_v48  ;;  %v761_v54 = vsel %vm729_vm11, 1, %v4030_v36 }
  0x4e   : > { %v925_v55 = vsel %vm893_vm12, 1, %v4030_v36  ;;  %v1089_v56 = vsel %vm1057_vm13, 1, %v4030_v36  ;;  %v1253_v58 = vsel %vm1221_vm14, 1, %v4030_v36  ;;  %vm240_vm15 = vcmp.gt.s32.totalorder %v4183_v14, %v4198_v19 }
  0x4f   : > { %v629_v57 = vadd.s32 %v597_v51, %v465_v52  ;;  %vm404_vm0 = vcmp.gt.s32.totalorder %v4183_v14, %v4201_v20  ;;  %v1123_v59 = vadd.s32 %v1091_v45, %v959_v53  ;;  %vm1385_vm1 = vcmp.gt.s32.totalorder %v4160_v1, %v4230_v31 }
  0x50   : > { %v272_v60 = vsel %vm240_vm15, 1, %v4030_v36  ;;  %v436_v61 = vsel %vm404_vm0, 1, %v4030_v36  ;;  %vm568_vm2 = vcmp.gt.s32.totalorder %v4183_v14, %v4204_v21  ;;  %vm732_vm3 = vcmp.gt.s32.totalorder %v4183_v14, %v4210_v23 }
  0x51   : > { %v793_v62 = vadd.s32 %v761_v54, %v629_v57  ;;  %v468_v63 = vadd.s32 %v436_v61, %v272_v60  ;;  %v1287_v0 = vadd.s32 %v1255_v46, %v1123_v59  ;;  %v600_v2 = vsel %vm568_vm2, 1, %v4030_v36 }
  0x52   : > { %v764_v3 = vsel %vm732_vm3, 1, %v4030_v36  ;;  %vm896_vm4 = vcmp.gt.s32.totalorder %v4183_v14, %v4221_v27  ;;  %v1417_v9 = vsel %vm1385_vm1, 1, %v4030_v36  ;;  %vm1060_vm5 = vcmp.gt.s32.totalorder %v4183_v14, %v4223_v28 }
  0x53   : > { %v957_v8 = vadd.s32 %v925_v55, %v793_v62  ;;  %v632_v10 = vadd.s32 %v600_v2, %v468_v63  ;;  %v4311_v11 = vadd.s32 %v1419_v49, %v1287_v0  ;;  %v928_v12 = vsel %vm896_vm4, 1, %v4030_v36 }
  0x54   : > { %v1092_v37 = vsel %vm1060_vm5, 1, %v4030_v36  ;;  %vm1224_vm6 = vcmp.gt.s32.totalorder %v4183_v14, %v4225_v29  ;;  %vm1388_vm7 = vcmp.gt.s32.totalorder %v4183_v14, %v4230_v31  ;;  %vm238_vm8 = vcmp.gt.s32.totalorder %v4186_v15, %v4198_v19 }
  0x55   : > { %v1121_v38 = vadd.s32 %v1089_v56, %v957_v8  ;;  %v796_v39 = vadd.s32 %v764_v3, %v632_v10  ;;  %v1256_v40 = vsel %vm1224_vm6, 1, %v4030_v36  ;;  %v1570_v42 = vshrl.u32 %v4311_v11, 16 }
  0x56   : > { %vm402_vm9 = vcmp.gt.s32.totalorder %v4186_v15, %v4201_v20  ;;  %vm566_vm10 = vcmp.gt.s32.totalorder %v4186_v15, %v4204_v21  ;;  %v270_v45 = vsel %vm238_vm8, 1, %v4030_v36  ;;  %vm730_vm11 = vcmp.gt.s32.totalorder %v4186_v15, %v4210_v23 }
  0x57   : > { %v1285_v43 = vadd.s32 %v1253_v58, %v1121_v38  ;;  %v960_v44 = vadd.s32 %v928_v12, %v796_v39  ;;  %v434_v46 = vsel %vm402_vm9, 1, %v4030_v36  ;;  %v1572_v47 = vcvt.s32.f32 %v1570_v42 }
  0x58   : > { %v466_v48 = vadd.s32 %v434_v46, %v270_v45  ;;  %v598_v49 = vsel %vm566_vm10, 1, %v4030_v36  ;;  %v762_v52 = vsel %vm730_vm11, 1, %v4030_v36  ;;  %vm894_vm12 = vcmp.gt.s32.totalorder %v4186_v15, %v4221_v27 }
  0x59   : > { %v4332_v50 = vadd.s32 %v1417_v9, %v1285_v43  ;;  %v1124_v51 = vadd.s32 %v1092_v37, %v960_v44  ;;  %1575 = vadd.xlane.f32.xlu1 %v1572_v47  ;;  %v1420_v53 = vsel %vm1388_vm7, 1, %v4030_v36  ;;  %vm1058_vm13 = vcmp.gt.s32.totalorder %v4186_v15, %v4223_v28 }
  0x5a   : > { %v630_v54 = vadd.s32 %v598_v49, %v466_v48  ;;  %v4344_v55 = vadd.s32 128, %v4160_v1  ;;  %v926_v58 = vsel %vm894_vm12, 1, %v4030_v36  ;;  %vm1222_vm14 = vcmp.gt.s32.totalorder %v4186_v15, %v4225_v29 }
  0x5b   : > { %v1546_v56 = vshrl.u32 %v4332_v50, 16  ;;  %v1288_v57 = vadd.s32 %v1256_v40, %v1124_v51  ;;  %v1090_v60 = vsel %vm1058_vm13, 1, %v4030_v36  ;;  %vm242_vm15 = vcmp.gt.s32.totalorder %v4189_v16, %v4198_v19 }
  0x5c   : > { %8285 = vst [vmem:[#allocation26_spill] sm:$0xff] %v4344_v55  ;;  %v794_v59 = vadd.s32 %v762_v52, %v630_v54  ;;  %vm406_vm0 = vcmp.gt.s32.totalorder %v4189_v16, %v4201_v20  ;;  %vm1386_vm1 = vcmp.gt.s32.totalorder %v4186_v15, %v4230_v31  ;;  %v274_v63 = vsel %vm242_vm15, 1, %v4030_v36 }
  0x5d   : > { %v1548_v61 = vcvt.s32.f32 %v1546_v56  ;;  %v4355_v62 = vadd.s32 %v1420_v53, %v1288_v57  ;;  %v438_v2 = vsel %vm406_vm0, 1, %v4030_v36  ;;  %vm570_vm2 = vcmp.gt.s32.totalorder %v4189_v16, %v4204_v21 }
  0x5e   : > { %v958_v0 = vadd.s32 %v926_v58, %v794_v59  ;;  %vm734_vm3 = vcmp.gt.s32.totalorder %v4189_v16, %v4210_v23  ;;  %v1254_v8 = vsel %vm1222_vm14, 1, %v4030_v36  ;;  %v470_v9 = vadd.s32 %v438_v2, %v274_v63 }
  0x5f   : > { %1551 = vadd.xlane.f32.xlu0 %v1548_v61  ;;  %v1582_v3 = vshrl.u32 %v4355_v62, 16  ;;  %v602_v10 = vsel %vm570_vm2, 1, %v4030_v36  ;;  %v766_v37 = vsel %vm734_vm3, 1, %v4030_v36  ;;  %vm898_vm4 = vcmp.gt.s32.totalorder %v4189_v16, %v4221_v27 }
  0x60   : > { %v1122_v12 = vadd.s32 %v1090_v60, %v958_v0  ;;  %vm1062_vm5 = vcmp.gt.s32.totalorder %v4189_v16, %v4223_v28  ;;  %v1418_v39 = vsel %vm1386_vm1, 1, %v4030_v36  ;;  %v634_v40 = vadd.s32 %v602_v10, %v470_v9 }
  0x61   : > { %v1584_v38 = vcvt.s32.f32 %v1582_v3  ;;  %vm1226_vm6 = vcmp.gt.s32.totalorder %v4189_v16, %v4225_v29  ;;  %v930_v43 = vsel %vm898_vm4, 1, %v4030_v36  ;;  %v1094_v44 = vsel %vm1062_vm5, 1, %v4030_v36 }
  0x62   : > { %v1286_v42 = vadd.s32 %v1254_v8, %v1122_v12  ;;  %vm241_vm7 = vcmp.gt.s32.totalorder %v4192_v17, %v4198_v19  ;;  %v798_v45 = vadd.s32 %v766_v37, %v634_v40  ;;  %vm1390_vm8 = vcmp.gt.s32.totalorder %v4189_v16, %v4230_v31 }
  0x63   : > { %1587 = vadd.xlane.f32.xlu1 %v1584_v38  ;;  %v273_v46 = vsel %vm241_vm7, 1, %v4030_v36  ;;  %vm405_vm9 = vcmp.gt.s32.totalorder %v4192_v17, %v4201_v20  ;;  %vm569_vm10 = vcmp.gt.s32.totalorder %v4192_v17, %v4204_v21  ;;  %vm733_vm11 = vcmp.gt.s32.totalorder %v4192_v17, %v4210_v23 }
  0x64   : > { %v4388_v47 = vadd.s32 %v1418_v39, %v1286_v42  ;;  %v437_v48 = vsel %vm405_vm9, 1, %v4030_v36  ;;  %v962_v49 = vadd.s32 %v930_v43, %v798_v45  ;;  %v1258_v51 = vsel %vm1226_vm6, 1, %v4030_v36 }
  0x65   : > { %v469_v52 = vadd.s32 %v437_v48, %v273_v46  ;;  %v601_v53 = vsel %vm569_vm10, 1, %v4030_v36  ;;  %v765_v56 = vsel %vm733_vm11, 1, %v4030_v36  ;;  %vm897_vm12 = vcmp.gt.s32.totalorder %v4192_v17, %v4221_v27 }
  0x66   : > { %v1558_v54 = vshrl.u32 %v4388_v47, 16  ;;  %vm1061_vm13 = vcmp.gt.s32.totalorder %v4192_v17, %v4223_v28  ;;  %v1126_v57 = vadd.s32 %v1094_v44, %v962_v49  ;;  %v1422_v58 = vsel %vm1390_vm8, 1, %v4030_v36 }
  0x67   : > { %v633_v59 = vadd.s32 %v601_v53, %v469_v52  ;;  %vm1225_vm14 = vcmp.gt.s32.totalorder %v4192_v17, %v4225_v29  ;;  %v929_v61 = vsel %vm897_vm12, 1, %v4030_v36  ;;  %v1093_v63 = vsel %vm1061_vm13, 1, %v4030_v36 }
  0x68   : > { %v1560_v60 = vcvt.s32.f32 %v1558_v54  ;;  %vm244_vm15 = vcmp.gt.s32.totalorder %v4195_v18, %v4198_v19  ;;  %v1290_v0 = vadd.s32 %v1258_v51, %v1126_v57  ;;  %vm1389_vm0 = vcmp.gt.s32.totalorder %v4192_v17, %v4230_v31 }
  0x69   : > { %v797_v2 = vadd.s32 %v765_v56, %v633_v59  ;;  %v276_v3 = vsel %vm244_vm15, 1, %v4030_v36  ;;  %vm408_vm1 = vcmp.gt.s32.totalorder %v4195_v18, %v4201_v20  ;;  %vm572_vm2 = vcmp.gt.s32.totalorder %v4195_v18, %v4204_v21 }
  0x6a   : > { %1563 = vadd.xlane.f32.xlu0 %v1560_v60  ;;  %vm736_vm3 = vcmp.gt.s32.totalorder %v4195_v18, %v4210_v23  ;;  %vm900_vm4 = vcmp.gt.s32.totalorder %v4195_v18, %v4221_v27  ;;  %v4424_v8 = vadd.s32 %v1422_v58, %v1290_v0  ;;  %v440_v10 = vsel %vm408_vm1, 1, %v4030_v36 }
  0x6b   : > { %v961_v9 = vadd.s32 %v929_v61, %v797_v2  ;;  %v604_v12 = vsel %vm572_vm2, 1, %v4030_v36  ;;  %v1257_v37 = vsel %vm1225_vm14, 1, %v4030_v36  ;;  %v1421_v38 = vsel %vm1389_vm0, 1, %v4030_v36 }
  0x6c   : > { %v472_v39 = vadd.s32 %v440_v10, %v276_v3  ;;  %vm1064_vm5 = vcmp.gt.s32.totalorder %v4195_v18, %v4223_v28  ;;  %v1606_v40 = vshrl.u32 %v4424_v8, 16  ;;  %v768_v43 = vsel %vm736_vm3, 1, %v4030_v36 }
  0x6d   : > { %v1125_v42 = vadd.s32 %v1093_v63, %v961_v9  ;;  %v932_v44 = vsel %vm900_vm4, 1, %v4030_v36  ;;  %v1096_v46 = vsel %vm1064_vm5, 1, %v4030_v36  ;;  %vm1228_vm6 = vcmp.gt.s32.totalorder %v4195_v18, %v4225_v29 }
  0x6e   : > { %v636_v45 = vadd.s32 %v604_v12, %v472_v39  ;;  %vm243_vm7 = vcmp.gt.s32.totalorder %v4207_v22, %v4198_v19  ;;  %v1608_v48 = vcvt.s32.f32 %v1606_v40  ;;  %vm1392_vm8 = vcmp.gt.s32.totalorder %v4195_v18, %v4230_v31 }
  0x6f   : > { %v1289_v49 = vadd.s32 %v1257_v37, %v1125_v42  ;;  %v275_v51 = vsel %vm243_vm7, 1, %v4030_v36  ;;  %vm407_vm9 = vcmp.gt.s32.totalorder %v4207_v22, %v4201_v20  ;;  %vm571_vm10 = vcmp.gt.s32.totalorder %v4207_v22, %v4204_v21 }
  0x70   : > { %v800_v52 = vadd.s32 %v768_v43, %v636_v45  ;;  %vm735_vm11 = vcmp.gt.s32.totalorder %v4207_v22, %v4210_v23  ;;  %1611 = vadd.xlane.f32.xlu1 %v1608_v48  ;;  %v1260_v54 = vsel %vm1228_vm6, 1, %v4030_v36  ;;  %v439_v56 = vsel %vm407_vm9, 1, %v4030_v36 }
  0x71   : > { %v1453_v53 = vadd.s32 %v1421_v38, %v1289_v49  ;;  %v603_v57 = vsel %vm571_vm10, 1, %v4030_v36  ;;  %v471_v59 = vadd.s32 %v439_v56, %v275_v51  ;;  %vm899_vm12 = vcmp.gt.s32.totalorder %v4207_v22, %v4221_v27 }
  0x72   : > { %v964_v58 = vadd.s32 %v932_v44, %v800_v52  ;;  %vm1063_vm13 = vcmp.gt.s32.totalorder %v4207_v22, %v4223_v28  ;;  %v1424_v61 = vsel %vm1392_vm8, 1, %v4030_v36  ;;  %v767_v63 = vsel %vm735_vm11, 1, %v4030_v36 }
  0x73   : > { %v1594_v60 = vshrl.u32 %v1453_v53, 16  ;;  %v931_v0 = vsel %vm899_vm12, 1, %v4030_v36  ;;  %v635_v3 = vadd.s32 %v603_v57, %v471_v59  ;;  %vm1227_vm14 = vcmp.gt.s32.totalorder %v4207_v22, %v4225_v29 }
  0x74   : > { %v1128_v2 = vadd.s32 %v1096_v46, %v964_v58  ;;  %vm1391_vm15 = vcmp.gt.s32.totalorder %v4207_v22, %v4230_v31  ;;  %v1095_v10 = vsel %vm1063_vm13, 1, %v4030_v36  ;;  %v1557_v12 = vand.u32 65535, %v4388_v47 }
  0x75   : > { %v1596_v9 = vcvt.s32.f32 %v1594_v60  ;;  %v1545_v37 = vand.u32 65535, %v4332_v50  ;;  %v799_v39 = vadd.s32 %v767_v63, %v635_v3  ;;  %v1581_v40 = vand.u32 65535, %v4355_v62 }
  0x76   : > { %v1292_v38 = vadd.s32 %v1260_v54, %v1128_v2  ;;  %v1569_v42 = vand.u32 65535, %v4311_v11  ;;  %v1259_v43 = vsel %vm1227_vm14, 1, %v4030_v36  ;;  %v1423_v44 = vsel %vm1391_vm15, 1, %v4030_v36 }
  0x77   : > { %1599 = vadd.xlane.f32.xlu0 %v1596_v9  ;;  %v1559_v45 = vcvt.s32.f32 %v1557_v12  ;;  %v4476_v46 = vcvt.s32.f32 %v1545_v37  ;;  %v963_v49 = vadd.s32 %v931_v0, %v799_v39  ;;  %v1605_v47 = vand.u32 65535, %v4424_v8 }
  0x78   : > { %v1456_v48 = vadd.s32 %v1424_v61, %v1292_v38  ;;  %v1593_v51 = vand.u32 65535, %v1453_v53  ;;  %v1583_v50 = vcvt.s32.f32 %v1581_v40  ;;  %v4479_v52 = vcvt.s32.f32 %v1569_v42 }
  0x79   : > { %vm246_vm0 = vcmp.gt.s32.totalorder %v4213_v24, %v4198_v19  ;;  %vm410_vm1 = vcmp.gt.s32.totalorder %v4213_v24, %v4201_v20  ;;  %v1127_v62 = vadd.s32 %v1095_v10, %v963_v49  ;;  %vm574_vm2 = vcmp.gt.s32.totalorder %v4213_v24, %v4204_v21 }
  0x7a   : > { %v1630_v11 = vshrl.u32 %v1456_v48, 16  ;;  %v1629_v54 = vand.u32 65535, %v1456_v48  ;;  %v278_v56 = vsel %vm246_vm0, 1, %v4030_v36  ;;  %v442_v57 = vsel %vm410_vm1, 1, %v4030_v36 }
  0x7b   : > { %vm738_vm3 = vcmp.gt.s32.totalorder %v4213_v24, %v4210_v23  ;;  %vm902_vm4 = vcmp.gt.s32.totalorder %v4213_v24, %v4221_v27  ;;  %v1291_v53 = vadd.s32 %v1259_v43, %v1127_v62  ;;  %v1607_v58 = vcvt.s32.f32 %v1605_v47 }
  0x7c   : > { %v1632_v8 = vcvt.s32.f32 %v1630_v11  ;;  %v474_v59 = vadd.s32 %v442_v57, %v278_v56  ;;  %v4493_v60 = vcvt.s32.f32 %v1593_v51  ;;  %v606_v61 = vsel %vm574_vm2, 1, %v4030_v36 }
  0x7d   : > { %v770_v63 = vsel %vm738_vm3, 1, %v4030_v36  ;;  %vm1066_vm5 = vcmp.gt.s32.totalorder %v4213_v24, %v4223_v28  ;;  %v1455_v0 = vadd.s32 %v1423_v44, %v1291_v53  ;;  %v4499_v2 = vcvt.s32.f32 %v1629_v54 }
  0x7e   : > { %1635 = vadd.xlane.f32.xlu1 %v1632_v8  ;;  %v638_v3 = vadd.s32 %v606_v61, %v474_v59  ;;  %v934_v9 = vsel %vm902_vm4, 1, %v4030_v36  ;;  %v1098_v10 = vsel %vm1066_vm5, 1, %v4030_v36  ;;  %vm1230_vm6 = vcmp.gt.s32.totalorder %v4213_v24, %v4225_v29 }
  0x7f   : > { %vm245_vm7 = vcmp.gt.s32.totalorder %v4216_v25, %v4198_v19  ;;  %vm409_vm8 = vcmp.gt.s32.totalorder %v4216_v25, %v4201_v20  ;;  %v1618_v12 = vshrl.u32 %v1455_v0, 16  ;;  %v1617_v37 = vand.u32 65535, %v1455_v0 }
  0x80   : > { %v802_v38 = vadd.s32 %v770_v63, %v638_v3  ;;  %vm1394_vm9 = vcmp.gt.s32.totalorder %v4213_v24, %v4230_v31  ;;  %v277_v39 = vsel %vm245_vm7, 1, %v4030_v36  ;;  %v441_v40 = vsel %vm409_vm8, 1, %v4030_v36 }
  0x81   : > { %vm573_vm10 = vcmp.gt.s32.totalorder %v4216_v25, %v4204_v21  ;;  %vm737_vm11 = vcmp.gt.s32.totalorder %v4216_v25, %v4210_v23  ;;  %v1620_v42 = vcvt.s32.f32 %v1618_v12  ;;  %v1262_v44 = vsel %vm1230_vm6, 1, %v4030_v36 }
  0x82   : > { %1561 = vadd.xlane.f32.xlu1 %v1559_v45  ;;  %v966_v43 = vadd.s32 %v934_v9, %v802_v38  ;;  %v473_v48 = vadd.s32 %v441_v40, %v277_v39  ;;  %v605_v49 = vsel %vm573_vm10, 1, %v4030_v36  ;;  %v769_v47 = vsel %vm737_vm11, 1, %v4030_v36 }
  0x83   : > { %vm901_vm12 = vcmp.gt.s32.totalorder %v4216_v25, %v4221_v27  ;;  %vm1065_vm13 = vcmp.gt.s32.totalorder %v4216_v25, %v4223_v28  ;;  %1623 = vadd.xlane.f32.xlu0 %v1620_v42  ;;  %v4524_v51 = vcvt.s32.f32 %v1617_v37  ;;  %v1426_v45 = vsel %vm1394_vm9, 1, %v4030_v36 }
  0x84   : > { %v1130_v11 = vadd.s32 %v1098_v10, %v966_v43  ;;  %v637_v62 = vadd.s32 %v605_v49, %v473_v48  ;;  %v933_v54 = vsel %vm901_vm12, 1, %v4030_v36  ;;  %v1097_v56 = vsel %vm1065_vm13, 1, %v4030_v36 }
  0x85   : > { %vm248_vm14 = vcmp.gt.s32.totalorder %v4219_v26, %v4198_v19  ;;  %vm412_vm15 = vcmp.gt.s32.totalorder %v4219_v26, %v4201_v20  ;;  %vm1229_vm0 = vcmp.gt.s32.totalorder %v4216_v25, %v4225_v29  ;;  %vm1393_vm1 = vcmp.gt.s32.totalorder %v4216_v25, %v4230_v31 }
  0x86   : > { %1585 = vadd.xlane.f32.xlu1 %v1583_v50  ;;  %v1294_v57 = vadd.s32 %v1262_v44, %v1130_v11  ;;  %v801_v8 = vadd.s32 %v769_v47, %v637_v62  ;;  %v280_v53 = vsel %vm248_vm14, 1, %v4030_v36  ;;  %v444_v59 = vsel %vm412_vm15, 1, %v4030_v36 }
  0x87   : > { %vm576_vm2 = vcmp.gt.s32.totalorder %v4219_v26, %v4204_v21  ;;  %vm740_vm3 = vcmp.gt.s32.totalorder %v4219_v26, %v4210_v23  ;;  %1549 = vadd.xlane.f32.xlu0 %v4476_v46  ;;  %v476_v63 = vadd.s32 %v444_v59, %v280_v53  ;;  %v1261_v3 = vsel %vm1229_vm0, 1, %v4030_v36 }
  0x88   : > { %v4547_v50 = vadd.s32 %v1426_v45, %v1294_v57  ;;  %v965_v61 = vadd.s32 %v933_v54, %v801_v8  ;;  %v608_v0 = vsel %vm576_vm2, 1, %v4030_v36  ;;  %v772_v9 = vsel %vm740_vm3, 1, %v4030_v36 }
  0x89   : > { %vm904_vm4 = vcmp.gt.s32.totalorder %v4219_v26, %v4221_v27  ;;  %vm1068_vm5 = vcmp.gt.s32.totalorder %v4219_v26, %v4223_v28  ;;  %v1425_v12 = vsel %vm1393_vm1, 1, %v4030_v36  ;;  %v640_v37 = vadd.s32 %v608_v0, %v476_v63 }
  0x8a   : > { %1609 = vadd.xlane.f32.xlu1 %v1607_v58  ;;  %v1654_v10 = vshrl.u32 %v4547_v50, 16  ;;  %v1129_v46 = vadd.s32 %v1097_v56, %v965_v61  ;;  %v936_v38 = vsel %vm904_vm4, 1, %v4030_v36  ;;  %v1100_v39 = vsel %vm1068_vm5, 1, %v4030_v36 }
  0x8b   : > { %vm1232_vm6 = vcmp.gt.s32.totalorder %v4219_v26, %v4225_v29  ;;  %vm247_vm7 = vcmp.gt.s32.totalorder %v4228_v30, %v4198_v19  ;;  %1573 = vadd.xlane.f32.xlu0 %v4479_v52  ;;  %v804_v42 = vadd.s32 %v772_v9, %v640_v37  ;;  %vm1396_vm8 = vcmp.gt.s32.totalorder %v4219_v26, %v4230_v31 }
  0x8c   : > { %v1656_v58 = vcvt.s32.f32 %v1654_v10  ;;  %v1293_v40 = vadd.s32 %v1261_v3, %v1129_v46  ;;  %v279_v43 = vsel %vm247_vm7, 1, %v4030_v36  ;;  %vm411_vm9 = vcmp.gt.s32.totalorder %v4228_v30, %v4201_v20 }
  0x8d   : > { %vm575_vm10 = vcmp.gt.s32.totalorder %v4228_v30, %v4204_v21  ;;  %vm739_vm11 = vcmp.gt.s32.totalorder %v4228_v30, %v4210_v23  ;;  %v968_v44 = vadd.s32 %v936_v38, %v804_v42  ;;  %v443_v48 = vsel %vm411_vm9, 1, %v4030_v36 }
  0x8e   : > { %1633 = vadd.xlane.f32.xlu1 %v4499_v2  ;;  %v1457_v52 = vadd.s32 %v1425_v12, %v1293_v40  ;;  %v607_v49 = vsel %vm575_vm10, 1, %v4030_v36  ;;  %v1264_v47 = vsel %vm1232_vm6, 1, %v4030_v36  ;;  %v475_v11 = vadd.s32 %v443_v48, %v279_v43 }
  0x8f   : > { %vm903_vm12 = vcmp.gt.s32.totalorder %v4228_v30, %v4221_v27  ;;  %vm1067_vm13 = vcmp.gt.s32.totalorder %v4228_v30, %v4223_v28  ;;  %1597 = vadd.xlane.f32.xlu0 %v4493_v60  ;;  %v1132_v45 = vadd.s32 %v1100_v39, %v968_v44  ;;  %v1428_v62 = vsel %vm1396_vm8, 1, %v4030_v36 }
  0x90   : > { %v1642_v2 = vshrl.u32 %v1457_v52, 16  ;;  %v771_v54 = vsel %vm739_vm11, 1, %v4030_v36  ;;  %v639_v56 = vadd.s32 %v607_v49, %v475_v11  ;;  %v935_v57 = vsel %vm903_vm12, 1, %v4030_v36 }
  0x91   : > { %v1099_v8 = vsel %vm1067_vm13, 1, %v4030_v36  ;;  %vm1231_vm14 = vcmp.gt.s32.totalorder %v4228_v30, %v4225_v29  ;;  %v1296_v60 = vadd.s32 %v1264_v47, %v1132_v45  ;;  %vm1395_vm15 = vcmp.gt.s32.totalorder %v4228_v30, %v4230_v31 }
  0x92   : > { %1659 = vadd.xlane.f32.xlu1 %v1656_v58  ;;  %v1644_v53 = vcvt.s32.f32 %v1642_v2  ;;  %v1653_v59 = vand.u32 65535, %v4547_v50  ;;  %v803_v61 = vadd.s32 %v771_v54, %v639_v56  ;;  %v1263_v63 = vsel %vm1231_vm14, 1, %v4030_v36 }
  0x93   : > { %v1641_v0 = vand.u32 65535, %v1457_v52  ;;  %vm250_vm0 = vcmp.gt.s32.totalorder %v4239_v32, %v4198_v19  ;;  %1621 = vadd.xlane.f32.xlu0 %v4524_v51  ;;  %v1460_v3 = vadd.s32 %v1428_v62, %v1296_v60  ;;  %vm414_vm1 = vcmp.gt.s32.totalorder %v4239_v32, %v4201_v20 }
  0x94   : > { %v282_v9 = vsel %vm250_vm0, 1, %v4030_v36  ;;  %vm578_vm2 = vcmp.gt.s32.totalorder %v4239_v32, %v4204_v21  ;;  %v967_v10 = vadd.s32 %v935_v57, %v803_v61  ;;  %v1427_v50 = vsel %vm1395_vm15, 1, %v4030_v36 }
  0x95   : > { %v446_v46 = vsel %vm414_vm1, 1, %v4030_v36  ;;  %v610_v12 = vsel %vm578_vm2, 1, %v4030_v36  ;;  %v1678_v37 = vshrl.u32 %v1460_v3, 16  ;;  %v1677_v38 = vand.u32 65535, %v1460_v3 }
  0x96   : > { %v478_v39 = vadd.s32 %v446_v46, %v282_v9  ;;  %vm742_vm3 = vcmp.gt.s32.totalorder %v4239_v32, %v4210_v23  ;;  %v1131_v51 = vadd.s32 %v1099_v8, %v967_v10  ;;  %vm906_vm4 = vcmp.gt.s32.totalorder %v4239_v32, %v4221_v27 }
  0x97   : > { %v774_v58 = vsel %vm742_vm3, 1, %v4030_v36  ;;  %vm1070_vm5 = vcmp.gt.s32.totalorder %v4239_v32, %v4223_v28  ;;  %1647 = vadd.xlane.f32.xlu0 %v1644_v53  ;;  %v1680_v40 = vcvt.s32.f32 %v1678_v37  ;;  %v1655_v42 = vcvt.s32.f32 %v1653_v59 }
  0x98   : > { %v1643_v43 = vcvt.s32.f32 %v1641_v0  ;;  %v642_v52 = vadd.s32 %v610_v12, %v478_v39  ;;  %v1295_v44 = vadd.s32 %v1263_v63, %v1131_v51  ;;  %v1679_v48 = vcvt.s32.f32 %v1677_v38 }
  0x99   : > { %v938_v49 = vsel %vm906_vm4, 1, %v4030_v36  ;;  %v1102_v47 = vsel %vm1070_vm5, 1, %v4030_v36  ;;  %1683 = vadd.xlane.f32.xlu1 %v1680_v40  ;;  %vm1234_vm6 = vcmp.gt.s32.totalorder %v4239_v32, %v4225_v29  ;;  %vm1398_vm7 = vcmp.gt.s32.totalorder %v4239_v32, %v4230_v31 }
  0x9a   : > { %v806_v11 = vadd.s32 %v774_v58, %v642_v52  ;;  %vm249_vm8 = vcmp.gt.s32.totalorder %v4242_v33, %v4198_v19  ;;  %v1459_v2 = vadd.s32 %v1427_v50, %v1295_v44  ;;  %vm413_vm9 = vcmp.gt.s32.totalorder %v4242_v33, %v4201_v20 }
  0x9b   : > { %v281_v45 = vsel %vm249_vm8, 1, %v4030_v36  ;;  %vm577_vm10 = vcmp.gt.s32.totalorder %v4242_v33, %v4204_v21  ;;  %v445_v54 = vsel %vm413_vm9, 1, %v4030_v36  ;;  %vm741_vm11 = vcmp.gt.s32.totalorder %v4242_v33, %v4210_v23 }
  0x9c   : > { %v970_v62 = vadd.s32 %v938_v49, %v806_v11  ;;  %v609_v56 = vsel %vm577_vm10, 1, %v4030_v36  ;;  %v1666_v57 = vshrl.u32 %v1459_v2, 16  ;;  %v1266_v8 = vsel %vm1234_vm6, 1, %v4030_v36 }
  0x9d   : > { %v477_v53 = vadd.s32 %v445_v54, %v281_v45  ;;  %v773_v60 = vsel %vm741_vm11, 1, %v4030_v36  ;;  %1657 = vadd.xlane.f32.xlu1 %v1655_v42  ;;  %vm905_vm12 = vcmp.gt.s32.totalorder %v4242_v33, %v4221_v27  ;;  %vm1069_vm13 = vcmp.gt.s32.totalorder %v4242_v33, %v4223_v28 }
  0x9e   : > { %v1134_v59 = vadd.s32 %v1102_v47, %v970_v62  ;;  %vm1233_vm14 = vcmp.gt.s32.totalorder %v4242_v33, %v4225_v29  ;;  %v1668_v61 = vcvt.s32.f32 %v1666_v57  ;;  %v1665_v63 = vand.u32 65535, %v1459_v2 }
  0x9f   : > { %v1430_v0 = vsel %vm1398_vm7, 1, %v4030_v36  ;;  %v641_v3 = vadd.s32 %v609_v56, %v477_v53  ;;  %v937_v10 = vsel %vm905_vm12, 1, %v4030_v36  ;;  %v1101_v50 = vsel %vm1069_vm13, 1, %v4030_v36 }
  0xa0   : > { %v1298_v9 = vadd.s32 %v1266_v8, %v1134_v59  ;;  %v1265_v46 = vsel %vm1233_vm14, 1, %v4030_v36  ;;  %1671 = vadd.xlane.f32.xlu0 %v1668_v61  ;;  %vm1397_vm15 = vcmp.gt.s32.totalorder %v4242_v33, %v4230_v31  ;;  %vm252_vm0 = vcmp.gt.s32.totalorder %v4245_v34, %v4198_v19 }
  0xa1   : > { %v805_v12 = vadd.s32 %v773_v60, %v641_v3  ;;  %vm416_vm1 = vcmp.gt.s32.totalorder %v4245_v34, %v4201_v20  ;;  %1681 = vadd.xlane.f32.xlu1 %v1679_v48  ;;  %v284_v38 = vsel %vm252_vm0, 1, %v4030_v36  ;;  %vm580_vm2 = vcmp.gt.s32.totalorder %v4245_v34, %v4204_v21 }
  0xa2   : > { %v1462_v37 = vadd.s32 %v1430_v0, %v1298_v9  ;;  %v448_v39 = vsel %vm416_vm1, 1, %v4030_v36  ;;  %v612_v40 = vsel %vm580_vm2, 1, %v4030_v36  ;;  %vm744_vm3 = vcmp.gt.s32.totalorder %v4245_v34, %v4210_v23 }
  0xa3   : > { %v969_v51 = vadd.s32 %v937_v10, %v805_v12  ;;  %v480_v58 = vadd.s32 %v448_v39, %v284_v38  ;;  %v776_v52 = vsel %vm744_vm3, 1, %v4030_v36  ;;  %vm908_vm4 = vcmp.gt.s32.totalorder %v4245_v34, %v4221_v27 }
  0xa4   : > { %v1702_v42 = vshrl.u32 %v1462_v37, 16  ;;  %vm1072_vm5 = vcmp.gt.s32.totalorder %v4245_v34, %v4223_v28  ;;  %1645 = vadd.xlane.f32.xlu0 %v1643_v43  ;;  %v1667_v44 = vcvt.s32.f32 %v1665_v63  ;;  %v1429_v49 = vsel %vm1397_vm15, 1, %v4030_v36 }
  0xa5   : > { %v1133_v48 = vadd.s32 %v1101_v50, %v969_v51  ;;  %v644_v47 = vadd.s32 %v612_v40, %v480_v58  ;;  %v940_v2 = vsel %vm908_vm4, 1, %v4030_v36  ;;  %v1104_v45 = vsel %vm1072_vm5, 1, %v4030_v36 }
  0xa6   : > { %v1704_v11 = vcvt.s32.f32 %v1702_v42  ;;  %vm251_vm6 = vcmp.gt.s32.totalorder %v4248_v35, %v4198_v19  ;;  %vm1236_vm7 = vcmp.gt.s32.totalorder %v4245_v34, %v4225_v29  ;;  %vm1400_vm8 = vcmp.gt.s32.totalorder %v4245_v34, %v4230_v31 }
  0xa7   : > { %v1297_v62 = vadd.s32 %v1265_v46, %v1133_v48  ;;  %v808_v54 = vadd.s32 %v776_v52, %v644_v47  ;;  %v283_v43 = vsel %vm251_vm6, 1, %v4030_v36  ;;  %vm415_vm9 = vcmp.gt.s32.totalorder %v4248_v35, %v4201_v20 }
  0xa8   : > { %1707 = vadd.xlane.f32.xlu1 %v1704_v11  ;;  %vm579_vm10 = vcmp.gt.s32.totalorder %v4248_v35, %v4204_v21  ;;  %vm743_vm11 = vcmp.gt.s32.totalorder %v4248_v35, %v4210_v23  ;;  %1669 = vadd.xlane.f32.xlu0 %v1667_v44  ;;  %v447_v8 = vsel %vm415_vm9, 1, %v4030_v36  ;;  %v1268_v60 = vsel %vm1236_vm7, 1, %v4030_v36 }
  0xa9   : > { %v4689_v56 = vadd.s32 %v1429_v49, %v1297_v62  ;;  %v972_v57 = vadd.s32 %v940_v2, %v808_v54  ;;  %v611_v53 = vsel %vm579_vm10, 1, %v4030_v36  ;;  %v479_v59 = vadd.s32 %v447_v8, %v283_v43 }
  0xaa   : > { %vm907_vm12 = vcmp.gt.s32.totalorder %v4248_v35, %v4221_v27  ;;  %vm1071_vm13 = vcmp.gt.s32.totalorder %v4248_v35, %v4223_v28  ;;  %v1432_v0 = vsel %vm1400_vm8, 1, %v4030_v36  ;;  %v775_v3 = vsel %vm743_vm11, 1, %v4030_v36 }
  0xab   : > { %v1690_v61 = vshrl.u32 %v4689_v56, 16  ;;  %v1136_v63 = vadd.s32 %v1104_v45, %v972_v57  ;;  %v643_v9 = vadd.s32 %v611_v53, %v479_v59  ;;  %vm1235_vm14 = vcmp.gt.s32.totalorder %v4248_v35, %v4225_v29 }
  0xac   : > { %vm1399_vm15 = vcmp.gt.s32.totalorder %v4248_v35, %v4230_v31  ;;  %v1701_v10 = vand.u32 65535, %v1462_v37  ;;  %v939_v12 = vsel %vm907_vm12, 1, %v4030_v36  ;;  %v1103_v38 = vsel %vm1071_vm13, 1, %v4030_v36 }
  0xad   : > { %v1692_v50 = vcvt.s32.f32 %v1690_v61  ;;  %v1300_v46 = vadd.s32 %v1268_v60, %v1136_v63  ;;  %v807_v39 = vadd.s32 %v775_v3, %v643_v9  ;;  %v1267_v51 = vsel %vm1235_vm14, 1, %v4030_v36 }
  0xae   : > { %v1431_v58 = vsel %vm1399_vm15, 1, %v4030_v36  ;;  %vm254_vm0 = vcmp.gt.s32.totalorder %v4260_v41, %v4198_v19  ;;  %vm418_vm1 = vcmp.gt.s32.totalorder %v4260_v41, %v4201_v20  ;;  %vm582_vm2 = vcmp.gt.s32.totalorder %v4260_v41, %v4204_v21 }
  0xaf   : > { %1695 = vadd.xlane.f32.xlu0 %v1692_v50  ;;  %v1464_v40 = vadd.s32 %v1432_v0, %v1300_v46  ;;  %v286_v42 = vsel %vm254_vm0, 1, %v4030_v36  ;;  %v971_v37 = vadd.s32 %v939_v12, %v807_v39  ;;  %v1703_v52 = vcvt.s32.f32 %v1701_v10 }
  0xb0   : > { %v450_v44 = vsel %vm418_vm1, 1, %v4030_v36  ;;  %v614_v48 = vsel %vm582_vm2, 1, %v4030_v36  ;;  %vm746_vm3 = vcmp.gt.s32.totalorder %v4260_v41, %v4210_v23  ;;  %vm910_vm4 = vcmp.gt.s32.totalorder %v4260_v41, %v4221_v27 }
  0xb1   : > { %v1726_v49 = vshrl.u32 %v1464_v40, 16  ;;  %v1725_v47 = vand.u32 65535, %v1464_v40  ;;  %v482_v11 = vadd.s32 %v450_v44, %v286_v42  ;;  %v1135_v2 = vadd.s32 %v1103_v38, %v971_v37 }
  0xb2   : > { %v778_v45 = vsel %vm746_vm3, 1, %v4030_v36  ;;  %vm1074_vm5 = vcmp.gt.s32.totalorder %v4260_v41, %v4223_v28  ;;  %v1689_v54 = vand.u32 65535, %v4689_v56  ;;  %v942_v53 = vsel %vm910_vm4, 1, %v4030_v36 }
  0xb3   : > { %v1728_v62 = vcvt.s32.f32 %v1726_v49  ;;  %v1727_v43 = vcvt.s32.f32 %v1725_v47  ;;  %v646_v57 = vadd.s32 %v614_v48, %v482_v11  ;;  %v1299_v8 = vadd.s32 %v1267_v51, %v1135_v2 }
  0xb4   : > { %v1106_v60 = vsel %vm1074_vm5, 1, %v4030_v36  ;;  %vm1238_vm6 = vcmp.gt.s32.totalorder %v4260_v41, %v4225_v29  ;;  %vm1402_vm7 = vcmp.gt.s32.totalorder %v4260_v41, %v4230_v31  ;;  %vm253_vm8 = vcmp.gt.s32.totalorder %v4344_v55, %v4198_v19 }
  0xb5   : > { %1731 = vadd.xlane.f32.xlu1 %v1728_v62  ;;  %v810_v59 = vadd.s32 %v778_v45, %v646_v57  ;;  %v1270_v61 = vsel %vm1238_vm6, 1, %v4030_v36  ;;  %v1463_v56 = vadd.s32 %v1431_v58, %v1299_v8  ;;  %v285_v63 = vsel %vm253_vm8, 1, %v4030_v36 }
  0xb6   : > { %vm417_vm9 = vcmp.gt.s32.totalorder %v4344_v55, %v4201_v20  ;;  %vm581_vm10 = vcmp.gt.s32.totalorder %v4344_v55, %v4204_v21  ;;  %vm745_vm11 = vcmp.gt.s32.totalorder %v4344_v55, %v4210_v23  ;;  %vm909_vm12 = vcmp.gt.s32.totalorder %v4344_v55, %v4221_v27 }
  0xb7   : > { %v974_v0 = vadd.s32 %v942_v53, %v810_v59  ;;  %v449_v3 = vsel %vm417_vm9, 1, %v4030_v36  ;;  %v613_v9 = vsel %vm581_vm10, 1, %v4030_v36  ;;  %v1714_v10 = vshrl.u32 %v1463_v56, 16 }
  0xb8   : > { %v1713_v50 = vand.u32 65535, %v1463_v56  ;;  %v481_v46 = vadd.s32 %v449_v3, %v285_v63  ;;  %v777_v12 = vsel %vm745_vm11, 1, %v4030_v36  ;;  %vm1073_vm13 = vcmp.gt.s32.totalorder %v4344_v55, %v4223_v28 }
  0xb9   : > { %1705 = vadd.xlane.f32.xlu1 %v1703_v52  ;;  %v1138_v38 = vadd.s32 %v1106_v60, %v974_v0  ;;  %vm1237_vm14 = vcmp.gt.s32.totalorder %v4344_v55, %v4225_v29  ;;  %v1716_v39 = vcvt.s32.f32 %v1714_v10  ;;  %v1691_v51 = vcvt.s32.f32 %v1689_v54 }
  0xba   : > { %v1434_v58 = vsel %vm1402_vm7, 1, %v4030_v36  ;;  %v645_v40 = vadd.s32 %v613_v9, %v481_v46  ;;  %v1715_v42 = vcvt.s32.f32 %v1713_v50  ;;  %v941_v52 = vsel %vm909_vm12, 1, %v4030_v36 }
  0xbb   : > { %v1302_v37 = vadd.s32 %v1270_v61, %v1138_v38  ;;  %vm1401_vm15 = vcmp.gt.s32.totalorder %v4344_v55, %v4230_v31  ;;  %1719 = vadd.xlane.f32.xlu0 %v1716_v39  ;;  %v1105_v48 = vsel %vm1073_vm13, 1, %v4030_v36  ;;  %v1269_v49 = vsel %vm1237_vm14, 1, %v4030_v36 }
  0xbc   : > { %v809_v44 = vadd.s32 %v777_v12, %v645_v40  ;;  %v4764_v47 = vadd.s32 152, %v4160_v1  ;;  %v1433_v2 = vsel %vm1401_vm15, 1, %v4030_v36  ;;  %v4770_v45 = vadd.s32 144, %v4160_v1 }
  0xbd   : > { %1729 = vadd.xlane.f32.xlu1 %v1727_v43  ;;  %v4766_v11 = vadd.s32 %v1434_v58, %v1302_v37  ;;  %v4773_v62 = vadd.s32 168, %v4160_v1  ;;  %v4793_v63 = vadd.s32 160, %v4160_v1  ;;  %v4797_v10 = vadd.s32 184, %v4160_v1 }
  0xbe   : > { %8286 = vst [vmem:[#allocation27_spill] sm:$0xff] %v4764_v47  ;;  %8287 = vst [vmem:[#allocation28_spill] sm:$0xff] %v4770_v45  ;;  %v973_v54 = vadd.s32 %v941_v52, %v809_v44  ;;  %vm256_vm0 = vcmp.gt.s32.totalorder %v4764_v47, %v4198_v19  ;;  %vm420_vm1 = vcmp.gt.s32.totalorder %v4764_v47, %v4201_v20 }
  0xbf   : > { %8288 = vst [vmem:[#allocation29_spill] sm:$0xff] %v4773_v62  ;;  %vm584_vm2 = vcmp.gt.s32.totalorder %v4764_v47, %v4204_v21  ;;  %v1750_v43 = vshrl.u32 %v4766_v11, 16  ;;  %v288_v57 = vsel %vm256_vm0, 1, %v4030_v36  ;;  %v452_v8 = vsel %vm420_vm1, 1, %v4030_v36  ;;  %1693 = vadd.xlane.f32.xlu0 %v1691_v51  ;;  %8289 = vst [vmem:[#allocation30_spill] sm:$0xff] %v4793_v63 }
  0xc0   : > { %v616_v53 = vsel %vm584_vm2, 1, %v4030_v36  ;;  %v1137_v60 = vadd.s32 %v1105_v48, %v973_v54  ;;  %v484_v59 = vadd.s32 %v452_v8, %v288_v57  ;;  %vm748_vm3 = vcmp.gt.s32.totalorder %v4764_v47, %v4210_v23  ;;  %8290 = vst [vmem:[#allocation31_spill] sm:$0xff] %v4797_v10 }
  0xc1   : > { %vm912_vm4 = vcmp.gt.s32.totalorder %v4764_v47, %v4221_v27  ;;  %v1752_v61 = vcvt.s32.f32 %v1750_v43  ;;  %v780_v56 = vsel %vm748_vm3, 1, %v4030_v36  ;;  %vm1076_vm5 = vcmp.gt.s32.totalorder %v4764_v47, %v4223_v28 }
  0xc2   : > { %v1301_v0 = vadd.s32 %v1269_v49, %v1137_v60  ;;  %v648_v3 = vadd.s32 %v616_v53, %v484_v59  ;;  %v944_v9 = vsel %vm912_vm4, 1, %v4030_v36  ;;  %v1108_v50 = vsel %vm1076_vm5, 1, %v4030_v36 }
  0xc3   : > { %1755 = vadd.xlane.f32.xlu1 %v1752_v61  ;;  %vm1240_vm6 = vcmp.gt.s32.totalorder %v4764_v47, %v4225_v29  ;;  %vm255_vm7 = vcmp.gt.s32.totalorder %v4770_v45, %v4198_v19  ;;  %vm419_vm8 = vcmp.gt.s32.totalorder %v4770_v45, %v4201_v20  ;;  %1717 = vadd.xlane.f32.xlu0 %v1715_v42  ;;  %v1749_v60 = vand.u32 65535, %v4766_v11 }
  0xc4   : > { %v1465_v46 = vadd.s32 %v1433_v2, %v1301_v0  ;;  %v812_v12 = vadd.s32 %v780_v56, %v648_v3  ;;  %vm1404_vm9 = vcmp.gt.s32.totalorder %v4764_v47, %v4230_v31  ;;  %v287_v38 = vsel %vm255_vm7, 1, %v4030_v36 }
  0xc5   : > { %v451_v39 = vsel %vm419_vm8, 1, %v4030_v36  ;;  %vm583_vm10 = vcmp.gt.s32.totalorder %v4770_v45, %v4204_v21  ;;  %vm747_vm11 = vcmp.gt.s32.totalorder %v4770_v45, %v4210_v23  ;;  %vm911_vm12 = vcmp.gt.s32.totalorder %v4770_v45, %v4221_v27 }
  0xc6   : > { %v1738_v51 = vshrl.u32 %v1465_v46, 16  ;;  %v976_v58 = vadd.s32 %v944_v9, %v812_v12  ;;  %v483_v40 = vadd.s32 %v451_v39, %v287_v38  ;;  %v615_v42 = vsel %vm583_vm10, 1, %v4030_v36 }
  0xc7   : > { %v1272_v37 = vsel %vm1240_vm6, 1, %v4030_v36  ;;  %v779_v52 = vsel %vm747_vm11, 1, %v4030_v36  ;;  %vm1075_vm13 = vcmp.gt.s32.totalorder %v4770_v45, %v4223_v28  ;;  %vm1239_vm14 = vcmp.gt.s32.totalorder %v4770_v45, %v4225_v29 }
  0xc8   : > { %v1740_v44 = vcvt.s32.f32 %v1738_v51  ;;  %v1140_v48 = vadd.s32 %v1108_v50, %v976_v58  ;;  %v1436_v49 = vsel %vm1404_vm9, 1, %v4030_v36  ;;  %v647_v2 = vadd.s32 %v615_v42, %v483_v40 }
  0xc9   : > { %v943_v54 = vsel %vm911_vm12, 1, %v4030_v36  ;;  %v1107_v43 = vsel %vm1075_vm13, 1, %v4030_v36  ;;  %v1271_v57 = vsel %vm1239_vm14, 1, %v4030_v36  ;;  %vm1403_vm15 = vcmp.gt.s32.totalorder %v4770_v45, %v4230_v31 }
  0xca   : > { %1743 = vadd.xlane.f32.xlu0 %v1740_v44  ;;  %v1304_v8 = vadd.s32 %v1272_v37, %v1140_v48  ;;  %v811_v53 = vadd.s32 %v779_v52, %v647_v2  ;;  %vm258_vm0 = vcmp.gt.s32.totalorder %v4773_v62, %v4198_v19  ;;  %v1435_v59 = vsel %vm1403_vm15, 1, %v4030_v36 }
  0xcb   : > { %v1737_v61 = vand.u32 65535, %v1465_v46  ;;  %v290_v56 = vsel %vm258_vm0, 1, %v4030_v36  ;;  %vm422_vm1 = vcmp.gt.s32.totalorder %v4773_v62, %v4201_v20  ;;  %vm586_vm2 = vcmp.gt.s32.totalorder %v4773_v62, %v4204_v21 }
  0xcc   : > { %v1468_v0 = vadd.s32 %v1436_v49, %v1304_v8  ;;  %v975_v3 = vadd.s32 %v943_v54, %v811_v53  ;;  %v454_v9 = vsel %vm422_vm1, 1, %v4030_v36  ;;  %v618_v11 = vsel %vm586_vm2, 1, %v4030_v36 }
  0xcd   : > { %v486_v50 = vadd.s32 %v454_v9, %v290_v56  ;;  %vm750_vm3 = vcmp.gt.s32.totalorder %v4773_v62, %v4210_v23  ;;  %vm914_vm4 = vcmp.gt.s32.totalorder %v4773_v62, %v4221_v27  ;;  %v1751_v38 = vcvt.s32.f32 %v1749_v60 }
  0xce   : > { %v1774_v46 = vshrl.u32 %v1468_v0, 16  ;;  %v1139_v12 = vadd.s32 %v1107_v43, %v975_v3  ;;  %v782_v39 = vsel %vm750_vm3, 1, %v4030_v36  ;;  %v1739_v51 = vcvt.s32.f32 %v1737_v61 }
  0xcf   : > { %v650_v58 = vadd.s32 %v618_v11, %v486_v50  ;;  %vm1078_vm5 = vcmp.gt.s32.totalorder %v4773_v62, %v4223_v28  ;;  %vm1242_vm6 = vcmp.gt.s32.totalorder %v4773_v62, %v4225_v29  ;;  %v1773_v37 = vand.u32 65535, %v1468_v0 }
  0xd0   : > { %v1776_v40 = vcvt.s32.f32 %v1774_v46  ;;  %v1303_v42 = vadd.s32 %v1271_v57, %v1139_v12  ;;  %v946_v52 = vsel %vm914_vm4, 1, %v4030_v36  ;;  %v1110_v48 = vsel %vm1078_vm5, 1, %v4030_v36 }
  0xd1   : > { %v814_v44 = vadd.s32 %v782_v39, %v650_v58  ;;  %v1274_v49 = vsel %vm1242_vm6, 1, %v4030_v36  ;;  %vm257_vm7 = vcmp.gt.s32.totalorder %v4793_v63, %v4198_v19  ;;  %vm1406_vm8 = vcmp.gt.s32.totalorder %v4773_v62, %v4230_v31 }
  0xd2   : > { %1779 = vadd.xlane.f32.xlu1 %v1776_v40  ;;  %v1467_v2 = vadd.s32 %v1435_v59, %v1303_v42  ;;  %v289_v54 = vsel %vm257_vm7, 1, %v4030_v36  ;;  %vm421_vm9 = vcmp.gt.s32.totalorder %v4793_v63, %v4201_v20  ;;  %vm585_vm10 = vcmp.gt.s32.totalorder %v4793_v63, %v4204_v21 }
  0xd3   : > { %v978_v43 = vadd.s32 %v946_v52, %v814_v44  ;;  %v453_v57 = vsel %vm421_vm9, 1, %v4030_v36  ;;  %vm749_vm11 = vcmp.gt.s32.totalorder %v4793_v63, %v4210_v23  ;;  %v617_v59 = vsel %vm585_vm10, 1, %v4030_v36 }
  0xd4   : > { %v1762_v8 = vshrl.u32 %v1467_v2, 16  ;;  %v1761_v53 = vand.u32 65535, %v1467_v2  ;;  %v485_v60 = vadd.s32 %v453_v57, %v289_v54  ;;  %v781_v56 = vsel %vm749_vm11, 1, %v4030_v36 }
  0xd5   : > { %v1142_v61 = vadd.s32 %v1110_v48, %v978_v43  ;;  %vm913_vm12 = vcmp.gt.s32.totalorder %v4793_v63, %v4221_v27  ;;  %vm1077_vm13 = vcmp.gt.s32.totalorder %v4793_v63, %v4223_v28  ;;  %v1775_v3 = vcvt.s32.f32 %v1773_v37 }
  0xd6   : > { %v1764_v0 = vcvt.s32.f32 %v1762_v8  ;;  %1753 = vadd.xlane.f32.xlu1 %v1751_v38  ;;  %v1438_v9 = vsel %vm1406_vm8, 1, %v4030_v36  ;;  %v649_v50 = vadd.s32 %v617_v59, %v485_v60  ;;  %v1763_v11 = vcvt.s32.f32 %v1761_v53 }
  0xd7   : > { %v1306_v46 = vadd.s32 %v1274_v49, %v1142_v61  ;;  %v945_v12 = vsel %vm913_vm12, 1, %v4030_v36  ;;  %v1109_v39 = vsel %vm1077_vm13, 1, %v4030_v36  ;;  %vm1241_vm14 = vcmp.gt.s32.totalorder %v4793_v63, %v4225_v29 }
  0xd8   : > { %1767 = vadd.xlane.f32.xlu0 %v1764_v0  ;;  %v813_v58 = vadd.s32 %v781_v56, %v649_v50  ;;  %vm1405_vm15 = vcmp.gt.s32.totalorder %v4793_v63, %v4230_v31  ;;  %vm260_vm0 = vcmp.gt.s32.totalorder %v4797_v10, %v4198_v19  ;;  %vm424_vm1 = vcmp.gt.s32.totalorder %v4797_v10, %v4201_v20 }
  0xd9   : > { %v1470_v38 = vadd.s32 %v1438_v9, %v1306_v46  ;;  %v292_v40 = vsel %vm260_vm0, 1, %v4030_v36  ;;  %vm588_vm2 = vcmp.gt.s32.totalorder %v4797_v10, %v4204_v21  ;;  %v456_v37 = vsel %vm424_vm1, 1, %v4030_v36 }
  0xda   : > { %1777 = vadd.xlane.f32.xlu1 %v1775_v3  ;;  %v977_v42 = vadd.s32 %v945_v12, %v813_v58  ;;  %v620_v52 = vsel %vm588_vm2, 1, %v4030_v36  ;;  %vm752_vm3 = vcmp.gt.s32.totalorder %v4797_v10, %v4210_v23  ;;  %v1273_v48 = vsel %vm1241_vm14, 1, %v4030_v36 }
  0xdb   : > { %v1798_v44 = vshrl.u32 %v1470_v38, 16  ;;  %v488_v49 = vadd.s32 %v456_v37, %v292_v40  ;;  %vm916_vm4 = vcmp.gt.s32.totalorder %v4797_v10, %v4221_v27  ;;  %v784_v54 = vsel %vm752_vm3, 1, %v4030_v36 }
  0xdc   : > { %1741 = vadd.xlane.f32.xlu0 %v1739_v51  ;;  %v1141_v2 = vadd.s32 %v1109_v39, %v977_v42  ;;  %vm1080_vm5 = vcmp.gt.s32.totalorder %v4797_v10, %v4223_v28  ;;  %vm1244_vm6 = vcmp.gt.s32.totalorder %v4797_v10, %v4225_v29  ;;  %v1437_v57 = vsel %vm1405_vm15, 1, %v4030_v36 }
  0xdd   : > { %v1800_v43 = vcvt.s32.f32 %v1798_v44  ;;  %v652_v8 = vadd.s32 %v620_v52, %v488_v49  ;;  %v948_v53 = vsel %vm916_vm4, 1, %v4030_v36  ;;  %v1112_v51 = vsel %vm1080_vm5, 1, %v4030_v36 }
  0xde   : > { %v1305_v60 = vadd.s32 %v1273_v48, %v1141_v2  ;;  %v1276_v59 = vsel %vm1244_vm6, 1, %v4030_v36  ;;  %v4913_v61 = vadd.s32 176, %v4160_v1  ;;  %vm1408_vm7 = vcmp.gt.s32.totalorder %v4797_v10, %v4230_v31 }
  0xdf   : > { %1803 = vadd.xlane.f32.xlu1 %v1800_v43  ;;  %v816_v56 = vadd.s32 %v784_v54, %v652_v8  ;;  %v1797_v0 = vand.u32 65535, %v1470_v38  ;;  %v4918_v3 = vadd.s32 200, %v4160_v1  ;;  %v1440_v40 = vsel %vm1408_vm7, 1, %v4030_v36 }
  0xe0   : > { %8291 = vst [vmem:[#allocation32_spill] sm:$0xff] %v4913_v61  ;;  %1765 = vadd.xlane.f32.xlu0 %v1763_v11  ;;  %v4920_v9 = vadd.s32 %v1437_v57, %v1305_v60  ;;  %vm259_vm8 = vcmp.gt.s32.totalorder %v4913_v61, %v4198_v19  ;;  %vm423_vm9 = vcmp.gt.s32.totalorder %v4913_v61, %v4201_v20  ;;  %v4946_v44 = vadd.s32 192, %v4160_v1 }
  0xe1   : > { %8292 = vst [vmem:[#allocation33_spill] sm:$0xff] %v4918_v3  ;;  %vm587_vm10 = vcmp.gt.s32.totalorder %v4913_v61, %v4204_v21  ;;  %v980_v50 = vadd.s32 %v948_v53, %v816_v56  ;;  %v291_v46 = vsel %vm259_vm8, 1, %v4030_v36  ;;  %v455_v12 = vsel %vm423_vm9, 1, %v4030_v36 }
  0xe2   : > { %v619_v39 = vsel %vm587_vm10, 1, %v4030_v36  ;;  %v1786_v11 = vshrl.u32 %v4920_v9, 16  ;;  %v487_v58 = vadd.s32 %v455_v12, %v291_v46  ;;  %vm751_vm11 = vcmp.gt.s32.totalorder %v4913_v61, %v4210_v23  ;;  %8293 = vst [vmem:[#allocation34_spill] sm:$0xff] %v4946_v44 }
  0xe3   : > { %vm915_vm12 = vcmp.gt.s32.totalorder %v4913_v61, %v4221_v27  ;;  %v1144_v38 = vadd.s32 %v1112_v51, %v980_v50  ;;  %v783_v42 = vsel %vm751_vm11, 1, %v4030_v36  ;;  %vm1079_vm13 = vcmp.gt.s32.totalorder %v4913_v61, %v4223_v28 }
  0xe4   : > { %v1788_v37 = vcvt.s32.f32 %v1786_v11  ;;  %v651_v52 = vadd.s32 %v619_v39, %v487_v58  ;;  %vm1243_vm14 = vcmp.gt.s32.totalorder %v4913_v61, %v4225_v29  ;;  %v947_v49 = vsel %vm915_vm12, 1, %v4030_v36 }
  0xe5   : > { %v1308_v48 = vadd.s32 %v1276_v59, %v1144_v38  ;;  %v1111_v2 = vsel %vm1079_vm13, 1, %v4030_v36  ;;  %vm1407_vm15 = vcmp.gt.s32.totalorder %v4913_v61, %v4230_v31  ;;  %v1275_v43 = vsel %vm1243_vm14, 1, %v4030_v36 }
  0xe6   : > { %1791 = vadd.xlane.f32.xlu0 %v1788_v37  ;;  %v815_v54 = vadd.s32 %v783_v42, %v651_v52  ;;  %v1799_v57 = vcvt.s32.f32 %v1797_v0  ;;  %vm262_vm0 = vcmp.gt.s32.totalorder %v4918_v3, %v4198_v19  ;;  %vm426_vm1 = vcmp.gt.s32.totalorder %v4918_v3, %v4201_v20 }
  0xe7   : > { %v1472_v8 = vadd.s32 %v1440_v40, %v1308_v48  ;;  %v294_v53 = vsel %vm262_vm0, 1, %v4030_v36  ;;  %vm590_vm2 = vcmp.gt.s32.totalorder %v4918_v3, %v4204_v21  ;;  %v1439_v51 = vsel %vm1407_vm15, 1, %v4030_v36 }
  0xe8   : > { %v979_v60 = vadd.s32 %v947_v49, %v815_v54  ;;  %v458_v59 = vsel %vm426_vm1, 1, %v4030_v36  ;;  %v622_v56 = vsel %vm590_vm2, 1, %v4030_v36  ;;  %vm754_vm3 = vcmp.gt.s32.totalorder %v4918_v3, %v4210_v23 }
  0xe9   : > { %v1822_v0 = vshrl.u32 %v1472_v8, 16  ;;  %v1821_v50 = vand.u32 65535, %v1472_v8  ;;  %v490_v46 = vadd.s32 %v458_v59, %v294_v53  ;;  %v786_v39 = vsel %vm754_vm3, 1, %v4030_v36 }
  0xea   : > { %v1143_v12 = vadd.s32 %v1111_v2, %v979_v60  ;;  %vm918_vm4 = vcmp.gt.s32.totalorder %v4918_v3, %v4221_v27  ;;  %vm1082_vm5 = vcmp.gt.s32.totalorder %v4918_v3, %v4223_v28  ;;  %v1785_v58 = vand.u32 65535, %v4920_v9 }
  0xeb   : > { %v1824_v11 = vcvt.s32.f32 %v1822_v0  ;;  %v1823_v38 = vcvt.s32.f32 %v1821_v50  ;;  %v654_v40 = vadd.s32 %v622_v56, %v490_v46  ;;  %v950_v37 = vsel %vm918_vm4, 1, %v4030_v36 }
  0xec   : > { %v1307_v42 = vadd.s32 %v1275_v43, %v1143_v12  ;;  %v1114_v52 = vsel %vm1082_vm5, 1, %v4030_v36  ;;  %vm1246_vm6 = vcmp.gt.s32.totalorder %v4918_v3, %v4225_v29  ;;  %vm1410_vm7 = vcmp.gt.s32.totalorder %v4918_v3, %v4230_v31 }
  0xed   : > { %1827 = vadd.xlane.f32.xlu1 %v1824_v11  ;;  %v818_v48 = vadd.s32 %v786_v39, %v654_v40  ;;  %v1278_v49 = vsel %vm1246_vm6, 1, %v4030_v36  ;;  %vm261_vm8 = vcmp.gt.s32.totalorder %v4946_v44, %v4198_v19  ;;  %vm425_vm9 = vcmp.gt.s32.totalorder %v4946_v44, %v4201_v20 }
  0xee   : > { %v1471_v9 = vadd.s32 %v1439_v51, %v1307_v42  ;;  %v293_v2 = vsel %vm261_vm8, 1, %v4030_v36  ;;  %vm589_vm10 = vcmp.gt.s32.totalorder %v4946_v44, %v4204_v21  ;;  %v457_v43 = vsel %vm425_vm9, 1, %v4030_v36 }
  0xef   : > { %v982_v54 = vadd.s32 %v950_v37, %v818_v48  ;;  %v621_v8 = vsel %vm589_vm10, 1, %v4030_v36  ;;  %vm753_vm11 = vcmp.gt.s32.totalorder %v4946_v44, %v4210_v23  ;;  %v489_v59 = vadd.s32 %v457_v43, %v293_v2 }
  0xf0   : > { %v1810_v53 = vshrl.u32 %v1471_v9, 16  ;;  %v1809_v60 = vand.u32 65535, %v1471_v9  ;;  %v785_v51 = vsel %vm753_vm11, 1, %v4030_v36  ;;  %vm917_vm12 = vcmp.gt.s32.totalorder %v4946_v44, %v4221_v27 }
  0xf1   : > { %1801 = vadd.xlane.f32.xlu1 %v1799_v57  ;;  %v1146_v56 = vadd.s32 %v1114_v52, %v982_v54  ;;  %vm1081_vm13 = vcmp.gt.s32.totalorder %v4946_v44, %v4223_v28  ;;  %vm1245_vm14 = vcmp.gt.s32.totalorder %v4946_v44, %v4225_v29  ;;  %v1787_v50 = vcvt.s32.f32 %v1785_v58 }
  0xf2   : > { %v1812_v0 = vcvt.s32.f32 %v1810_v53  ;;  %v1442_v46 = vsel %vm1410_vm7, 1, %v4030_v36  ;;  %v653_v12 = vadd.s32 %v621_v8, %v489_v59  ;;  %v1811_v39 = vcvt.s32.f32 %v1809_v60 }
  0xf3   : > { %v1310_v57 = vadd.s32 %v1278_v49, %v1146_v56  ;;  %v949_v11 = vsel %vm917_vm12, 1, %v4030_v36  ;;  %vm1409_vm15 = vcmp.gt.s32.totalorder %v4946_v44, %v4230_v31  ;;  %v1113_v42 = vsel %vm1081_vm13, 1, %v4030_v36 }
  0xf4   : > { %1815 = vadd.xlane.f32.xlu0 %v1812_v0  ;;  %v817_v40 = vadd.s32 %v785_v51, %v653_v12  ;;  %v1277_v37 = vsel %vm1245_vm14, 1, %v4030_v36  ;;  %v5006_v58 = vadd.s32 216, %v4160_v1  ;;  %v1441_v48 = vsel %vm1409_vm15, 1, %v4030_v36 }
  0xf5   : > { %1825 = vadd.xlane.f32.xlu1 %v1823_v38  ;;  %v5008_v52 = vadd.s32 %v1442_v46, %v1310_v57  ;;  %v5012_v49 = vadd.s32 208, %v4160_v1  ;;  %v5015_v9 = vadd.s32 232, %v4160_v1  ;;  %v5035_v56 = vadd.s32 224, %v4160_v1 }
  0xf6   : > { %8294 = vst [vmem:[#allocation35_spill] sm:$0xff] %v5006_v58  ;;  %v981_v2 = vadd.s32 %v949_v11, %v817_v40  ;;  %vm264_vm0 = vcmp.gt.s32.totalorder %v5006_v58, %v4198_v19  ;;  %vm428_vm1 = vcmp.gt.s32.totalorder %v5006_v58, %v4201_v20  ;;  %vm592_vm2 = vcmp.gt.s32.totalorder %v5006_v58, %v4204_v21 }
  0xf7   : > { %8295 = vst [vmem:[#allocation36_spill] sm:$0xff] %v5012_v49  ;;  %8296 = vst [vmem:[#allocation37_spill] sm:$0xff] %v5015_v9  ;;  %v1846_v38 = vshrl.u32 %v5008_v52, 16  ;;  %v296_v54 = vsel %vm264_vm0, 1, %v4030_v36  ;;  %v460_v43 = vsel %vm428_vm1, 1, %v4030_v36  ;;  %v624_v8 = vsel %vm592_vm2, 1, %v4030_v36 }
  0xf8   : > { %1789 = vadd.xlane.f32.xlu0 %v1787_v50  ;;  %v1145_v53 = vadd.s32 %v1113_v42, %v981_v2  ;;  %v492_v60 = vadd.s32 %v460_v43, %v296_v54  ;;  %vm756_vm3 = vcmp.gt.s32.totalorder %v5006_v58, %v4210_v23  ;;  %vm920_vm4 = vcmp.gt.s32.totalorder %v5006_v58, %v4221_v27 }
  0xf9   : > { %v1848_v59 = vcvt.s32.f32 %v1846_v38  ;;  %v788_v51 = vsel %vm756_vm3, 1, %v4030_v36  ;;  %vm1084_vm5 = vcmp.gt.s32.totalorder %v5006_v58, %v4223_v28  ;;  %8297 = vst [vmem:[#allocation38_spill] sm:$0xff] %v5035_v56  ;;  %v952_v50 = vsel %vm920_vm4, 1, %v4030_v36 }
  0xfa   : > { %v1309_v0 = vadd.s32 %v1277_v37, %v1145_v53  ;;  %v656_v46 = vadd.s32 %v624_v8, %v492_v60  ;;  %v5039_v12 = vadd.s32 248, %v4160_v1  ;;  %v1116_v57 = vsel %vm1084_vm5, 1, %v4030_v36 }
  0xfb   : > { %1851 = vadd.xlane.f32.xlu1 %v1848_v59  ;;  %vm1248_vm6 = vcmp.gt.s32.totalorder %v5006_v58, %v4225_v29  ;;  %vm263_vm7 = vcmp.gt.s32.totalorder %v5012_v49, %v4198_v19  ;;  %vm427_vm8 = vcmp.gt.s32.totalorder %v5012_v49, %v4201_v20  ;;  %vm1412_vm9 = vcmp.gt.s32.totalorder %v5006_v58, %v4230_v31 }
  0xfc   : > { %8298 = vst [vmem:[#allocation39_spill] sm:$0xff] %v5039_v12  ;;  %1813 = vadd.xlane.f32.xlu0 %v1811_v39  ;;  %v1473_v11 = vadd.s32 %v1441_v48, %v1309_v0  ;;  %v820_v40 = vadd.s32 %v788_v51, %v656_v46  ;;  %v295_v42 = vsel %vm263_vm7, 1, %v4030_v36  ;;  %v459_v37 = vsel %vm427_vm8, 1, %v4030_v36 }
  0xfd   : > { %vm591_vm10 = vcmp.gt.s32.totalorder %v5012_v49, %v4204_v21  ;;  %vm755_vm11 = vcmp.gt.s32.totalorder %v5012_v49, %v4210_v23  ;;  %vm919_vm12 = vcmp.gt.s32.totalorder %v5012_v49, %v4221_v27  ;;  %v491_v48 = vadd.s32 %v459_v37, %v295_v42 }
  0xfe   : > { %v1834_v2 = vshrl.u32 %v1473_v11, 16  ;;  %v984_v39 = vadd.s32 %v952_v50, %v820_v40  ;;  %v623_v38 = vsel %vm591_vm10, 1, %v4030_v36  ;;  %v1280_v54 = vsel %vm1248_vm6, 1, %v4030_v36  ;;  %v5077_v50 = vpop.xlane.xlu1 %1575 }
  0xff   : > { %v787_v43 = vsel %vm755_vm11, 1, %v4030_v36  ;;  %vm1083_vm13 = vcmp.gt.s32.totalorder %v5012_v49, %v4223_v28  ;;  %vm1247_vm14 = vcmp.gt.s32.totalorder %v5012_v49, %v4225_v29  ;;  %v1444_v60 = vsel %vm1412_vm9, 1, %v4030_v36 }
 0x100   : > { %v1836_v8 = vcvt.s32.f32 %v1834_v2  ;;  %v1148_v53 = vadd.s32 %v1116_v57, %v984_v39  ;;  %v655_v59 = vadd.s32 %v623_v38, %v491_v48  ;;  %v951_v51 = vsel %vm919_vm12, 1, %v4030_v36 }
 0x101   : > { %v1115_v0 = vsel %vm1083_vm13, 1, %v4030_v36  ;;  %v1279_v46 = vsel %vm1247_vm14, 1, %v4030_v36  ;;  %vm1411_vm15 = vcmp.gt.s32.totalorder %v5012_v49, %v4230_v31  ;;  %v1845_v42 = vand.u32 65535, %v5008_v52 }
 0x102   : > { %1839 = vadd.xlane.f32.xlu0 %v1836_v8  ;;  %v1312_v40 = vadd.s32 %v1280_v54, %v1148_v53  ;;  %v819_v57 = vadd.s32 %v787_v43, %v655_v59  ;;  %vm266_vm0 = vcmp.gt.s32.totalorder %v5015_v9, %v4198_v19  ;;  %v1443_v37 = vsel %vm1411_vm15, 1, %v4030_v36 }
 0x103   : > { %v1833_v2 = vand.u32 65535, %v1473_v11  ;;  %v298_v39 = vsel %vm266_vm0, 1, %v4030_v36  ;;  %vm430_vm1 = vcmp.gt.s32.totalorder %v5015_v9, %v4201_v20  ;;  %vm594_vm2 = vcmp.gt.s32.totalorder %v5015_v9, %v4204_v21 }
 0x104   : > { %v1476_v48 = vadd.s32 %v1444_v60, %v1312_v40  ;;  %v983_v38 = vadd.s32 %v951_v51, %v819_v57  ;;  %v462_v49 = vsel %vm430_vm1, 1, %v4030_v36  ;;  %v626_v52 = vsel %vm594_vm2, 1, %v4030_v36  ;;  %v5101_v51 = vpop.xlane.xlu1 %1587 }
 0x105   : > { %v494_v54 = vadd.s32 %v462_v49, %v298_v39  ;;  %vm758_vm3 = vcmp.gt.s32.totalorder %v5015_v9, %v4210_v23  ;;  %vm922_vm4 = vcmp.gt.s32.totalorder %v5015_v9, %v4221_v27  ;;  %v1847_v8 = vcvt.s32.f32 %v1845_v42  ;;  %v5099_v49 = vpop.xlane.xlu0 %1551 }
 0x106   : > { %v1870_v11 = vshrl.u32 %v1476_v48, 16  ;;  %v1147_v43 = vadd.s32 %v1115_v0, %v983_v38  ;;  %v790_v53 = vsel %vm758_vm3, 1, %v4030_v36  ;;  %v1835_v60 = vcvt.s32.f32 %v1833_v2 }
 0x107   : > { %v658_v59 = vadd.s32 %v626_v52, %v494_v54  ;;  %vm1086_vm5 = vcmp.gt.s32.totalorder %v5015_v9, %v4223_v28  ;;  %vm1250_vm6 = vcmp.gt.s32.totalorder %v5015_v9, %v4225_v29  ;;  %v1869_v39 = vand.u32 65535, %v1476_v48 }
 0x108   : > { %v1872_v40 = vcvt.s32.f32 %v1870_v11  ;;  %v1311_v57 = vadd.s32 %v1279_v46, %v1147_v43  ;;  %v954_v0 = vsel %vm922_vm4, 1, %v4030_v36  ;;  %v1118_v38 = vsel %vm1086_vm5, 1, %v4030_v36 }
 0x109   : > { %v822_v42 = vadd.s32 %v790_v53, %v658_v59  ;;  %v1282_v2 = vsel %vm1250_vm6, 1, %v4030_v36  ;;  %vm265_vm7 = vcmp.gt.s32.totalorder %v5035_v56, %v4198_v19  ;;  %vm1414_vm8 = vcmp.gt.s32.totalorder %v5015_v9, %v4230_v31 }
 0x10a   : > { %1875 = vadd.xlane.f32.xlu1 %v1872_v40  ;;  %v1475_v54 = vadd.s32 %v1443_v37, %v1311_v57  ;;  %v297_v52 = vsel %vm265_vm7, 1, %v4030_v36  ;;  %vm429_vm9 = vcmp.gt.s32.totalorder %v5035_v56, %v4201_v20  ;;  %vm593_vm10 = vcmp.gt.s32.totalorder %v5035_v56, %v4204_v21  ;;  %v5124_v57 = vpop.xlane.xlu0 %1563 }
 0x10b   : > { %v986_v46 = vadd.s32 %v954_v0, %v822_v42  ;;  %v461_v48 = vsel %vm429_vm9, 1, %v4030_v36  ;;  %vm757_vm11 = vcmp.gt.s32.totalorder %v5035_v56, %v4210_v23  ;;  %v625_v53 = vsel %vm593_vm10, 1, %v4030_v36  ;;  %v5126_v0 = vpop.xlane.xlu1 %1611 }
 0x10c   : > { %v1858_v11 = vshrl.u32 %v1475_v54, 16  ;;  %v1857_v43 = vand.u32 65535, %v1475_v54  ;;  %v493_v37 = vadd.s32 %v461_v48, %v297_v52  ;;  %v789_v40 = vsel %vm757_vm11, 1, %v4030_v36 }
 0x10d   : > { %v1150_v59 = vadd.s32 %v1118_v38, %v986_v46  ;;  %vm921_vm12 = vcmp.gt.s32.totalorder %v5035_v56, %v4221_v27  ;;  %vm1085_vm13 = vcmp.gt.s32.totalorder %v5035_v56, %v4223_v28  ;;  %v1871_v58 = vcvt.s32.f32 %v1869_v39 }
 0x10e   : > { %v1860_v42 = vcvt.s32.f32 %v1858_v11  ;;  %1849 = vadd.xlane.f32.xlu1 %v1847_v8  ;;  %v1446_v38 = vsel %vm1414_vm8, 1, %v4030_v36  ;;  %v657_v54 = vadd.s32 %v625_v53, %v493_v37  ;;  %v1859_v52 = vcvt.s32.f32 %v1857_v43 }
 0x10f   : > { %v1314_v46 = vadd.s32 %v1282_v2, %v1150_v59  ;;  %v953_v48 = vsel %vm921_vm12, 1, %v4030_v36  ;;  %v1117_v44 = vsel %vm1085_vm13, 1, %v4030_v36  ;;  %vm1249_vm14 = vcmp.gt.s32.totalorder %v5035_v56, %v4225_v29 }
 0x110   : > { %1863 = vadd.xlane.f32.xlu0 %v1860_v42  ;;  %v821_v3 = vadd.s32 %v789_v40, %v657_v54  ;;  %vm1413_vm15 = vcmp.gt.s32.totalorder %v5035_v56, %v4230_v31  ;;  %vm268_vm0 = vcmp.gt.s32.totalorder %v5039_v12, %v4198_v19  ;;  %vm432_vm1 = vcmp.gt.s32.totalorder %v5039_v12, %v4201_v20  ;;  %v5155_v40 = vpop.xlane.xlu0 %1599  ;;  %v5157_v42 = vpop.xlane.xlu1 %1635 }
 0x111   : > { %v5140_v8 = vadd.s32 %v1446_v38, %v1314_v46  ;;  %v300_v39 = vsel %vm268_vm0, 1, %v4030_v36  ;;  %vm596_vm2 = vcmp.gt.s32.totalorder %v5039_v12, %v4204_v21  ;;  %v464_v11 = vsel %vm432_vm1, 1, %v4030_v36 }
 0x112   : > { %1873 = vadd.xlane.f32.xlu1 %v1871_v58  ;;  %v985_v2 = vadd.s32 %v953_v48, %v821_v3  ;;  %v628_v43 = vsel %vm596_vm2, 1, %v4030_v36  ;;  %vm760_vm3 = vcmp.gt.s32.totalorder %v5039_v12, %v4210_v23  ;;  %v1281_v53 = vsel %vm1249_vm14, 1, %v4030_v36 }
 0x113   : > { %v1894_v37 = vshrl.u32 %v5140_v8, 16  ;;  %v496_v59 = vadd.s32 %v464_v11, %v300_v39  ;;  %vm924_vm4 = vcmp.gt.s32.totalorder %v5039_v12, %v4221_v27  ;;  %v792_v58 = vsel %vm760_vm3, 1, %v4030_v36 }
 0x114   : > { %1837 = vadd.xlane.f32.xlu0 %v1835_v60  ;;  %v1149_v3 = vadd.s32 %v1117_v44, %v985_v2  ;;  %vm1088_vm5 = vcmp.gt.s32.totalorder %v5039_v12, %v4223_v28  ;;  %vm1252_vm6 = vcmp.gt.s32.totalorder %v5039_v12, %v4225_v29  ;;  %v1445_v54 = vsel %vm1413_vm15, 1, %v4030_v36 }
 0x115   : > { %v1896_v38 = vcvt.s32.f32 %v1894_v37  ;;  %v660_v46 = vadd.s32 %v628_v43, %v496_v59  ;;  %v956_v39 = vsel %vm924_vm4, 1, %v4030_v36  ;;  %v5170_v44 = vadd.s32 240, %v4160_v1 }
 0x116   : > { %v1313_v48 = vadd.s32 %v1281_v53, %v1149_v3  ;;  %v1120_v2 = vsel %vm1088_vm5, 1, %v4030_v36  ;;  %v1284_v11 = vsel %vm1252_vm6, 1, %v4030_v36  ;;  %vm1416_vm7 = vcmp.gt.s32.totalorder %v5039_v12, %v4230_v31 }
 0x117   : > { %8299 = vst [vmem:[#allocation40_spill] sm:$0xff] %v5170_v44  ;;  %1899 = vadd.xlane.f32.xlu1 %v1896_v38  ;;  %v824_v60 = vadd.s32 %v792_v58, %v660_v46  ;;  %vm267_vm8 = vcmp.gt.s32.totalorder %v5170_v44, %v4198_v19  ;;  %vm431_vm9 = vcmp.gt.s32.totalorder %v5170_v44, %v4201_v20  ;;  %v5185_v58 = vpop.xlane.xlu0 %1623  ;;  %v1448_v46 = vsel %vm1416_vm7, 1, %v4030_v36 }
 0x118   : > { %1861 = vadd.xlane.f32.xlu0 %v1859_v52  ;;  %v1477_v37 = vadd.s32 %v1445_v54, %v1313_v48  ;;  %vm595_vm10 = vcmp.gt.s32.totalorder %v5170_v44, %v4204_v21  ;;  %v299_v53 = vsel %vm267_vm8, 1, %v4030_v36  ;;  %v463_v59 = vsel %vm431_vm9, 1, %v4030_v36  ;;  %v1562_v52 = vpop.xlane.xlu1 %1561 }
 0x119   : > { %v988_v43 = vadd.s32 %v956_v39, %v824_v60  ;;  %v627_v3 = vsel %vm595_vm10, 1, %v4030_v36  ;;  %v495_v54 = vadd.s32 %v463_v59, %v299_v53  ;;  %vm759_vm11 = vcmp.gt.s32.totalorder %v5170_v44, %v4210_v23 }
 0x11a   : > { %v1882_v38 = vshrl.u32 %v1477_v37, 16  ;;  %vm923_vm12 = vcmp.gt.s32.totalorder %v5170_v44, %v4221_v27  ;;  %v791_v20 = vsel %vm759_vm11, 1, %v4030_v36  ;;  %vm1087_vm13 = vcmp.gt.s32.totalorder %v5170_v44, %v4223_v28 }
 0x11b   : > { %v1152_v19 = vadd.s32 %v1120_v2, %v988_v43  ;;  %v659_v48 = vadd.s32 %v627_v3, %v495_v54  ;;  %v955_v60 = vsel %vm923_vm12, 1, %v4030_v36  ;;  %vm1251_vm14 = vcmp.gt.s32.totalorder %v5170_v44, %v4225_v29  ;;  %v1550_v43 = vpop.xlane.xlu0 %1549 }
 0x11c   : > { %v1884_v21 = vcvt.s32.f32 %v1882_v38  ;;  %v1119_v2 = vsel %vm1087_vm13, 1, %v4030_v36  ;;  %v1586_v53 = vpop.xlane.xlu1 %1585  ;;  %vm1415_vm15 = vcmp.gt.s32.totalorder %v5170_v44, %v4230_v31  ;;  %v1283_v28 = vsel %vm1251_vm14, 1, %v4030_v36 }
 0x11d   : > { %v1316_v39 = vadd.s32 %v1284_v11, %v1152_v19  ;;  %v823_v23 = vadd.s32 %v791_v20, %v659_v48  ;;  %v1893_v11 = vand.u32 65535, %v5140_v8  ;;  %v1566_v54 = vcvt.f32.s32 %v5124_v57 }
 0x11e   : > { %1887 = vadd.xlane.f32.xlu0 %v1884_v21  ;;  %v1447_v29 = vsel %vm1415_vm15, 1, %v4030_v36  ;;  %v1565_v21 = vcvt.f32.s32 %v1562_v52  ;;  %v1554_v31 = vcvt.f32.s32 %v5099_v49  ;;  %v1881_v56 = vand.u32 65535, %v1477_v37 }
 0x11f   : > { %v1480_v27 = vadd.s32 %v1448_v46, %v1316_v39  ;;  %v987_v59 = vadd.s32 %v955_v60, %v823_v23  ;;  %v1895_v46 = vcvt.s32.f32 %v1893_v11  ;;  %v1574_v39 = vpop.xlane.xlu0 %1573  ;;  %v1567_v44 = vshll.u32 %v1566_v54, 16 }
 0x120   : > { %v1610_v60 = vpop.xlane.xlu1 %1609  ;;  %v1589_v52 = vcvt.f32.s32 %v1586_v53  ;;  %v1614_v37 = vcvt.f32.s32 %v5126_v0  ;;  %v1638_v0 = vcvt.f32.s32 %v5157_v42 }
 0x121   : > { %v1918_v3 = vshrl.u32 %v1480_v27, 16  ;;  %v1151_v38 = vadd.s32 %v1119_v2, %v987_v59  ;;  %v1917_v48 = vand.u32 65535, %v1480_v27  ;;  %v1568_v8 = vadd.s32 %v1567_v44, %v1565_v21 }
 0x122   : > { %v1553_v2 = vcvt.f32.s32 %v1550_v43  ;;  %v1590_v59 = vcvt.f32.s32 %v5101_v51  ;;  %v1883_v27 = vcvt.s32.f32 %v1881_v56  ;;  %v1578_v44 = vcvt.f32.s32 %v5077_v50 }
 0x123   : > { %v1920_v19 = vcvt.s32.f32 %v1918_v3  ;;  %v1315_v20 = vadd.s32 %v1283_v28, %v1151_v38  ;;  %v1919_v57 = vcvt.s32.f32 %v1917_v48  ;;  %v1555_v3 = vshll.u32 %v1554_v31, 16  ;;  %v1598_v28 = vpop.xlane.xlu0 %1597 }
 0x124   : > { %v1634_v11 = vpop.xlane.xlu1 %1633  ;;  %v1591_v49 = vshll.u32 %v1590_v59, 16  ;;  %v1602_v43 = vcvt.f32.s32 %v5155_v40  ;;  %v1577_v51 = vcvt.f32.s32 %v1574_v39  ;;  %v1601_v21 = vcvt.f32.s32 %v1598_v28 }
 0x125   : > { %1923 = vadd.xlane.f32.xlu1 %v1920_v19  ;;  %v1479_v23 = vadd.s32 %v1447_v29, %v1315_v20  ;;  %v3777_v19 = vadd.s32 4294966528, %v1568_v8  ;;  %v1556_v29 = vadd.s32 %v1555_v3, %v1553_v2  ;;  %v1615_v56 = vshll.u32 %v1614_v37, 16 }
 0x126   : > { %v1592_v54 = vadd.s32 %v1591_v49, %v1589_v52  ;;  %v1603_v31 = vshll.u32 %v1602_v43, 16  ;;  %v1626_v2 = vcvt.f32.s32 %v5185_v58  ;;  %v1637_v59 = vcvt.f32.s32 %v1634_v11 }
 0x127   : > { %v1906_v12 = vshrl.u32 %v1479_v23, 16  ;;  %v1905_v38 = vand.u32 65535, %v1479_v23  ;;  %vm1963_vm0 = vcmp.gt.s32.totalorder %v3777_v19, 0  ;;  %v3776_v20 = vadd.s32 4294966528, %v1556_v29 }
 0x128   : > { %v5213_v48 = vpop.xlane.xlu1 %1659  ;;  %v1579_v23 = vshll.u32 %v1578_v44, 16  ;;  %v5216_v8 = vsel %vm1963_vm0, %v3777_v19, 0  ;;  %v3779_v50 = vadd.s32 4294966528, %v1592_v54  ;;  %v1627_v29 = vshll.u32 %v1626_v2, 16 }
 0x129   : > { %1897 = vadd.xlane.f32.xlu1 %v1895_v46  ;;  %v1908_v36 = vcvt.s32.f32 %v1906_v12  ;;  %v1613_v12 = vcvt.f32.s32 %v1610_v60  ;;  %v1907_v53 = vcvt.s32.f32 %v1905_v38  ;;  %v1622_v46 = vpop.xlane.xlu0 %1621  ;;  %8300 = vst [vmem:[#allocation41_spill] sm:$0xff] %v5216_v8  ;;  %vm1961_vm1 = vcmp.gt.s32.totalorder %v3776_v20, 0 }
 0x12a   : > { %v1580_v39 = vadd.s32 %v1579_v23, %v1577_v51  ;;  %v1604_v60 = vadd.s32 %v1603_v31, %v1601_v21  ;;  %v8020_v3 = vcvt.s32.f32 %v5216_v8  ;;  %vm2058_vm2 = vcmp.lt.s32.totalorder %v5216_v8, 256 }
 0x12b   : > { %1911 = vadd.xlane.f32.xlu0 %v1908_v36  ;;  %v1616_v40 = vadd.s32 %v1615_v56, %v1613_v12  ;;  %v1639_v36 = vshll.u32 %v1638_v0, 16  ;;  %v5221_v52 = vsel %vm1961_vm1, %v3776_v20, 0  ;;  %vm1967_vm3 = vcmp.gt.s32.totalorder %v3779_v50, 0 }
 0x12c   : > { %8301 = vst [vmem:[#allocation42_spill] sm:$0xff] %v5221_v52  ;;  %v5225_v28 = vpop.xlane.xlu1 %1683  ;;  %v3780_v19 = vadd.s32 4294966528, %v1604_v60  ;;  %v1625_v58 = vcvt.f32.s32 %v1622_v46  ;;  %v2090_v37 = vsel %vm2058_vm2, %v8020_v3, 0.0  ;;  %v8021_v44 = vcvt.s32.f32 %v5221_v52 }
 0x12d   : > { %1921 = vadd.xlane.f32.xlu1 %v1919_v57  ;;  %v3781_v57 = vadd.s32 4294966528, %v1616_v40  ;;  %v5223_v42 = vpop.xlane.xlu0 %1647  ;;  %v1640_v49 = vadd.s32 %v1639_v36, %v1637_v59  ;;  %v5234_v43 = vsel %vm1967_vm3, %v3779_v50, 0  ;;  %vm2057_vm7 = vcmp.lt.s32.totalorder %v5221_v52, 256 }
 0x12e   : > { %8303 = vst [vmem:[#allocation44_spill] sm:$0xff] %v5234_v43  ;;  %vm1969_vm6 = vcmp.gt.s32.totalorder %v3780_v19, 0  ;;  %v1628_v20 = vadd.s32 %v1627_v29, %v1625_v58  ;;  %v8017_v21 = vcvt.s32.f32 %v5234_v43  ;;  %v2089_v31 = vsel %vm2057_vm7, %v8021_v44, 0.0 }
 0x12f   : > { %1885 = vadd.xlane.f32.xlu0 %v1883_v27  ;;  %vm1971_vm4 = vcmp.gt.s32.totalorder %v3781_v57, 0  ;;  %v3778_v27 = vadd.s32 4294966528, %v1580_v39  ;;  %v5239_v51 = vsel %vm1969_vm6, %v3780_v19, 0  ;;  %v3783_v12 = vadd.s32 4294966528, %v1640_v49 }
 0x130   : > { %v5227_v38 = vsel %vm1971_vm4, %v3781_v57, 0  ;;  %8304 = vst [vmem:[#allocation45_spill] sm:$0xff] %v5239_v51  ;;  %vm2061_vm9 = vcmp.lt.s32.totalorder %v5239_v51, 256  ;;  %v1658_v23 = vpop.xlane.xlu1 %1657  ;;  %vm2060_vm11 = vcmp.lt.s32.totalorder %v5234_v43, 256  ;;  %v3782_v2 = vadd.s32 4294966528, %v1628_v20 }
 0x131   : > { %8302 = vst [vmem:[#allocation43_spill] sm:$0xff] %v5227_v38  ;;  %v8015_v11 = vcvt.s32.f32 %v5227_v38  ;;  %vm2062_vm5 = vcmp.lt.s32.totalorder %v5227_v38, 256  ;;  %vm1965_vm8 = vcmp.gt.s32.totalorder %v3778_v27, 0  ;;  %vm1975_vm10 = vcmp.gt.s32.totalorder %v3783_v12, 0  ;;  %v1672_v46 = vpop.xlane.xlu0 %1671 }
 0x132   : > { %v5249_v50 = vsel %vm1975_vm10, %v3783_v12, 0  ;;  %v5251_v40 = vsel %vm1965_vm8, %v3778_v27, 0  ;;  %v2092_v57 = vsel %vm2060_vm11, %v8017_v21, 0.0  ;;  %vm1973_vm13 = vcmp.gt.s32.totalorder %v3782_v2, 0 }
 0x133   : > { %1909 = vadd.xlane.f32.xlu0 %v1907_v53  ;;  %v2094_v54 = vsel %vm2062_vm5, %v8015_v11, 0.0  ;;  %v8016_v53 = vcvt.s32.f32 %v5239_v51  ;;  %8305 = vst [vmem:[#allocation46_spill] sm:$0xff] %v5249_v50  ;;  %8306 = vst [vmem:[#allocation47_spill] sm:$0xff] %v5251_v40  ;;  %v8014_v60 = vcvt.s32.f32 %v5249_v50  ;;  %vm2064_vm12 = vcmp.lt.s32.totalorder %v5249_v50, 256 }
 0x134   : > { %v2122_v56 = vmax.f32 %v2090_v37, %v2094_v54  ;;  %v8019_v19 = vcvt.s32.f32 %v5251_v40  ;;  %vm2059_vm14 = vcmp.lt.s32.totalorder %v5251_v40, 256  ;;  %v5261_v27 = vsel %vm1973_vm13, %v3782_v2, 0  ;;  %v1682_v49 = vpop.xlane.xlu1 %1681 }
 0x135   : > { %v2093_v0 = vsel %vm2061_vm9, %v8016_v53, 0.0  ;;  %v2096_v36 = vsel %vm2064_vm12, %v8014_v60, 0.0  ;;  %8307 = vst [vmem:[#allocation48_spill] sm:$0xff] %v5261_v27  ;;  %v1646_v29 = vpop.xlane.xlu0 %1645  ;;  %v8018_v54 = vcvt.s32.f32 %v5261_v27  ;;  %vm2063_vm15 = vcmp.lt.s32.totalorder %v5261_v27, 256 }
 0x136   : > { %v2121_v39 = vmax.f32 %v2089_v31, %v2093_v0  ;;  %v2124_v58 = vmax.f32 %v2092_v57, %v2096_v36  ;;  %v2091_v12 = vsel %vm2059_vm14, %v8019_v19, 0.0  ;;  %v1662_v21 = vcvt.f32.s32 %v5213_v48 }
 0x137   : > { %v2095_v20 = vsel %vm2063_vm15, %v8018_v54, 0.0  ;;  %v1661_v54 = vcvt.f32.s32 %v1658_v23  ;;  %v1649_v3 = vcvt.f32.s32 %v1646_v29  ;;  %v1686_v44 = vcvt.f32.s32 %v5225_v28 }
 0x138   : > { %v2126_v59 = vmax.f32 %v2122_v56, %v2121_v39  ;;  %v2123_v56 = vmax.f32 %v2091_v12, %v2095_v20  ;;  %v1708_v39 = vpop.xlane.xlu1 %1707  ;;  %v1663_v12 = vshll.u32 %v1662_v21, 16  ;;  %v1685_v38 = vcvt.f32.s32 %v1682_v49 }
 0x139   : > { %v1670_v0 = vpop.xlane.xlu0 %1669  ;;  %v1687_v48 = vshll.u32 %v1686_v44, 16  ;;  %v1674_v21 = vcvt.f32.s32 %v1672_v46  ;;  %v1710_v23 = vcvt.f32.s32 %v1708_v39 }
 0x13a   : > { %v2125_v37 = vmax.f32 %v2124_v58, %v2126_v59  ;;  %v1664_v19 = vadd.s32 %v1663_v12, %v1661_v54  ;;  %v1673_v8 = vcvt.f32.s32 %v1670_v0 }
 0x13b   : > { %v1675_v54 = vshll.u32 %v1674_v21, 16  ;;  %v1711_v28 = vshll.u32 %v1710_v23, 16 }
 0x13c   : > { %v5269_v31 = vmax.f32 %v2123_v56, %v2125_v37  ;;  %v1650_v37 = vcvt.f32.s32 %v5223_v42  ;;  %v3785_v27 = vadd.s32 4294966528, %v1664_v19  ;;  %v1688_v42 = vadd.s32 %v1687_v48, %v1685_v38 }
 0x13d   : > { %v1696_v2 = vpop.xlane.xlu0 %1695 }
 0x13e   : > { %v1651_v50 = vshll.u32 %v1650_v37, 16  ;;  %vm1979_vm0 = vcmp.gt.s32.totalorder %v3785_v27, 0  ;;  %v1698_v46 = vcvt.f32.s32 %v1696_v2 }
 0x13f   : > { %v5290_v29 = vsel %vm1979_vm0, %v3785_v27, 0 }
 0x140   : > { %v1652_v51 = vadd.s32 %v1651_v50, %v1649_v3  ;;  %v3787_v3 = vadd.s32 4294966528, %v1688_v42  ;;  %v1676_v50 = vadd.s32 %v1675_v54, %v1673_v8  ;;  %v8033_v44 = vcvt.s32.f32 %v5290_v29 }
 0x141   : > { %vm2066_vm2 = vcmp.lt.s32.totalorder %v5290_v29, 256 }
 0x142   : > { %v1732_v57 = vpop.xlane.xlu1 %1731  ;;  %v3784_v52 = vadd.s32 4294966528, %v1652_v51  ;;  %vm1983_vm3 = vcmp.gt.s32.totalorder %v3787_v3, 0  ;;  %v3786_v51 = vadd.s32 4294966528, %v1676_v50  ;;  %v2098_v8 = vsel %vm2066_vm2, %v8033_v44, 0.0 }
 0x143   : > { %v1734_v0 = vcvt.f32.s32 %v1732_v57  ;;  %v5307_v2 = vsel %vm1983_vm3, %v3787_v3, 0  ;;  %v2127_v57 = vmax.f32 %v2098_v8, %v5269_v31 }
 0x144   : > { %vm1977_vm1 = vcmp.gt.s32.totalorder %v3784_v52, 0  ;;  %vm1981_vm5 = vcmp.gt.s32.totalorder %v3786_v51, 0  ;;  %v8032_v23 = vcvt.s32.f32 %v5307_v2  ;;  %vm2068_vm7 = vcmp.lt.s32.totalorder %v5307_v2, 256 }
 0x145   : > { %v5298_v38 = vsel %vm1977_vm1, %v3784_v52, 0  ;;  %v1735_v21 = vshll.u32 %v1734_v0, 16 }
 0x146   : > { %v1706_v59 = vpop.xlane.xlu1 %1705  ;;  %v8034_v48 = vcvt.s32.f32 %v5298_v38  ;;  %vm2065_vm4 = vcmp.lt.s32.totalorder %v5298_v38, 256  ;;  %v2100_v0 = vsel %vm2068_vm7, %v8032_v23, 0.0 }
 0x147   : > { %v1709_v9 = vcvt.f32.s32 %v1706_v59 }
 0x148   : > { %v5271_v36 = vpop.xlane.xlu0 %1719 }
 0x149   : > { %v1712_v49 = vadd.s32 %v1711_v28, %v1709_v9  ;;  %v1699_v9 = vshll.u32 %v1698_v46, 16  ;;  %v1722_v42 = vcvt.f32.s32 %v5271_v36  ;;  %v2097_v28 = vsel %vm2065_vm4, %v8034_v48, 0.0 }
 0x14a   : > { %v5273_v60 = vpop.xlane.xlu1 %1729 }
 0x14b   : > { %v3789_v39 = vadd.s32 4294966528, %v1712_v49  ;;  %v1733_v52 = vcvt.f32.s32 %v5273_v60  ;;  %v5318_v60 = vsel %vm1981_vm5, %v3786_v51, 0  ;;  %v1723_v51 = vshll.u32 %v1722_v42, 16 }
 0x14c   : > { %v1694_v58 = vpop.xlane.xlu0 %1693  ;;  %v8035_v8 = vcvt.s32.f32 %v5318_v60  ;;  %vm2067_vm8 = vcmp.lt.s32.totalorder %v5318_v60, 256 }
 0x14d   : > { %v1697_v27 = vcvt.f32.s32 %v1694_v58  ;;  %vm1987_vm6 = vcmp.gt.s32.totalorder %v3789_v39, 0  ;;  %v1736_v3 = vadd.s32 %v1735_v21, %v1733_v52 }
 0x14e   : > { %v5324_v31 = vsel %vm1987_vm6, %v3789_v39, 0 }
 0x14f   : > { %v1700_v58 = vadd.s32 %v1699_v9, %v1697_v27  ;;  %v8036_v52 = vcvt.s32.f32 %v5324_v31  ;;  %vm2070_vm9 = vcmp.lt.s32.totalorder %v5324_v31, 256  ;;  %v3791_v39 = vadd.s32 4294966528, %v1736_v3 }
 0x150   : > { %v5275_v11 = vpop.xlane.xlu0 %1717  ;;  %v5277_v53 = vpop.xlane.xlu1 %1755 }
 0x151   : > { %v1758_v54 = vcvt.f32.s32 %v5277_v53  ;;  %v3788_v46 = vadd.s32 4294966528, %v1700_v58  ;;  %v1721_v27 = vcvt.f32.s32 %v5275_v11  ;;  %v2130_v53 = vmax.f32 %v2097_v28, %v2127_v57 }
 0x152   : > { %v2102_v44 = vsel %vm2070_vm9, %v8036_v52, 0.0  ;;  %vm1991_vm11 = vcmp.gt.s32.totalorder %v3791_v39, 0 }
 0x153   : > { %v1759_v9 = vshll.u32 %v1758_v54, 16  ;;  %vm1985_vm10 = vcmp.gt.s32.totalorder %v3788_v46, 0  ;;  %v1724_v58 = vadd.s32 %v1723_v51, %v1721_v27  ;;  %v2129_v57 = vmax.f32 %v2100_v0, %v2130_v53 }
 0x154   : > { %v2099_v54 = vsel %vm2067_vm8, %v8035_v8, 0.0  ;;  %v5343_v3 = vsel %vm1985_vm10, %v3788_v46, 0  ;;  %v5346_v51 = vsel %vm1991_vm11, %v3791_v39, 0 }
 0x155   : > { %v3790_v27 = vadd.s32 4294966528, %v1724_v58  ;;  %v2132_v0 = vmax.f32 %v2099_v54, %v2129_v57  ;;  %8308 = vst [vmem:[#allocation49_spill] sm:$0xff] %v5346_v51  ;;  %v8037_v48 = vcvt.s32.f32 %v5343_v3  ;;  %vm2069_vm12 = vcmp.lt.s32.totalorder %v5343_v3, 256 }
 0x156   : > { %vm2072_vm15 = vcmp.lt.s32.totalorder %v5346_v51, 256 }
 0x157   : > { %v5281_v20 = vpop.xlane.xlu0 %1743  ;;  %vm1989_vm13 = vcmp.gt.s32.totalorder %v3790_v27, 0  ;;  %v2101_v39 = vsel %vm2069_vm12, %v8037_v48, 0.0 }
 0x158   : > { %v1746_v11 = vcvt.f32.s32 %v5281_v20 }
 0x15a   : > { %v1747_v20 = vshll.u32 %v1746_v11, 16  ;;  %v8038_v11 = vcvt.s32.f32 %v5346_v51 }
 0x15f   : > { %v5283_v56 = vpop.xlane.xlu1 %1779 }
 0x160   : > { %v1782_v23 = vcvt.f32.s32 %v5283_v56 }
 0x162   : > { %v1783_v56 = vshll.u32 %v1782_v23, 16 }
 0x163   : > { %v5288_v40 = vpop.xlane.xlu1 %1753 }
 0x164   : > { %v1757_v36 = vcvt.f32.s32 %v5288_v40 }
 0x165   : > { %v5286_v43 = vpop.xlane.xlu0 %1767 }
 0x166   : > { %v1760_v40 = vadd.s32 %v1759_v9, %v1757_v36  ;;  %v1770_v46 = vcvt.f32.s32 %v5286_v43 }
 0x167   : > { %v5294_v19 = vpop.xlane.xlu1 %1777 }
 0x168   : > { %v3793_v36 = vadd.s32 4294966528, %v1760_v40  ;;  %v1781_v53 = vcvt.f32.s32 %v5294_v19  ;;  %v5357_v40 = vsel %vm1989_vm13, %v3790_v27, 0  ;;  %v1771_v54 = vshll.u32 %v1770_v46, 16 }
 0x169   : > { %v5292_v12 = vpop.xlane.xlu0 %1741  ;;  %vm2071_vm1 = vcmp.lt.s32.totalorder %v5357_v40, 256 }
 0x16a   : > { %v1745_v42 = vcvt.f32.s32 %v5292_v12  ;;  %v2131_v12 = vmax.f32 %v2102_v44, %v2132_v0  ;;  %vm1995_vm14 = vcmp.gt.s32.totalorder %v3793_v36, 0  ;;  %v1784_v58 = vadd.s32 %v1783_v56, %v1781_v53 }
 0x16b   : > { %v5359_v57 = vsel %vm1995_vm14, %v3793_v36, 0  ;;  %v2104_v53 = vsel %vm2072_vm15, %v8038_v11, 0.0 }
 0x16c   : > { %v5302_v37 = vpop.xlane.xlu1 %1803  ;;  %v1748_v9 = vadd.s32 %v1747_v20, %v1745_v42  ;;  %8309 = vst [vmem:[#allocation50_spill] sm:$0xff] %v5359_v57  ;;  %v2134_v43 = vmax.f32 %v2101_v39, %v2131_v12  ;;  %v3795_v20 = vadd.s32 4294966528, %v1784_v58  ;;  %vm2074_vm2 = vcmp.lt.s32.totalorder %v5359_v57, 256 }
 0x16d   : > { %v5300_v59 = vpop.xlane.xlu0 %1765  ;;  %v1806_v19 = vcvt.f32.s32 %v5302_v37 }
 0x16e   : > { %v3792_v23 = vadd.s32 4294966528, %v1748_v9  ;;  %v1769_v44 = vcvt.f32.s32 %v5300_v59  ;;  %v8040_v9 = vcvt.s32.f32 %v5357_v40  ;;  %v8041_v59 = vcvt.s32.f32 %v5359_v57 }
 0x16f   : > { %v1807_v37 = vshll.u32 %v1806_v19, 16  ;;  %v2133_v36 = vmax.f32 %v2104_v53, %v2134_v43  ;;  %vm1999_vm3 = vcmp.gt.s32.totalorder %v3795_v20, 0 }
 0x170   : > { %vm1993_vm0 = vcmp.gt.s32.totalorder %v3792_v23, 0  ;;  %v1772_v48 = vadd.s32 %v1771_v54, %v1769_v44  ;;  %v2103_v19 = vsel %vm2071_vm1, %v8040_v9, 0.0  ;;  %v2106_v44 = vsel %vm2074_vm2, %v8041_v59, 0.0 }
 0x171   : > { %v5368_v12 = vsel %vm1993_vm0, %v3792_v23, 0  ;;  %v5375_v54 = vsel %vm1999_vm3, %v3795_v20, 0  ;;  %v2136_v53 = vmax.f32 %v2103_v19, %v2133_v36 }
 0x172   : > { %v3794_v39 = vadd.s32 4294966528, %v1772_v48  ;;  %v8042_v23 = vcvt.s32.f32 %v5368_v12  ;;  %vm2073_vm4 = vcmp.lt.s32.totalorder %v5368_v12, 256  ;;  %v8044_v9 = vcvt.s32.f32 %v5375_v54 }
 0x173   : > { %v5320_v50 = vpop.xlane.xlu0 %1791  ;;  %vm2076_vm7 = vcmp.lt.s32.totalorder %v5375_v54, 256 }
 0x174   : > { %vm1997_vm5 = vcmp.gt.s32.totalorder %v3794_v39, 0 }
 0x175   : > { %v5384_v36 = vsel %vm1997_vm5, %v3794_v39, 0 }
 0x176   : > { %v8045_v59 = vcvt.s32.f32 %v5384_v36  ;;  %vm2075_vm9 = vcmp.lt.s32.totalorder %v5384_v36, 256 }
 0x17a   : > { %v5322_v49 = vpop.xlane.xlu1 %1827 }
 0x17b   : > { %v1830_v46 = vcvt.f32.s32 %v5322_v49 }
 0x17d   : > { %v1831_v49 = vshll.u32 %v1830_v46, 16 }
 0x17e   : > { %v1802_v28 = vpop.xlane.xlu1 %1801 }
 0x17f   : > { %v1805_v42 = vcvt.f32.s32 %v1802_v28  ;;  %v1794_v28 = vcvt.f32.s32 %v5320_v50 }
 0x181   : > { %v5335_v21 = vpop.xlane.xlu0 %1815  ;;  %v1808_v27 = vadd.s32 %v1807_v37, %v1805_v42  ;;  %v1795_v11 = vshll.u32 %v1794_v28, 16  ;;  %v2135_v37 = vmax.f32 %v2106_v44, %v2136_v53 }
 0x182   : > { %v1826_v52 = vpop.xlane.xlu1 %1825  ;;  %v1818_v48 = vcvt.f32.s32 %v5335_v21  ;;  %v2108_v21 = vsel %vm2076_vm7, %v8044_v9, 0.0 }
 0x183   : > { %v3797_v51 = vadd.s32 4294966528, %v1808_v27  ;;  %v1829_v50 = vcvt.f32.s32 %v1826_v52  ;;  %v2105_v52 = vsel %vm2073_vm4, %v8042_v23, 0.0 }
 0x184   : > { %v2138_v44 = vmax.f32 %v2105_v52, %v2135_v37 }
 0x185   : > { %v1790_v8 = vpop.xlane.xlu0 %1789  ;;  %vm2003_vm6 = vcmp.gt.s32.totalorder %v3797_v51, 0  ;;  %v1832_v20 = vadd.s32 %v1831_v49, %v1829_v50  ;;  %v1819_v50 = vshll.u32 %v1818_v48, 16 }
 0x186   : > { %v1793_v58 = vcvt.f32.s32 %v1790_v8  ;;  %v5386_v53 = vsel %vm2003_vm6, %v3797_v51, 0 }
 0x187   : > { %8310 = vst [vmem:[#allocation51_spill] sm:$0xff] %v5386_v53  ;;  %v8049_v23 = vcvt.s32.f32 %v5386_v53  ;;  %vm2078_vm10 = vcmp.lt.s32.totalorder %v5386_v53, 256 }
 0x188   : > { %v1852_v56 = vpop.xlane.xlu1 %1851  ;;  %v1796_v8 = vadd.s32 %v1795_v11, %v1793_v58 }
 0x189   : > { %v1814_v0 = vpop.xlane.xlu0 %1813  ;;  %v1854_v28 = vcvt.f32.s32 %v1852_v56  ;;  %v3799_v56 = vadd.s32 4294966528, %v1832_v20  ;;  %v2110_v52 = vsel %vm2078_vm10, %v8049_v23, 0.0 }
 0x18a   : > { %v3796_v19 = vadd.s32 4294966528, %v1796_v8  ;;  %v1817_v46 = vcvt.f32.s32 %v1814_v0  ;;  %v2137_v0 = vmax.f32 %v2108_v21, %v2138_v44 }
 0x18b   : > { %v1855_v49 = vshll.u32 %v1854_v28, 16  ;;  %vm2007_vm11 = vcmp.gt.s32.totalorder %v3799_v56, 0  ;;  %v2107_v28 = vsel %vm2075_vm9, %v8045_v59, 0.0 }
 0x18c   : > { %vm2001_vm8 = vcmp.gt.s32.totalorder %v3796_v19, 0  ;;  %v1820_v39 = vadd.s32 %v1819_v50, %v1817_v46  ;;  %v2140_v44 = vmax.f32 %v2107_v28, %v2137_v0  ;;  %v5400_v21 = vsel %vm2007_vm11, %v3799_v56, 0 }
 0x18d   : > { %8311 = vst [vmem:[#allocation52_spill] sm:$0xff] %v5400_v21  ;;  %v8047_v59 = vcvt.s32.f32 %v5400_v21  ;;  %vm2080_vm15 = vcmp.lt.s32.totalorder %v5400_v21, 256 }
 0x18e   : > { %v3798_v46 = vadd.s32 4294966528, %v1820_v39  ;;  %v2139_v9 = vmax.f32 %v2110_v52, %v2140_v44 }
 0x18f   : > { %v1840_v42 = vpop.xlane.xlu0 %1839  ;;  %v2112_v28 = vsel %vm2080_vm15, %v8047_v59, 0.0 }
 0x190   : > { %v1842_v51 = vcvt.f32.s32 %v1840_v42  ;;  %vm2005_vm13 = vcmp.gt.s32.totalorder %v3798_v46, 0 }
 0x192   : > { %v1843_v50 = vshll.u32 %v1842_v51, 16  ;;  %v5408_v51 = vsel %vm2005_vm13, %v3798_v46, 0 }
 0x193   : > { %v8048_v44 = vcvt.s32.f32 %v5408_v51  ;;  %vm2079_vm0 = vcmp.lt.s32.totalorder %v5408_v51, 256 }
 0x197   : > { %v1876_v43 = vpop.xlane.xlu1 %1875 }
 0x198   : > { %v1878_v48 = vcvt.f32.s32 %v1876_v43 }
 0x19a   : > { %v1879_v43 = vshll.u32 %v1878_v48, 16 }
 0x19b   : > { %v1850_v27 = vpop.xlane.xlu1 %1849 }
 0x19c   : > { %v1853_v58 = vcvt.f32.s32 %v1850_v27  ;;  %v5394_v27 = vsel %vm2001_vm8, %v3796_v19, 0 }
 0x19d   : > { %v1864_v11 = vpop.xlane.xlu0 %1863  ;;  %v8051_v42 = vcvt.s32.f32 %v5394_v27  ;;  %vm2077_vm12 = vcmp.lt.s32.totalorder %v5394_v27, 256 }
 0x19e   : > { %v1856_v57 = vadd.s32 %v1855_v49, %v1853_v58  ;;  %v1866_v53 = vcvt.f32.s32 %v1864_v11 }
 0x19f   : > { %v1874_v37 = vpop.xlane.xlu1 %1873  ;;  %v2109_v56 = vsel %vm2077_vm12, %v8051_v42, 0.0 }
 0x1a0   : > { %v3801_v58 = vadd.s32 4294966528, %v1856_v57  ;;  %v1877_v49 = vcvt.f32.s32 %v1874_v37  ;;  %v2142_v0 = vmax.f32 %v2109_v56, %v2139_v9  ;;  %v1867_v52 = vshll.u32 %v1866_v53, 16 }
 0x1a1   : > { %v1838_v8 = vpop.xlane.xlu0 %1837 }
 0x1a2   : > { %v1841_v20 = vcvt.f32.s32 %v1838_v8  ;;  %vm2011_vm14 = vcmp.gt.s32.totalorder %v3801_v58, 0  ;;  %v1880_v57 = vadd.s32 %v1879_v43, %v1877_v49  ;;  %v2141_v43 = vmax.f32 %v2112_v28, %v2142_v0 }
 0x1a3   : > { %v5410_v37 = vsel %vm2011_vm14, %v3801_v58, 0  ;;  %v2111_v58 = vsel %vm2079_vm0, %v8048_v44, 0.0 }
 0x1a4   : > { %v1844_v19 = vadd.s32 %v1843_v50, %v1841_v20  ;;  %8312 = vst [vmem:[#allocation53_spill] sm:$0xff] %v5410_v37  ;;  %v1900_v20 = vpop.xlane.xlu1 %1899  ;;  %v3803_v11 = vadd.s32 4294966528, %v1880_v57  ;;  %v8050_v50 = vcvt.s32.f32 %v5410_v37  ;;  %vm2082_vm1 = vcmp.lt.s32.totalorder %v5410_v37, 256 }
 0x1a5   : > { %v1862_v8 = vpop.xlane.xlu0 %1861  ;;  %v1902_v9 = vcvt.f32.s32 %v1900_v20  ;;  %v2144_v56 = vmax.f32 %v2111_v58, %v2141_v43 }
 0x1a6   : > { %v1865_v39 = vcvt.f32.s32 %v1862_v8  ;;  %v3800_v48 = vadd.s32 4294966528, %v1844_v19  ;;  %vm2015_vm3 = vcmp.gt.s32.totalorder %v3803_v11, 0  ;;  %v2114_v53 = vsel %vm2082_vm1, %v8050_v50, 0.0 }
 0x1a7   : > { %v2143_v0 = vmax.f32 %v2114_v53, %v2144_v56 }
 0x1a8   : > { %v1868_v49 = vadd.s32 %v1867_v52, %v1865_v39  ;;  %vm2009_vm2 = vcmp.gt.s32.totalorder %v3800_v48, 0  ;;  %v5424_v39 = vsel %vm2015_vm3, %v3803_v11, 0  ;;  %v1903_v52 = vshll.u32 %v1902_v9, 16 }
 0x1a9   : > { %v5422_v19 = vsel %vm2009_vm2, %v3800_v48, 0  ;;  %v8059_v23 = vcvt.s32.f32 %v5424_v39  ;;  %vm2084_vm6 = vcmp.lt.s32.totalorder %v5424_v39, 256 }
 0x1aa   : > { %v3802_v8 = vadd.s32 4294966528, %v1868_v49  ;;  %v8054_v28 = vcvt.s32.f32 %v5422_v19  ;;  %vm2081_vm4 = vcmp.lt.s32.totalorder %v5422_v19, 256 }
 0x1ab   : > { %v1888_v57 = vpop.xlane.xlu0 %1887 }
 0x1ac   : > { %vm2013_vm5 = vcmp.gt.s32.totalorder %v3802_v8, 0  ;;  %v2113_v11 = vsel %vm2081_vm4, %v8054_v28, 0.0  ;;  %v1890_v58 = vcvt.f32.s32 %v1888_v57 }
 0x1ad   : > { %v5432_v43 = vsel %vm2013_vm5, %v3802_v8, 0  ;;  %v2146_v9 = vmax.f32 %v2113_v11, %v2143_v0 }
 0x1ae   : > { %vm2083_vm8 = vcmp.lt.s32.totalorder %v5432_v43, 256 }
 0x1b2   : > { %v1924_v46 = vpop.xlane.xlu1 %1923 }
 0x1b3   : > { %v1926_v20 = vcvt.f32.s32 %v1924_v46  ;;  %v8062_v46 = vcvt.s32.f32 %v5432_v43 }
 0x1b5   : > { %v1927_v56 = vshll.u32 %v1926_v20, 16  ;;  %v2115_v11 = vsel %vm2083_vm8, %v8062_v46, 0.0  ;;  %v8330_v46 = vld [vmem:[#allocation40_spill] sm:$0xff] }
 0x1b6   : > { %v1898_v59 = vpop.xlane.xlu1 %1897 }
 0x1b7   : > { %v1901_v44 = vcvt.f32.s32 %v1898_v59  ;;  %v2116_v59 = vsel %vm2084_vm6, %v8059_v23, 0.0  ;;  %v8335_v23 = vcvt.s32.f32 %v4189_v16 }
 0x1b8   : > { %v1912_v48 = vpop.xlane.xlu0 %1911  ;;  %v2145_v28 = vmax.f32 %v2116_v59, %v2146_v9 }
 0x1b9   : > { %v1904_v49 = vadd.s32 %v1903_v52, %v1901_v44  ;;  %v1914_v37 = vcvt.f32.s32 %v1912_v48  ;;  %v1891_v52 = vshll.u32 %v1890_v58, 16 }
 0x1ba   : > { %v1922_v53 = vpop.xlane.xlu1 %1921  ;;  %v2148_v9 = vmax.f32 %v2115_v11, %v2145_v28 }
 0x1bb   : > { %v3805_v50 = vadd.s32 4294966528, %v1904_v49  ;;  %v1925_v42 = vcvt.f32.s32 %v1922_v53  ;;  %v1915_v48 = vshll.u32 %v1914_v37, 16 }
 0x1bc   : > { %v1886_v21 = vpop.xlane.xlu0 %1885 }
 0x1bd   : > { %vm2019_vm7 = vcmp.gt.s32.totalorder %v3805_v50, 0  ;;  %v1928_v44 = vadd.s32 %v1927_v56, %v1925_v42  ;;  %v1889_v57 = vcvt.f32.s32 %v1886_v21 }
 0x1be   : > { %v5438_v8 = vsel %vm2019_vm7, %v3805_v50, 0 }
 0x1bf   : > { %v8055_v0 = vcvt.s32.f32 %v5438_v8  ;;  %vm2086_vm9 = vcmp.lt.s32.totalorder %v5438_v8, 256  ;;  %v3807_v20 = vadd.s32 4294966528, %v1928_v44  ;;  %v1892_v49 = vadd.s32 %v1891_v52, %v1889_v57 }
 0x1c0   : > { %v1910_v53 = vpop.xlane.xlu0 %1909 }
 0x1c1   : > { %vm2023_vm10 = vcmp.gt.s32.totalorder %v3807_v20, 0  ;;  %v2118_v42 = vsel %vm2086_vm9, %v8055_v0, 0.0  ;;  %v3804_v58 = vadd.s32 4294966528, %v1892_v49  ;;  %v1913_v21 = vcvt.f32.s32 %v1910_v53 }
 0x1c2   : > { %v5446_v50 = vsel %vm2023_vm10, %v3807_v20, 0  ;;  %v2147_v44 = vmax.f32 %v2118_v42, %v2148_v9 }
 0x1c3   : > { %vm2017_vm11 = vcmp.gt.s32.totalorder %v3804_v58, 0  ;;  %v8057_v56 = vcvt.s32.f32 %v5446_v50  ;;  %v1916_v59 = vadd.s32 %v1915_v48, %v1913_v21  ;;  %vm2088_vm12 = vcmp.lt.s32.totalorder %v5446_v50, 256 }
 0x1c4   : > { %v5449_v52 = vsel %vm2017_vm11, %v3804_v58, 0 }
 0x1c5   : > { %v8056_v37 = vcvt.s32.f32 %v5449_v52  ;;  %vm2085_vm13 = vcmp.lt.s32.totalorder %v5449_v52, 256  ;;  %v3806_v57 = vadd.s32 4294966528, %v1916_v59  ;;  %v2120_v28 = vsel %vm2088_vm12, %v8057_v56, 0.0 }
 0x1c7   : > { %v2117_v20 = vsel %vm2085_vm13, %v8056_v37, 0.0  ;;  %vm2021_vm14 = vcmp.gt.s32.totalorder %v3806_v57, 0 }
 0x1c8   : > { %v2149_v49 = vmax.f32 %v2117_v20, %v2147_v44  ;;  %v5458_v11 = vsel %vm2021_vm14, %v3806_v57, 0  ;;  %v2792_v44 = vld [vmem:[%s4154_s24] sm:$0x3]  ;;  %s3873_s24 = sshll.u32 %s4065_s10, 5  ;;  %s4033_s10 = smov [#allocation6]  }
 0x1c9   : > { %v8058_v48 = vcvt.s32.f32 %v5458_v11  ;;  %vm2087_vm15 = vcmp.lt.s32.totalorder %v5458_v11, 256  ;;  %v2793_v57 = vunpack.c.l.u8.bf16 %v2792_v44 }
 0x1ca   : > { %v2150_v53 = vmax.f32 %v2120_v28, %v2149_v49 }
 0x1cb   : > { %v2119_v42 = vsel %vm2087_vm15, %v8058_v48, 0.0  ;;  %v2903_v20 = vshrl.u32 %v2793_v57, 16  ;;  %v2795_v28 = vpack.i.b16 %v2793_v57, %v2793_v57  ;;  %v8325_v48 = vld [vmem:[#allocation35_spill] sm:$0xff]  ;;  %v8332_v57 = vcvt.s32.f32 %v4183_v14 }
 0x1cc   : > { %v2151_v58 = vmax.f32 %v2119_v42, %v2150_v53 }
 0x1cd   : > { %v2904_v49 = vpack.i.b16 %v2903_v20, %v2903_v20  ;;  %v5471_v53 = vrot.slane %v2795_v28, %v4167_v5  ;;  %v8326_v20 = vld [vmem:[#allocation36_spill] sm:$0xff] }
 0x1ce   : > { %v2152_v21 = vrot.slane %v2151_v58, 4 }
 0x1cf   : > { %8314 = vst [vmem:[#allocation55_spill] sm:$0xff] %v5471_v53  ;;  %v5476_v42 = vrot.slane %v2904_v49, %v4164_v4  ;;  %v5491_v44 = vrot.slane %v2904_v49, %v4173_v7  ;;  %v8340_v53 = vcvt.s32.f32 %v4216_v25 }
 0x1d0   : > { %v2153_v9 = vmax.f32 %v2151_v58, %v2152_v21  ;;  %v5479_v58 = vrot.slane %v2904_v49, %v4167_v5  ;;  %v5482_v21 = vrot.slane %v2795_v28, %v4170_v6 }
 0x1d1   : > { %8315 = vst [vmem:[#allocation56_spill] sm:$0xff] %v5476_v42  ;;  %8320 = vst [vmem:[#allocation61_spill] sm:$0xff] %v5491_v44  ;;  %v8334_v44 = vcvt.s32.f32 %v4192_v17 }
 0x1d2   : > { %v2154_v59 = vrot.slane %v2153_v9, 2  ;;  %8316 = vst [vmem:[#allocation57_spill] sm:$0xff] %v5479_v58  ;;  %8317 = vst [vmem:[#allocation58_spill] sm:$0xff] %v5482_v21  ;;  %v8337_v21 = vcvt.s32.f32 %v4207_v22  ;;  %v8338_v58 = vcvt.s32.f32 %v4195_v18 }
 0x1d4   : > { %v2155_v0 = vmax.f32 %v2153_v9, %v2154_v59  ;;  %v5485_v9 = vrot.slane %v2795_v28, %v4173_v7  ;;  %v5488_v59 = vrot.slane %v2904_v49, %v4170_v6  ;;  %v8324_v49 = vld [vmem:[#allocation34_spill] sm:$0xff]  ;;  %v8331_v7 = vcvt.s32.f32 %v4180_v13 }
 0x1d5   : > { %v5551_v42 = vpack.c.bf16 %v8338_v58, %v8337_v21  ;;  %v8341_v13 = vcvt.s32.f32 %v4213_v24  ;;  %v8349_v58 = vcvt.s32.f32 %v4248_v35  ;;  %v8350_v21 = vcvt.s32.f32 %v4245_v34 }
 0x1d6   : > { %v2156_v37 = vrot.slane %v2155_v0, 1  ;;  %8318 = vst [vmem:[#allocation59_spill] sm:$0xff] %v5485_v9  ;;  %8319 = vst [vmem:[#allocation60_spill] sm:$0xff] %v5488_v59  ;;  %v8327_v9 = vld [vmem:[#allocation37_spill] sm:$0xff]  ;;  %v8328_v59 = vld [vmem:[#allocation38_spill] sm:$0xff]  ;;  %v5539_v6 = vpack.c.bf16 %v8332_v57, %v8331_v7  ;;  %v8343_v57 = vcvt.s32.f32 %v4228_v30  ;;  %v8344_v7 = vcvt.s32.f32 %v4219_v26 }
 0x1d7   : > { %8339 = vst [vmem:[#allocation66_spill] sm:$0xff] %v5551_v42  ;;  %v5575_v25 = vpack.c.bf16 %v8350_v21, %v8349_v58  ;;  %v8358_v58 = vcvt.s32.f32 %v4793_v63  ;;  %v8359_v21 = vcvt.s32.f32 %v4773_v62  ;;  %v8361_v34 = vcvt.s32.f32 %v4913_v61  ;;  %v8384_v61 = vld [vmem:[#allocation45_spill] sm:$0xff] }
 0x1d8   : > { %v2157_v56 = vmax.f32 %v2155_v0, %v2156_v37  ;;  %v8060_v0 = vcvt.s32.f32 %v4186_v15  ;;  %v5468_v37 = vrot.slane %v2795_v28, %v4164_v4  ;;  %v8323_v4 = vld [vmem:[#allocation33_spill] sm:$0xff]  ;;  %8333 = vst [vmem:[#allocation64_spill] sm:$0xff] %v5539_v6  ;;  %v5557_v15 = vpack.c.bf16 %v8341_v13, %v8340_v53 }
 0x1d9   : > { %v5563_v17 = vpack.c.bf16 %v8344_v7, %v8343_v57  ;;  %8351 = vst [vmem:[#allocation70_spill] sm:$0xff] %v5575_v25  ;;  %v8352_v53 = vcvt.s32.f32 %v4344_v55  ;;  %v8353_v57 = vcvt.s32.f32 %v4260_v41  ;;  %v5597_v25 = vpack.c.bf16 %v8359_v21, %v8358_v58  ;;  %v8424_v26 = vld [vmem:[#allocation53_spill] sm:$0xff] }
 0x1da   : > { %3876 = vpush %v2157_v56  ;;  %v8061_v56 = vcvt.s32.f32 %v4160_v1  ;;  %8313 = vst [vmem:[#allocation54_spill] sm:$0xff] %v5468_v37  ;;  %v8362_v55 = vcvt.s32.f32 %v4797_v10  ;;  %v8370_v58 = vcvt.s32.f32 %v8328_v59  ;;  %v8371_v21 = vcvt.s32.f32 %v8327_v9 }
 0x1db   : > { %8342 = vst [vmem:[#allocation67_spill] sm:$0xff] %v5557_v15  ;;  %8345 = vst [vmem:[#allocation68_spill] sm:$0xff] %v5563_v17  ;;  %v5585_v7 = vpack.c.bf16 %v8353_v57, %v8352_v53  ;;  %v8364_v53 = vcvt.s32.f32 %v8324_v49  ;;  %v8365_v57 = vcvt.s32.f32 %v8323_v4 }
 0x1dc   : > { %v5498_v5 = vpack.c.bf16 %v8060_v0, %v8061_v56  ;;  %v8329_v56 = vld [vmem:[#allocation39_spill] sm:$0xff]  ;;  %v5545_v0 = vpack.c.bf16 %v8335_v23, %v8334_v44  ;;  %v8346_v23 = vcvt.s32.f32 %v4242_v33  ;;  %v8347_v44 = vcvt.s32.f32 %v4239_v32  ;;  %8360 = vst [vmem:[#allocation73_spill] sm:$0xff] %v5597_v25 }
 0x1dd   : > { %8354 = vst [vmem:[#allocation71_spill] sm:$0xff] %v5585_v7  ;;  %v5603_v41 = vpack.c.bf16 %v8362_v55, %v8361_v34  ;;  %v5621_v25 = vpack.c.bf16 %v8371_v21, %v8370_v58  ;;  %v8373_v34 = vcvt.s32.f32 %v8330_v46  ;;  %v8374_v55 = vcvt.s32.f32 %v8329_v56  ;;  %v8382_v58 = vld [vmem:[#allocation44_spill] sm:$0xff]  ;;  %v8405_v7 = vld [vmem:[#allocation50_spill] sm:$0xff] }
 0x1de   : > { %8321 = vst [vmem:[#allocation62_spill] sm:$0xff] %v5498_v5  ;;  %8336 = vst [vmem:[#allocation65_spill] sm:$0xff] %v5545_v0  ;;  %v5569_v22 = vpack.c.bf16 %v8347_v44, %v8346_v23  ;;  %v8355_v23 = vcvt.s32.f32 %v4770_v45  ;;  %v8356_v44 = vcvt.s32.f32 %v4764_v47  ;;  %v5609_v45 = vpack.c.bf16 %v8365_v57, %v8364_v53  ;;  %v8376_v53 = vld [vmem:[#allocation42_spill] sm:$0xff] }
 0x1df   : > { %8363 = vst [vmem:[#allocation74_spill] sm:$0xff] %v5603_v41  ;;  %8372 = vst [vmem:[#allocation77_spill] sm:$0xff] %v5621_v25  ;;  %v5627_v49 = vpack.c.bf16 %v8374_v55, %v8373_v34  ;;  %v8377_v57 = vcvt.s32.f32 %v8376_v53  ;;  %v8383_v21 = vcvt.s32.f32 %v8382_v58  ;;  %v8385_v34 = vcvt.s32.f32 %v8384_v61  ;;  %v8386_v53 = vld [vmem:[#allocation43_spill] sm:$0xff]  ;;  %v8400_v41 = vld [vmem:[#allocation49_spill] sm:$0xff] }
 0x1e0   : > { %8348 = vst [vmem:[#allocation69_spill] sm:$0xff] %v5569_v22  ;;  %v5591_v22 = vpack.c.bf16 %v8356_v44, %v8355_v23  ;;  %8366 = vst [vmem:[#allocation75_spill] sm:$0xff] %v5609_v45  ;;  %v8367_v23 = vcvt.s32.f32 %v8326_v20  ;;  %v8368_v44 = vcvt.s32.f32 %v8325_v48  ;;  %v8378_v20 = vld [vmem:[#allocation41_spill] sm:$0xff]  ;;  %v8392_v58 = vcvt.s32.f32 %v5298_v38 }
 0x1e1   : > { %8375 = vst [vmem:[#allocation78_spill] sm:$0xff] %v5627_v49  ;;  %v8379_v48 = vcvt.s32.f32 %v8378_v20  ;;  %v8388_v20 = vld [vmem:[#allocation48_spill] sm:$0xff]  ;;  %v8393_v61 = vcvt.s32.f32 %v5290_v29  ;;  %v8397_v38 = vcvt.s32.f32 %v5324_v31  ;;  %v8398_v29 = vcvt.s32.f32 %v5357_v40 }
 0x1e2   : > { %8357 = vst [vmem:[#allocation72_spill] sm:$0xff] %v5591_v22  ;;  %v5615_v63 = vpack.c.bf16 %v8368_v44, %v8367_v23  ;;  %v8380_v44 = vld [vmem:[#allocation47_spill] sm:$0xff]  ;;  %v8408_v31 = vcvt.s32.f32 %v5384_v36  ;;  %v8410_v40 = vcvt.s32.f32 %v5375_v54  ;;  %v8419_v36 = vld [vmem:[#allocation52_spill] sm:$0xff]  ;;  %v8422_v54 = vcvt.s32.f32 %v5422_v19 }
 0x1e3   : > { %v8433_v19 = vcvt.s32.f32 %v5438_v8 }
 0x1e4   : > { %8369 = vst [vmem:[#allocation76_spill] sm:$0xff] %v5615_v63  ;;  %v8381_v63 = vcvt.s32.f32 %v8380_v44  ;;  %v8390_v44 = vld [vmem:[#allocation46_spill] sm:$0xff] }
 0x20b   : > { %s3877_s17 = spop %3876 }
 0x20c   : > { %s2161_s25 = smul.f32 0.003921569, %s3877_s17 }
 0x20e   : > { %s2162_s26 = sfloor.f32 %s2161_s25 }
 0x20f   : > { %s2163_s27 = smul.f32 255.0, %s2162_s26 }
 0x211   : > { %p2164_p6 = scmp.gt.f32.partialorder %s2163_s27, %s3877_s17 }
 0x213   : > { %s2165_s28 = scalar_select %p2164_p6, 1, 0 }
 0x215   : > { %s2166_s29 = scvt.s32.f32 %s2165_s28  ;;  %s7954_s28 = scalar_lea.hbm %s7998_s1, %s3873_s24 }
 0x217   : > { %s2167_s30 = ssub.f32 %s2162_s26, %s2166_s29  ;;  %s3685_s29 = scalar_lea.sflag [#allocation5], %s4148_s21 }
 0x219   : > { %s2168_s2 = sadd.f32 1.0, %s2167_s30 }
 0x21b   : > { %s2169_s3 = smul.f32 255.0, %s2168_s2 }
 0x21d   : > { %p2170_p10 = scmp.le.f32.partialorder %s2169_s3, %s3877_s17  ;;  %s131_s17 = scalar_lea.vmem [#allocation6], %s3774_s22 }
 0x21e   : > { %s3698_s25 = sshll.u32 %s131_s17, 4  ;;  %s3965_s22 = sshll.u32 %s4033_s10, 4  ;;  %s7956_s25 = int_to_ptr.vmem [resolvable:$true] %s3698_s25  ;;  %s3966_s22 = int_to_ptr.vmem [resolvable:$false] %s3965_s22 }
 0x21f   : > { %s2171_s4 = scalar_select %p2170_p10, 1, 0 }
 0x220   : > { %s3967_s2 = scalar_lea.vmem %s3966_s22, 64  ;;  %p3968_p3 = scmp.lt.s32.totalorder %s7956_s25, %s3966_s22 }
 0x221   : > { %s2172_s5 = scvt.s32.f32 %s2171_s4 }
 0x223   : > { %s5473_s11 = sadd.f32 %s2172_s5, %s2167_s30  ;;  %s3961_s30 = scalar_lea.vmem %s7956_s25, 32 }
 0x224   : > { %p3962_p12 = scmp.ne.s32.totalorder %s7956_s25, %s3961_s30  ;;  %p3969_p5 = scmp.lt.s32.totalorder %s3967_s2, %s3961_s30 }
 0x225   : > { %s2209_s14 = smax.f32 %s4031_s13, %s5473_s11  ;;  %s2174_s16 = smul.f32 0.5, %s5473_s11 }
 0x226   : > { %v5520_v28 = vstv %s2209_s14  ;;  %p2724_p11 = scmp.eq.f32.partialorder %s5473_s11, 0.0  ;;  %p3963_p9 = pnand %p3962_p12, %p8864_p4 }
 0x227   : > { %8322 = vst [vmem:[#allocation63_spill] sm:$0xff] %v5520_v28  ;;  %s2175_s20 = sfloor.f32 %s2174_s16  ;;  %3929 = vrcp.f32 %v5520_v28  ;;  %p3970_p7 = por %p3969_p5, %p3968_p3 }
 0x228   : > { %v2176_v13 = vstv %s2175_s20  ;;  %s5579_s23 = scalar_select %p2724_p11, 1, 0 }
 0x229   : > { %v5631_v45 = vadd.f32 %v2176_v13, %v8377_v57  ;;  %v5635_v23 = vadd.f32 %v2176_v13, %v8379_v48  ;;  %v5639_v4 = vadd.f32 %v2176_v13, %v8381_v63  ;;  %v5643_v10 = vadd.f32 %v2176_v13, %v8383_v21  ;;  %p3964_p1 = pneg %p3963_p9 }
 0x22a   : > { %v5648_v55 = vadd.f32 %v2176_v13, %v8385_v34  ;;  %v8387_v57 = vcvt.s32.f32 %v8386_v53  ;;  %v8389_v48 = vcvt.s32.f32 %v8388_v20  ;;  %v8391_v63 = vcvt.s32.f32 %v8390_v44 }
 0x22b   : > { %v5664_v21 = vadd.f32 %v2176_v13, %v8392_v58  ;;  %v5668_v34 = vadd.f32 %v2176_v13, %v8393_v61  ;;  %v8394_v53 = vcvt.s32.f32 %v5318_v60  ;;  %v8395_v20 = vcvt.s32.f32 %v5307_v2  ;;  %p3971_p8 = pnand %p3970_p7, %p3964_p1 }
 0x22c   : > { %v5652_v62 = vadd.f32 %v2176_v13, %v8387_v57  ;;  %v5656_v47 = vadd.f32 %v2176_v13, %v8389_v48  ;;  %v5660_v22 = vadd.f32 %v2176_v13, %v8391_v63  ;;  %v8396_v44 = vcvt.s32.f32 %v5343_v3 }
 0x22d   : > { %v5672_v57 = vadd.f32 %v2176_v13, %v8394_v53  ;;  %v5676_v48 = vadd.f32 %v2176_v13, %v8395_v20  ;;  %v5684_v58 = vadd.f32 %v2176_v13, %v8397_v38  ;;  %v5688_v61 = vadd.f32 %v2176_v13, %v8398_v29 }
 0x22e   : > { %v5680_v63 = vadd.f32 %v2176_v13, %v8396_v44  ;;  %v8401_v60 = vcvt.s32.f32 %v8400_v41  ;;  %v8403_v2 = vcvt.s32.f32 %v5368_v12  ;;  %v8406_v3 = vcvt.s32.f32 %v8405_v7  ;;  %v8414_v12 = vld [vmem:[#allocation51_spill] sm:$0xff] }
 0x22f   : > { %8399 = vst [vmem:[#allocation42_spill] sm:$0xff] %v5688_v61  ;;  %v5704_v38 = vadd.f32 %v2176_v13, %v8408_v31  ;;  %v5708_v29 = vadd.f32 %v2176_v13, %v8410_v40  ;;  %v8412_v41 = vcvt.s32.f32 %v5394_v27  ;;  %v8417_v7 = vcvt.s32.f32 %v5408_v51 }
 0x230   : > { %v5692_v53 = vadd.f32 %v2176_v13, %v8401_v60  ;;  %v5696_v20 = vadd.f32 %v2176_v13, %v8403_v2  ;;  %v5700_v44 = vadd.f32 %v2176_v13, %v8406_v3  ;;  %v8415_v2 = vcvt.s32.f32 %v8414_v12 }
 0x231   : > { %8409 = vst [vmem:[#allocation45_spill] sm:$0xff] %v5704_v38  ;;  %v3930_v35 = vpop.eup %3929  ;;  %8411 = vst [vmem:[#allocation43_spill] sm:$0xff] %v5708_v29  ;;  %v5712_v60 = vadd.f32 %v2176_v13, %v8412_v41  ;;  %v5720_v3 = vadd.f32 %v2176_v13, %v8417_v7  ;;  %v8420_v31 = vcvt.s32.f32 %v8419_v36  ;;  %v5728_v40 = vadd.f32 %v2176_v13, %v8422_v54 }
 0x232   : > { %8402 = vst [vmem:[#allocation41_spill] sm:$0xff] %v5692_v53  ;;  %8404 = vst [vmem:[#allocation47_spill] sm:$0xff] %v5696_v20  ;;  %v5716_v32 = vadd.f32 %v2176_v13, %v8415_v2  ;;  %v8425_v27 = vcvt.s32.f32 %v8424_v26  ;;  %v8427_v12 = vcvt.s32.f32 %v5432_v43  ;;  %v8429_v51 = vcvt.s32.f32 %v5424_v39 }
 0x233   : > { %8407 = vst [vmem:[#allocation44_spill] sm:$0xff] %v5700_v44  ;;  %8413 = vst [vmem:[#allocation48_spill] sm:$0xff] %v5712_v60  ;;  %v5724_v33 = vadd.f32 %v2176_v13, %v8420_v31  ;;  %v8431_v36 = vcvt.s32.f32 %v5449_v52  ;;  %v5748_v54 = vadd.f32 %v2176_v13, %v8433_v19  ;;  %v8435_v26 = vcvt.s32.f32 %v5458_v11 }
 0x234   : > { %8416 = vst [vmem:[#allocation46_spill] sm:$0xff] %v5716_v32  ;;  %8418 = vst [vmem:[#allocation49_spill] sm:$0xff] %v5720_v3  ;;  %v5732_v41 = vadd.f32 %v2176_v13, %v8425_v27  ;;  %v5736_v2 = vadd.f32 %v2176_v13, %v8427_v12  ;;  %v5740_v7 = vadd.f32 %v2176_v13, %v8429_v51  ;;  %v8437_v43 = vcvt.s32.f32 %v5446_v50 }
 0x235   : > { %8421 = vst [vmem:[#allocation50_spill] sm:$0xff] %v5724_v33  ;;  %8423 = vst [vmem:[#allocation51_spill] sm:$0xff] %v5728_v40  ;;  %v5744_v31 = vadd.f32 %v2176_v13, %v8431_v36  ;;  %v5752_v27 = vadd.f32 %v2176_v13, %v8435_v26  ;;  %v5759_v39 = vmul.f32 %v3930_v35, %v5631_v45 }
 0x236   : > { %8426 = vst [vmem:[#allocation52_spill] sm:$0xff] %v5732_v41  ;;  %8428 = vst [vmem:[#allocation53_spill] sm:$0xff] %v5736_v2  ;;  %v5756_v12 = vadd.f32 %v2176_v13, %v8437_v43  ;;  %v5762_v51 = vmul.f32 %v3930_v35, %v5635_v23  ;;  %v5765_v52 = vmul.f32 %v3930_v35, %v5639_v4 }
 0x237   : > { %8430 = vst [vmem:[#allocation79_spill] sm:$0xff] %v5740_v7  ;;  %8432 = vst [vmem:[#allocation80_spill] sm:$0xff] %v5744_v31  ;;  %v5768_v8 = vmul.f32 %v3930_v35, %v5643_v10  ;;  %v5771_v11 = vmul.f32 %v3930_v35, %v5648_v55  ;;  %v5774_v36 = vmul.f32 %v3930_v35, %v5652_v62 }
 0x238   : > { %8434 = vst [vmem:[#allocation81_spill] sm:$0xff] %v5748_v54  ;;  %8436 = vst [vmem:[#allocation82_spill] sm:$0xff] %v5752_v27  ;;  %v5777_v50 = vmul.f32 %v3930_v35, %v5656_v47  ;;  %v5780_v13 = vmul.f32 %v3930_v35, %v5660_v22  ;;  %v5783_v19 = vmul.f32 %v3930_v35, %v5664_v21 }
 0x239   : > { %8438 = vst [vmem:[#allocation83_spill] sm:$0xff] %v5756_v12  ;;  %8439 = vst [vmem:[#allocation84_spill] sm:$0xff] %v5759_v39  ;;  %v5786_v26 = vmul.f32 %v3930_v35, %v5668_v34  ;;  %v5789_v43 = vmul.f32 %v3930_v35, %v5672_v57  ;;  %v5792_v17 = vmul.f32 %v3930_v35, %v5676_v48 }
 0x23a   : > { %8440 = vst [vmem:[#allocation85_spill] sm:$0xff] %v5762_v51  ;;  %8441 = vst [vmem:[#allocation86_spill] sm:$0xff] %v5765_v52  ;;  %v5795_v30 = vmul.f32 %v3930_v35, %v5680_v63  ;;  %v5798_v24 = vmul.f32 %v3930_v35, %v5684_v58  ;;  %v5801_v18 = vmul.f32 %v3930_v35, %v5688_v61 }
 0x23b   : > { %8442 = vst [vmem:[#allocation87_spill] sm:$0xff] %v5768_v8  ;;  %8443 = vst [vmem:[#allocation88_spill] sm:$0xff] %v5771_v11  ;;  %v5804_v15 = vmul.f32 %v3930_v35, %v5692_v53  ;;  %v5807_v16 = vmul.f32 %v3930_v35, %v5696_v20  ;;  %v5810_v42 = vmul.f32 %v3930_v35, %v5700_v44 }
 0x23c   : > { %8444 = vst [vmem:[#allocation89_spill] sm:$0xff] %v5774_v36  ;;  %8445 = vst [vmem:[#allocation90_spill] sm:$0xff] %v5777_v50  ;;  %v5813_v14 = vmul.f32 %v3930_v35, %v5704_v38  ;;  %v5816_v0 = vmul.f32 %v3930_v35, %v5708_v29  ;;  %v5819_v1 = vmul.f32 %v3930_v35, %v5712_v60 }
 0x23d   : > { %8446 = vst [vmem:[#allocation91_spill] sm:$0xff] %v5780_v13  ;;  %8447 = vst [vmem:[#allocation92_spill] sm:$0xff] %v5783_v19  ;;  %v5822_v6 = vmul.f32 %v3930_v35, %v5716_v32  ;;  %v5825_v56 = vmul.f32 %v3930_v35, %v5720_v3  ;;  %v5828_v46 = vmul.f32 %v3930_v35, %v5724_v33  ;;  %v8471_v3 = vfloor.f32 %v5759_v39 }
 0x23e   : > { %8448 = vst [vmem:[#allocation93_spill] sm:$0xff] %v5786_v26  ;;  %8449 = vst [vmem:[#allocation94_spill] sm:$0xff] %v5789_v43  ;;  %v5831_v9 = vmul.f32 %v3930_v35, %v5728_v40  ;;  %v5834_v59 = vmul.f32 %v3930_v35, %v5732_v41  ;;  %v5837_v5 = vmul.f32 %v3930_v35, %v5736_v2  ;;  %v8472_v32 = vfloor.f32 %v5762_v51 }
 0x23f   : > { %8450 = vst [vmem:[#allocation95_spill] sm:$0xff] %v5792_v17  ;;  %8451 = vst [vmem:[#allocation96_spill] sm:$0xff] %v5795_v30  ;;  %v5840_v49 = vmul.f32 %v3930_v35, %v5740_v7  ;;  %v5843_v25 = vmul.f32 %v3930_v35, %v5744_v31  ;;  %v5846_v37 = vmul.f32 %v3930_v35, %v5748_v54  ;;  %v8474_v41 = vfloor.f32 %v5768_v8  ;;  %v8512_v51 = vld [vmem:[#allocation81_spill] sm:$0xff]  ;;  %v8513_v39 = vld [vmem:[#allocation82_spill] sm:$0xff] }
 0x240   : > { %8452 = vst [vmem:[#allocation97_spill] sm:$0xff] %v5798_v24  ;;  %8453 = vst [vmem:[#allocation98_spill] sm:$0xff] %v5801_v18  ;;  %v5849_v33 = vmul.f32 %v3930_v35, %v5752_v27  ;;  %v5852_v40 = vmul.f32 %v3930_v35, %v5756_v12  ;;  %v5889_v7 = vmul.f32 %v8471_v3, %v5520_v28  ;;  %v8473_v27 = vfloor.f32 %v5765_v52 }
 0x241   : > { %8454 = vst [vmem:[#allocation99_spill] sm:$0xff] %v5804_v15  ;;  %8455 = vst [vmem:[#allocation100_spill] sm:$0xff] %v5807_v16  ;;  %v5894_v31 = vmul.f32 %v8472_v32, %v5520_v28  ;;  %v5904_v35 = vmul.f32 %v8474_v41, %v5520_v28  ;;  %v8475_v2 = vfloor.f32 %v5771_v11  ;;  %v8476_v54 = vfloor.f32 %v5774_v36 }
 0x242   : > { %8456 = vst [vmem:[#allocation101_spill] sm:$0xff] %v5810_v42  ;;  %8457 = vst [vmem:[#allocation102_spill] sm:$0xff] %v5813_v14  ;;  %v5899_v60 = vmul.f32 %v8473_v27, %v5520_v28  ;;  %v8477_v52 = vfloor.f32 %v5777_v50  ;;  %v8478_v8 = vfloor.f32 %v5780_v13  ;;  %v8479_v11 = vfloor.f32 %v5783_v19 }
 0x243   : > { %8458 = vst [vmem:[#allocation103_spill] sm:$0xff] %v5816_v0  ;;  %8459 = vst [vmem:[#allocation104_spill] sm:$0xff] %v5819_v1  ;;  %v5909_v3 = vmul.f32 %v8475_v2, %v5520_v28  ;;  %v5914_v32 = vmul.f32 %v8476_v54, %v5520_v28  ;;  %v8480_v36 = vfloor.f32 %v5786_v26  ;;  %v8481_v50 = vfloor.f32 %v5789_v43 }
 0x244   : > { %8460 = vst [vmem:[#allocation105_spill] sm:$0xff] %v5822_v6  ;;  %8461 = vst [vmem:[#allocation106_spill] sm:$0xff] %v5825_v56  ;;  %v5919_v27 = vmul.f32 %v8477_v52, %v5520_v28  ;;  %v5924_v41 = vmul.f32 %v8478_v8, %v5520_v28  ;;  %v5929_v2 = vmul.f32 %v8479_v11, %v5520_v28  ;;  %v8482_v13 = vfloor.f32 %v5792_v17 }
 0x245   : > { %8462 = vst [vmem:[#allocation107_spill] sm:$0xff] %v5828_v46  ;;  %8463 = vst [vmem:[#allocation108_spill] sm:$0xff] %v5831_v9  ;;  %v5934_v54 = vmul.f32 %v8480_v36, %v5520_v28  ;;  %v5939_v52 = vmul.f32 %v8481_v50, %v5520_v28  ;;  %v8483_v19 = vfloor.f32 %v5795_v30  ;;  %v8484_v26 = vfloor.f32 %v5798_v24 }
 0x246   : > { %8464 = vst [vmem:[#allocation109_spill] sm:$0xff] %v5834_v59  ;;  %8465 = vst [vmem:[#allocation110_spill] sm:$0xff] %v5837_v5  ;;  %v5944_v8 = vmul.f32 %v8482_v13, %v5520_v28  ;;  %v8485_v43 = vfloor.f32 %v5801_v18  ;;  %v8486_v17 = vfloor.f32 %v5804_v15  ;;  %v8487_v30 = vfloor.f32 %v5807_v16 }
 0x247   : > { %8466 = vst [vmem:[#allocation111_spill] sm:$0xff] %v5840_v49  ;;  %8467 = vst [vmem:[#allocation112_spill] sm:$0xff] %v5843_v25  ;;  %v5949_v11 = vmul.f32 %v8483_v19, %v5520_v28  ;;  %v5954_v36 = vmul.f32 %v8484_v26, %v5520_v28  ;;  %v8488_v24 = vfloor.f32 %v5810_v42  ;;  %v8489_v18 = vfloor.f32 %v5813_v14 }
 0x248   : > { %8468 = vst [vmem:[#allocation113_spill] sm:$0xff] %v5846_v37  ;;  %8469 = vst [vmem:[#allocation114_spill] sm:$0xff] %v5849_v33  ;;  %v5959_v50 = vmul.f32 %v8485_v43, %v5520_v28  ;;  %v5964_v13 = vmul.f32 %v8486_v17, %v5520_v28  ;;  %v5969_v19 = vmul.f32 %v8487_v30, %v5520_v28  ;;  %v8490_v15 = vfloor.f32 %v5816_v0 }
 0x249   : > { %8470 = vst [vmem:[#allocation115_spill] sm:$0xff] %v5852_v40  ;;  %v5974_v26 = vmul.f32 %v8488_v24, %v5520_v28  ;;  %v5979_v43 = vmul.f32 %v8489_v18, %v5520_v28  ;;  %v8491_v16 = vfloor.f32 %v5819_v1  ;;  %v8492_v42 = vfloor.f32 %v5822_v6 }
 0x24a   : > { %v5984_v17 = vmul.f32 %v8490_v15, %v5520_v28  ;;  %v8493_v14 = vfloor.f32 %v5825_v56  ;;  %v8494_v0 = vfloor.f32 %v5828_v46  ;;  %v8495_v1 = vfloor.f32 %v5831_v9 }
 0x24b   : > { %v5989_v30 = vmul.f32 %v8491_v16, %v5520_v28  ;;  %v5994_v24 = vmul.f32 %v8492_v42, %v5520_v28  ;;  %v8496_v6 = vfloor.f32 %v5834_v59  ;;  %v8497_v56 = vfloor.f32 %v5837_v5 }
 0x24c   : > { %v5999_v18 = vmul.f32 %v8493_v14, %v5520_v28  ;;  %v6004_v15 = vmul.f32 %v8494_v0, %v5520_v28  ;;  %v6009_v16 = vmul.f32 %v8495_v1, %v5520_v28  ;;  %v8498_v46 = vfloor.f32 %v5840_v49 }
 0x24d   : > { %v6014_v42 = vmul.f32 %v8496_v6, %v5520_v28  ;;  %v6019_v14 = vmul.f32 %v8497_v56, %v5520_v28  ;;  %v8499_v9 = vfloor.f32 %v5843_v25  ;;  %v8500_v59 = vfloor.f32 %v5846_v37  ;;  %v8508_v37 = vld [vmem:[#allocation52_spill] sm:$0xff]  ;;  %v8509_v25 = vld [vmem:[#allocation53_spill] sm:$0xff] }
 0x24e   : > { %v6024_v0 = vmul.f32 %v8498_v46, %v5520_v28  ;;  %v8501_v5 = vfloor.f32 %v5849_v33  ;;  %v8502_v49 = vfloor.f32 %v5852_v40  ;;  %vm2308_vm0 = vcmp.gt.f32.partialorder %v5889_v7, %v5631_v45  ;;  %v8510_v40 = vld [vmem:[#allocation79_spill] sm:$0xff]  ;;  %v8511_v33 = vld [vmem:[#allocation80_spill] sm:$0xff] }
 0x24f   : > { %v6029_v1 = vmul.f32 %v8499_v9, %v5520_v28  ;;  %v6034_v6 = vmul.f32 %v8500_v59, %v5520_v28  ;;  %vm2309_vm1 = vcmp.gt.f32.partialorder %v5894_v31, %v5635_v23  ;;  %vm2310_vm2 = vcmp.gt.f32.partialorder %v5899_v60, %v5639_v4  ;;  %v8503_v9 = vld [vmem:[#allocation48_spill] sm:$0xff]  ;;  %v8504_v59 = vld [vmem:[#allocation46_spill] sm:$0xff] }
 0x250   : > { %v6039_v56 = vmul.f32 %v8501_v5, %v5520_v28  ;;  %v6044_v46 = vmul.f32 %v8502_v49, %v5520_v28  ;;  %vm2311_vm3 = vcmp.gt.f32.partialorder %v5904_v35, %v5643_v10  ;;  %vm2312_vm4 = vcmp.gt.f32.partialorder %v5909_v3, %v5648_v55  ;;  %v8505_v5 = vld [vmem:[#allocation49_spill] sm:$0xff]  ;;  %v8506_v49 = vld [vmem:[#allocation50_spill] sm:$0xff] }
 0x251   : > { %vm2313_vm5 = vcmp.gt.f32.partialorder %v5914_v32, %v5652_v62  ;;  %vm2314_vm6 = vcmp.gt.f32.partialorder %v5919_v27, %v5656_v47  ;;  %vm2315_vm7 = vcmp.gt.f32.partialorder %v5924_v41, %v5660_v22  ;;  %vm2316_vm8 = vcmp.gt.f32.partialorder %v5929_v2, %v5664_v21 }
 0x252   : > { %vm2333_vm11 = vcmp.gt.f32.partialorder %v6014_v42, %v8508_v37  ;;  %vm2334_vm12 = vcmp.gt.f32.partialorder %v6019_v14, %v8509_v25  ;;  %vm2335_vm13 = vcmp.gt.f32.partialorder %v6024_v0, %v8510_v40  ;;  %vm2336_vm14 = vcmp.gt.f32.partialorder %v6029_v1, %v8511_v33  ;;  %v8535_v40 = vld [vmem:[#allocation84_spill] sm:$0xff]  ;;  %v8538_v1 = vld [vmem:[#allocation85_spill] sm:$0xff] }
 0x253   : > { %vm2337_vm15 = vcmp.gt.f32.partialorder %v6034_v6, %v8512_v51  ;;  %vm2338_vm9 = vcmp.gt.f32.partialorder %v6039_v56, %v8513_v39  ;;  %vm2339_vm10 = vcmp.gt.f32.partialorder %v6044_v46, %v5756_v12  ;;  %v8195_v28 = vmov 0.0   ;;  %v8541_v6 = vld [vmem:[#allocation86_spill] sm:$0xff] }
 0x254   : > { %v3808_v25 = vsel %vm2308_vm0, 1.0, %v8195_v28  ;;  %v3809_v33 = vsel %vm2309_vm1, 1.0, %v8195_v28  ;;  %v3810_v51 = vsel %vm2310_vm2, 1.0, %v8195_v28  ;;  %v3811_v12 = vsel %vm2311_vm3, 1.0, %v8195_v28 }
 0x255   : > { %v3812_v7 = vsel %vm2312_vm4, 1.0, %v8195_v28  ;;  %v3813_v31 = vsel %vm2313_vm5, 1.0, %v8195_v28  ;;  %v3814_v60 = vsel %vm2314_vm6, 1.0, %v8195_v28  ;;  %v3815_v35 = vsel %vm2315_vm7, 1.0, %v8195_v28 }
 0x256   : > { %v3816_v3 = vsel %vm2316_vm8, 1.0, %v8195_v28  ;;  %vm8514_vm0 = vcmp.gt.f32.partialorder %v5934_v54, %v5668_v34  ;;  %vm8515_vm1 = vcmp.gt.f32.partialorder %v5939_v52, %v5672_v57  ;;  %vm8516_vm2 = vcmp.gt.f32.partialorder %v5944_v8, %v5676_v48 }
 0x257   : > { %v3817_v32 = vsel %vm8514_vm0, 1.0, %v8195_v28  ;;  %v3818_v27 = vsel %vm8515_vm1, 1.0, %v8195_v28  ;;  %v3819_v41 = vsel %vm8516_vm2, 1.0, %v8195_v28  ;;  %vm8517_vm3 = vcmp.gt.f32.partialorder %v5949_v11, %v5680_v63 }
 0x258   : > { %v3820_v2 = vsel %vm8517_vm3, 1.0, %v8195_v28  ;;  %vm8518_vm4 = vcmp.gt.f32.partialorder %v5954_v36, %v5684_v58  ;;  %vm8519_vm5 = vcmp.gt.f32.partialorder %v5959_v50, %v5688_v61  ;;  %vm8520_vm6 = vcmp.gt.f32.partialorder %v5964_v13, %v5692_v53  ;;  %v8547_v53 = vld [vmem:[#allocation88_spill] sm:$0xff] }
 0x259   : > { %v3821_v54 = vsel %vm8518_vm4, 1.0, %v8195_v28  ;;  %v3822_v52 = vsel %vm8519_vm5, 1.0, %v8195_v28  ;;  %v3823_v8 = vsel %vm8520_vm6, 1.0, %v8195_v28  ;;  %vm8521_vm7 = vcmp.gt.f32.partialorder %v5969_v19, %v5696_v20 }
 0x25a   : > { %v3824_v11 = vsel %vm8521_vm7, 1.0, %v8195_v28  ;;  %vm8522_vm8 = vcmp.gt.f32.partialorder %v5974_v26, %v5700_v44  ;;  %vm8523_vm0 = vcmp.gt.f32.partialorder %v5979_v43, %v5704_v38  ;;  %vm8524_vm1 = vcmp.gt.f32.partialorder %v5984_v17, %v5708_v29  ;;  %v8529_v29 = vld [vmem:[#allocation51_spill] sm:$0xff] }
 0x25b   : > { %v3825_v36 = vsel %vm8522_vm8, 1.0, %v8195_v28  ;;  %v3826_v50 = vsel %vm8523_vm0, 1.0, %v8195_v28  ;;  %v3827_v13 = vsel %vm8524_vm1, 1.0, %v8195_v28  ;;  %vm8525_vm2 = vcmp.gt.f32.partialorder %v5989_v30, %v8503_v9  ;;  %v8544_v44 = vld [vmem:[#allocation87_spill] sm:$0xff] }
 0x25c   : > { %v3828_v19 = vsel %vm8525_vm2, 1.0, %v8195_v28  ;;  %vm8526_vm3 = vcmp.gt.f32.partialorder %v5994_v24, %v8504_v59  ;;  %vm8527_vm4 = vcmp.gt.f32.partialorder %v5999_v18, %v8505_v5  ;;  %vm8528_vm5 = vcmp.gt.f32.partialorder %v6004_v15, %v8506_v49  ;;  %v8534_v59 = vld [vmem:[#allocation83_spill] sm:$0xff] }
 0x25d   : > { %v3829_v26 = vsel %vm8526_vm3, 1.0, %v8195_v28  ;;  %v3830_v43 = vsel %vm8527_vm4, 1.0, %v8195_v28  ;;  %v3831_v17 = vsel %vm8528_vm5, 1.0, %v8195_v28  ;;  %vm8530_vm6 = vcmp.gt.f32.partialorder %v6009_v16, %v8529_v29 }
 0x25e   : > { %v3832_v30 = vsel %vm8530_vm6, 1.0, %v8195_v28  ;;  %v3833_v24 = vsel %vm2333_vm11, 1.0, %v8195_v28  ;;  %v3834_v18 = vsel %vm2334_vm12, 1.0, %v8195_v28  ;;  %v3835_v15 = vsel %vm2335_vm13, 1.0, %v8195_v28 }
 0x25f   : > { %v3836_v16 = vsel %vm2336_vm14, 1.0, %v8195_v28  ;;  %v3837_v42 = vsel %vm2337_vm15, 1.0, %v8195_v28  ;;  %v3838_v14 = vsel %vm2338_vm9, 1.0, %v8195_v28  ;;  %v3839_v0 = vsel %vm2339_vm10, 1.0, %v8195_v28  ;;  %v8550_v28 = vld [vmem:[#allocation89_spill] sm:$0xff] }
 0x260   : > { %v8536_v37 = vfloor.f32 %v8535_v40  ;;  %v8539_v49 = vfloor.f32 %v8538_v1  ;;  %v8542_v29 = vfloor.f32 %v8541_v6  ;;  %v8545_v56 = vfloor.f32 %v8544_v44 }
 0x261   : > { %v8548_v61 = vfloor.f32 %v8547_v53  ;;  %v8551_v40 = vfloor.f32 %v8550_v28 }
 0x262   : > { %v6240_v5 = vsub.f32 %v8536_v37, %v3808_v25  ;;  %v6244_v9 = vsub.f32 %v8539_v49, %v3809_v33  ;;  %v6248_v38 = vsub.f32 %v8542_v29, %v3810_v51  ;;  %v6252_v20 = vsub.f32 %v8545_v56, %v3811_v12  ;;  %v8553_v37 = vld [vmem:[#allocation90_spill] sm:$0xff]  ;;  %v8556_v49 = vld [vmem:[#allocation91_spill] sm:$0xff]  ;;  %v8559_v51 = vld [vmem:[#allocation92_spill] sm:$0xff] }
 0x263   : > { %v6256_v46 = vsub.f32 %v8548_v61, %v3812_v7  ;;  %v6260_v25 = vsub.f32 %v8551_v40, %v3813_v31  ;;  %v8554_v1 = vfloor.f32 %v8553_v37  ;;  %v8557_v6 = vfloor.f32 %v8556_v49  ;;  %v8562_v56 = vld [vmem:[#allocation93_spill] sm:$0xff]  ;;  %v8565_v7 = vld [vmem:[#allocation94_spill] sm:$0xff]  ;;  %v8568_v40 = vld [vmem:[#allocation95_spill] sm:$0xff] }
 0x264   : > { %8537 = vst [vmem:[#allocation82_spill] sm:$0xff] %v6240_v5  ;;  %8540 = vst [vmem:[#allocation83_spill] sm:$0xff] %v6244_v9  ;;  %v8560_v44 = vfloor.f32 %v8559_v51  ;;  %v8563_v53 = vfloor.f32 %v8562_v56  ;;  %v8566_v28 = vfloor.f32 %v8565_v7  ;;  %v8569_v37 = vfloor.f32 %v8568_v40 }
 0x265   : > { %8543 = vst [vmem:[#allocation84_spill] sm:$0xff] %v6248_v38  ;;  %8546 = vst [vmem:[#allocation85_spill] sm:$0xff] %v6252_v20  ;;  %v6264_v33 = vsub.f32 %v8554_v1, %v3814_v60  ;;  %v6268_v29 = vsub.f32 %v8557_v6, %v3815_v35  ;;  %v8571_v1 = vld [vmem:[#allocation96_spill] sm:$0xff]  ;;  %v8574_v6 = vld [vmem:[#allocation97_spill] sm:$0xff] }
 0x266   : > { %8549 = vst [vmem:[#allocation86_spill] sm:$0xff] %v6256_v46  ;;  %8552 = vst [vmem:[#allocation87_spill] sm:$0xff] %v6260_v25  ;;  %v6272_v12 = vsub.f32 %v8560_v44, %v3816_v3  ;;  %v6276_v61 = vsub.f32 %v8563_v53, %v3817_v32  ;;  %v6280_v31 = vsub.f32 %v8566_v28, %v3818_v27  ;;  %v8572_v49 = vfloor.f32 %v8571_v1  ;;  %v8577_v44 = vld [vmem:[#allocation98_spill] sm:$0xff]  ;;  %v8580_v53 = vld [vmem:[#allocation99_spill] sm:$0xff] }
 0x267   : > { %8555 = vst [vmem:[#allocation88_spill] sm:$0xff] %v6264_v33  ;;  %8558 = vst [vmem:[#allocation89_spill] sm:$0xff] %v6268_v29  ;;  %v6284_v60 = vsub.f32 %v8569_v37, %v3819_v41  ;;  %v8575_v51 = vfloor.f32 %v8574_v6  ;;  %v8578_v56 = vfloor.f32 %v8577_v44  ;;  %v8581_v7 = vfloor.f32 %v8580_v53  ;;  %v8583_v28 = vld [vmem:[#allocation100_spill] sm:$0xff]  ;;  %v8586_v37 = vld [vmem:[#allocation101_spill] sm:$0xff] }
 0x268   : > { %8561 = vst [vmem:[#allocation90_spill] sm:$0xff] %v6272_v12  ;;  %8564 = vst [vmem:[#allocation91_spill] sm:$0xff] %v6276_v61  ;;  %v6288_v35 = vsub.f32 %v8572_v49, %v3820_v2  ;;  %v8584_v40 = vfloor.f32 %v8583_v28  ;;  %v8587_v1 = vfloor.f32 %v8586_v37  ;;  %v8589_v49 = vld [vmem:[#allocation102_spill] sm:$0xff] }
 0x269   : > { %8567 = vst [vmem:[#allocation92_spill] sm:$0xff] %v6280_v31  ;;  %8570 = vst [vmem:[#allocation93_spill] sm:$0xff] %v6284_v60  ;;  %v6292_v3 = vsub.f32 %v8575_v51, %v3821_v54  ;;  %v6296_v32 = vsub.f32 %v8578_v56, %v3822_v52  ;;  %v6300_v27 = vsub.f32 %v8581_v7, %v3823_v8  ;;  %v8590_v6 = vfloor.f32 %v8589_v49  ;;  %v8592_v51 = vld [vmem:[#allocation103_spill] sm:$0xff]  ;;  %v8595_v56 = vld [vmem:[#allocation104_spill] sm:$0xff] }
 0x26a   : > { %8573 = vst [vmem:[#allocation94_spill] sm:$0xff] %v6288_v35  ;;  %v6304_v41 = vsub.f32 %v8584_v40, %v3824_v11  ;;  %v6308_v2 = vsub.f32 %v8587_v1, %v3825_v36  ;;  %v8593_v44 = vfloor.f32 %v8592_v51  ;;  %v8596_v53 = vfloor.f32 %v8595_v56  ;;  %v8598_v7 = vld [vmem:[#allocation105_spill] sm:$0xff]  ;;  %v8601_v40 = vld [vmem:[#allocation106_spill] sm:$0xff]  ;;  %v8604_v1 = vld [vmem:[#allocation107_spill] sm:$0xff] }
 0x26b   : > { %8576 = vst [vmem:[#allocation95_spill] sm:$0xff] %v6292_v3  ;;  %8579 = vst [vmem:[#allocation96_spill] sm:$0xff] %v6296_v32  ;;  %v6312_v54 = vsub.f32 %v8590_v6, %v3826_v50  ;;  %v8599_v28 = vfloor.f32 %v8598_v7  ;;  %v8602_v37 = vfloor.f32 %v8601_v40  ;;  %v8605_v49 = vfloor.f32 %v8604_v1  ;;  %v8607_v6 = vld [vmem:[#allocation108_spill] sm:$0xff] }
 0x26c   : > { %8582 = vst [vmem:[#allocation97_spill] sm:$0xff] %v6300_v27  ;;  %8585 = vst [vmem:[#allocation98_spill] sm:$0xff] %v6304_v41  ;;  %v6316_v52 = vsub.f32 %v8593_v44, %v3827_v13  ;;  %v6320_v8 = vsub.f32 %v8596_v53, %v3828_v19  ;;  %v8608_v51 = vfloor.f32 %v8607_v6  ;;  %v8610_v44 = vld [vmem:[#allocation114_spill] sm:$0xff]  ;;  %v8612_v53 = vld [vmem:[#allocation115_spill] sm:$0xff] }
 0x26d   : > { %8588 = vst [vmem:[#allocation99_spill] sm:$0xff] %v6308_v2  ;;  %8591 = vst [vmem:[#allocation100_spill] sm:$0xff] %v6312_v54  ;;  %v6324_v11 = vsub.f32 %v8599_v28, %v3829_v26  ;;  %v6328_v36 = vsub.f32 %v8602_v37, %v3830_v43  ;;  %v6332_v50 = vsub.f32 %v8605_v49, %v3831_v17  ;;  %v8611_v56 = vfloor.f32 %v8610_v44  ;;  %v8614_v28 = vld [vmem:[#allocation109_spill] sm:$0xff]  ;;  %v8617_v37 = vld [vmem:[#allocation110_spill] sm:$0xff] }
 0x26e   : > { %8594 = vst [vmem:[#allocation101_spill] sm:$0xff] %v6316_v52  ;;  %8597 = vst [vmem:[#allocation102_spill] sm:$0xff] %v6320_v8  ;;  %v6336_v13 = vsub.f32 %v8608_v51, %v3832_v30  ;;  %v8613_v7 = vfloor.f32 %v8612_v53  ;;  %v8615_v40 = vfloor.f32 %v8614_v28  ;;  %v8618_v1 = vfloor.f32 %v8617_v37  ;;  %v8620_v49 = vld [vmem:[#allocation111_spill] sm:$0xff]  ;;  %v8623_v51 = vld [vmem:[#allocation112_spill] sm:$0xff] }
 0x26f   : > { %8600 = vst [vmem:[#allocation103_spill] sm:$0xff] %v6324_v11  ;;  %8603 = vst [vmem:[#allocation104_spill] sm:$0xff] %v6328_v36  ;;  %v6340_v19 = vsub.f32 %v8611_v56, %v3838_v14  ;;  %v8621_v6 = vfloor.f32 %v8620_v49  ;;  %v8624_v44 = vfloor.f32 %v8623_v51  ;;  %v8626_v56 = vld [vmem:[#allocation113_spill] sm:$0xff]  ;;  %v2438_v28 = vadd.f32 1.0, %v6248_v38 }
 0x270   : > { %8606 = vst [vmem:[#allocation105_spill] sm:$0xff] %v6332_v50  ;;  %8609 = vst [vmem:[#allocation106_spill] sm:$0xff] %v6336_v13  ;;  %v6344_v26 = vsub.f32 %v8613_v7, %v3839_v0  ;;  %v6348_v43 = vsub.f32 %v8615_v40, %v3833_v24  ;;  %v6352_v17 = vsub.f32 %v8618_v1, %v3834_v18  ;;  %v8627_v53 = vfloor.f32 %v8626_v56 }
 0x271   : > { %v6356_v30 = vsub.f32 %v8621_v6, %v3835_v15  ;;  %v6360_v14 = vsub.f32 %v8624_v44, %v3836_v16  ;;  %v2436_v7 = vadd.f32 1.0, %v6240_v5  ;;  %v2437_v24 = vadd.f32 1.0, %v6244_v9 }
 0x272   : > { %8616 = vst [vmem:[#allocation107_spill] sm:$0xff] %v6348_v43  ;;  %8619 = vst [vmem:[#allocation108_spill] sm:$0xff] %v6352_v17  ;;  %v6364_v0 = vsub.f32 %v8627_v53, %v3837_v42  ;;  %v2439_v18 = vadd.f32 1.0, %v6252_v20  ;;  %v2440_v40 = vadd.f32 1.0, %v6256_v46  ;;  %v2441_v15 = vadd.f32 1.0, %v6260_v25  ;;  %v8629_v20 = vld [vmem:[#allocation63_spill] sm:$0xff] }
 0x273   : > { %8622 = vst [vmem:[#allocation114_spill] sm:$0xff] %v6356_v30  ;;  %8625 = vst [vmem:[#allocation115_spill] sm:$0xff] %v6360_v14  ;;  %v2442_v37 = vadd.f32 1.0, %v6264_v33  ;;  %v2443_v16 = vadd.f32 1.0, %v6268_v29  ;;  %v2444_v1 = vadd.f32 1.0, %v6272_v12  ;;  %v2466_v42 = vadd.f32 1.0, %v6340_v19 }
 0x274   : > { %8628 = vst [vmem:[#allocation109_spill] sm:$0xff] %v6364_v0  ;;  %v2467_v49 = vadd.f32 1.0, %v6344_v26  ;;  %v2445_v6 = vadd.f32 1.0, %v6276_v61  ;;  %v2446_v51 = vadd.f32 1.0, %v6280_v31  ;;  %v2447_v44 = vadd.f32 1.0, %v6284_v60 }
 0x275   : > { %v2448_v56 = vadd.f32 1.0, %v6288_v35  ;;  %v2449_v53 = vadd.f32 1.0, %v6292_v3  ;;  %v2450_v33 = vadd.f32 1.0, %v6296_v32  ;;  %v2451_v29 = vadd.f32 1.0, %v6300_v27 }
 0x276   : > { %v2452_v12 = vadd.f32 1.0, %v6304_v41  ;;  %v2453_v25 = vadd.f32 1.0, %v6308_v2  ;;  %v2454_v46 = vadd.f32 1.0, %v6312_v54  ;;  %v2455_v61 = vadd.f32 1.0, %v6316_v52 }
 0x277   : > { %v2456_v31 = vadd.f32 1.0, %v6320_v8  ;;  %v2457_v60 = vadd.f32 1.0, %v6324_v11  ;;  %v2458_v35 = vadd.f32 1.0, %v6328_v36  ;;  %v2498_v3 = vmul.f32 %v2466_v42, %v8629_v20 }
 0x278   : > { %v2499_v32 = vmul.f32 %v2467_v49, %v8629_v20  ;;  %v2459_v27 = vadd.f32 1.0, %v6332_v50  ;;  %v2460_v41 = vadd.f32 1.0, %v6336_v13  ;;  %v2461_v2 = vadd.f32 1.0, %v6348_v43  ;;  %v8640_v50 = vld [vmem:[#allocation46_spill] sm:$0xff] }
 0x279   : > { %v2462_v54 = vadd.f32 1.0, %v6352_v17  ;;  %v2463_v52 = vadd.f32 1.0, %v6356_v30  ;;  %v2464_v8 = vadd.f32 1.0, %v6360_v14  ;;  %v2465_v11 = vadd.f32 1.0, %v6364_v0  ;;  %v8647_v0 = vld [vmem:[#allocation80_spill] sm:$0xff]  ;;  %v8648_v14 = vld [vmem:[#allocation81_spill] sm:$0xff] }
 0x27a   : > { %v6401_v36 = vmul.f32 %v2436_v7, %v8629_v20  ;;  %v6404_v42 = vmul.f32 %v2437_v24, %v8629_v20  ;;  %v6407_v49 = vmul.f32 %v2438_v28, %v8629_v20  ;;  %v6410_v13 = vmul.f32 %v2439_v18, %v8629_v20 }
 0x27b   : > { %v6413_v17 = vmul.f32 %v2440_v40, %v8629_v20  ;;  %v6416_v30 = vmul.f32 %v2441_v15, %v8629_v20  ;;  %v6419_v43 = vmul.f32 %v2442_v37, %v8629_v20  ;;  %vm2530_vm9 = vcmp.le.f32.partialorder %v2498_v3, %v8513_v39 }
 0x27c   : > { %vm2531_vm10 = vcmp.le.f32.partialorder %v2499_v32, %v8534_v59  ;;  %v6424_v7 = vmul.f32 %v2443_v16, %v8629_v20  ;;  %v6427_v24 = vmul.f32 %v2444_v1, %v8629_v20  ;;  %v6430_v28 = vmul.f32 %v2445_v6, %v8629_v20 }
 0x27d   : > { %v6433_v18 = vmul.f32 %v2446_v51, %v8629_v20  ;;  %v6436_v40 = vmul.f32 %v2447_v44, %v8629_v20  ;;  %v6439_v15 = vmul.f32 %v2448_v56, %v8629_v20  ;;  %v6442_v39 = vmul.f32 %v2449_v53, %v8629_v20  ;;  %v8639_v53 = vld [vmem:[#allocation48_spill] sm:$0xff] }
 0x27e   : > { %v6445_v59 = vmul.f32 %v2450_v33, %v8629_v20  ;;  %v6448_v3 = vmul.f32 %v2451_v29, %v8629_v20  ;;  %v6451_v32 = vmul.f32 %v2452_v12, %v8629_v20  ;;  %v8630_v37 = vmov 0.0  }
 0x27f   : > { %v3870_v16 = vsel %vm2530_vm9, 1.0, %v8630_v37  ;;  %v3871_v1 = vsel %vm2531_vm10, 1.0, %v8630_v37  ;;  %v6456_v6 = vmul.f32 %v2453_v25, %v8629_v20  ;;  %v6459_v51 = vmul.f32 %v2454_v46, %v8629_v20 }
 0x280   : > { %v6462_v44 = vmul.f32 %v2455_v61, %v8629_v20  ;;  %v6465_v33 = vmul.f32 %v2456_v31, %v8629_v20  ;;  %v6468_v29 = vmul.f32 %v2457_v60, %v8629_v20  ;;  %v6471_v12 = vmul.f32 %v2458_v35, %v8629_v20 }
 0x281   : > { %v6474_v56 = vmul.f32 %v2459_v27, %v8629_v20  ;;  %v6477_v25 = vmul.f32 %v2460_v41, %v8629_v20  ;;  %v6480_v46 = vmul.f32 %v2461_v2, %v8629_v20  ;;  %v6483_v61 = vmul.f32 %v2462_v54, %v8629_v20  ;;  %v8632_v27 = vld [vmem:[#allocation41_spill] sm:$0xff]  ;;  %v8633_v41 = vld [vmem:[#allocation47_spill] sm:$0xff] }
 0x282   : > { %v6486_v31 = vmul.f32 %v2463_v52, %v8629_v20  ;;  %v2496_v60 = vmul.f32 %v2464_v8, %v8629_v20  ;;  %v2497_v35 = vmul.f32 %v2465_v11, %v8629_v20  ;;  %vm2500_vm11 = vcmp.le.f32.partialorder %v6401_v36, %v5631_v45  ;;  %v8631_v20 = vld [vmem:[#allocation42_spill] sm:$0xff]  ;;  %v8636_v52 = vld [vmem:[#allocation44_spill] sm:$0xff]  ;;  %v8637_v8 = vld [vmem:[#allocation45_spill] sm:$0xff] }
 0x283   : > { %vm2501_vm12 = vcmp.le.f32.partialorder %v6404_v42, %v5635_v23  ;;  %vm2502_vm13 = vcmp.le.f32.partialorder %v6407_v49, %v5639_v4  ;;  %vm2503_vm14 = vcmp.le.f32.partialorder %v6410_v13, %v5643_v10  ;;  %vm2504_vm15 = vcmp.le.f32.partialorder %v6413_v17, %v5648_v55  ;;  %v8638_v11 = vld [vmem:[#allocation43_spill] sm:$0xff] }
 0x284   : > { %vm2505_vm7 = vcmp.le.f32.partialorder %v6416_v30, %v5652_v62  ;;  %vm2506_vm8 = vcmp.le.f32.partialorder %v6419_v43, %v5656_v47  ;;  %vm2507_vm0 = vcmp.le.f32.partialorder %v6424_v7, %v5660_v22  ;;  %v6525_v2 = vadd.f32 %v3870_v16, %v6340_v19  ;;  %v8641_v19 = vld [vmem:[#allocation49_spill] sm:$0xff]  ;;  %v8643_v16 = vld [vmem:[#allocation51_spill] sm:$0xff] }
 0x285   : > { %v6528_v54 = vadd.f32 %v3871_v1, %v6344_v26  ;;  %vm2522_vm4 = vcmp.le.f32.partialorder %v6471_v12, %v8641_v19  ;;  %v8642_v26 = vld [vmem:[#allocation50_spill] sm:$0xff]  ;;  %vm2524_vm5 = vcmp.le.f32.partialorder %v6477_v25, %v8643_v16  ;;  %v8644_v1 = vld [vmem:[#allocation52_spill] sm:$0xff]  ;;  %vm2528_vm2 = vcmp.le.f32.partialorder %v2496_v60, %v8647_v0  ;;  %v8672_v25 = vld [vmem:[#allocation109_spill] sm:$0xff] }
 0x286   : > { %8634 = vst [vmem:[#allocation110_spill] sm:$0xff] %v6525_v2  ;;  %vm2523_vm3 = vcmp.le.f32.partialorder %v6474_v56, %v8642_v26  ;;  %vm2525_vm6 = vcmp.le.f32.partialorder %v6480_v46, %v8644_v1  ;;  %v8646_v2 = vld [vmem:[#allocation79_spill] sm:$0xff]  ;;  %vm2529_vm1 = vcmp.le.f32.partialorder %v2497_v35, %v8648_v14  ;;  %v3840_v38 = vsel %vm2500_vm11, 1.0, %v8630_v37  ;;  %v8670_v12 = vld [vmem:[#allocation88_spill] sm:$0xff]  ;;  %v8673_v46 = vld [vmem:[#allocation89_spill] sm:$0xff] }
 0x287   : > { %8635 = vst [vmem:[#allocation111_spill] sm:$0xff] %v6528_v54  ;;  %v8645_v54 = vld [vmem:[#allocation53_spill] sm:$0xff]  ;;  %vm2527_vm10 = vcmp.le.f32.partialorder %v6486_v31, %v8646_v2  ;;  %v3841_v9 = vsel %vm2501_vm12, 1.0, %v8630_v37  ;;  %v3842_v5 = vsel %vm2502_vm13, 1.0, %v8630_v37  ;;  %v3843_v2 = vsel %vm2503_vm14, 1.0, %v8630_v37  ;;  %v8675_v60 = vld [vmem:[#allocation91_spill] sm:$0xff] }
 0x288   : > { %vm2526_vm9 = vcmp.le.f32.partialorder %v6483_v61, %v8645_v54  ;;  %v3844_v45 = vsel %vm2504_vm15, 1.0, %v8630_v37  ;;  %v3845_v23 = vsel %vm2505_vm7, 1.0, %v8630_v37  ;;  %v3846_v4 = vsel %vm2506_vm8, 1.0, %v8630_v37  ;;  %v8678_v54 = vld [vmem:[#allocation94_spill] sm:$0xff]  ;;  %v8684_v1 = vld [vmem:[#allocation97_spill] sm:$0xff]  ;;  %v8787_v16 = vld [vmem:[#allocation55_spill] sm:$0xff] }
 0x289   : > { %v3847_v10 = vsel %vm2507_vm0, 1.0, %v8630_v37  ;;  %vm8649_vm11 = vcmp.le.f32.partialorder %v6427_v24, %v5664_v21  ;;  %vm8650_vm12 = vcmp.le.f32.partialorder %v6430_v28, %v5668_v34  ;;  %vm8651_vm13 = vcmp.le.f32.partialorder %v6433_v18, %v5672_v57  ;;  %v8690_v18 = vld [vmem:[#allocation101_spill] sm:$0xff] }
 0x28a   : > { %v3848_v55 = vsel %vm8649_vm11, 1.0, %v8630_v37  ;;  %v3849_v62 = vsel %vm8650_vm12, 1.0, %v8630_v37  ;;  %v3850_v47 = vsel %vm8651_vm13, 1.0, %v8630_v37  ;;  %vm8652_vm14 = vcmp.le.f32.partialorder %v6436_v40, %v5676_v48  ;;  %v8664_v40 = vld [vmem:[#allocation82_spill] sm:$0xff] }
 0x28b   : > { %v3851_v22 = vsel %vm8652_vm14, 1.0, %v8630_v37  ;;  %vm8653_vm15 = vcmp.le.f32.partialorder %v6439_v15, %v5680_v63  ;;  %vm8654_vm7 = vcmp.le.f32.partialorder %v6442_v39, %v5684_v58  ;;  %vm8655_vm8 = vcmp.le.f32.partialorder %v6445_v59, %v8631_v20  ;;  %v8665_v39 = vld [vmem:[#allocation83_spill] sm:$0xff]  ;;  %v8666_v59 = vld [vmem:[#allocation84_spill] sm:$0xff] }
 0x28c   : > { %v3852_v21 = vsel %vm8653_vm15, 1.0, %v8630_v37  ;;  %v3853_v34 = vsel %vm8654_vm7, 1.0, %v8630_v37  ;;  %v3854_v57 = vsel %vm8655_vm8, 1.0, %v8630_v37  ;;  %vm8656_vm0 = vcmp.le.f32.partialorder %v6448_v3, %v8632_v27  ;;  %v8676_v20 = vld [vmem:[#allocation92_spill] sm:$0xff] }
 0x28d   : > { %v3855_v48 = vsel %vm8656_vm0, 1.0, %v8630_v37  ;;  %vm8657_vm11 = vcmp.le.f32.partialorder %v6451_v32, %v8633_v41  ;;  %vm8658_vm12 = vcmp.le.f32.partialorder %v6456_v6, %v8636_v52  ;;  %vm8659_vm13 = vcmp.le.f32.partialorder %v6459_v51, %v8637_v8  ;;  %v8667_v32 = vld [vmem:[#allocation85_spill] sm:$0xff]  ;;  %v8668_v51 = vld [vmem:[#allocation86_spill] sm:$0xff]  ;;  %v8679_v8 = vld [vmem:[#allocation95_spill] sm:$0xff] }
 0x28e   : > { %v3856_v63 = vsel %vm8657_vm11, 1.0, %v8630_v37  ;;  %v3857_v58 = vsel %vm8658_vm12, 1.0, %v8630_v37  ;;  %v3858_v36 = vsel %vm8659_vm13, 1.0, %v8630_v37  ;;  %vm8660_vm14 = vcmp.le.f32.partialorder %v6462_v44, %v8638_v11  ;;  %v8677_v41 = vld [vmem:[#allocation93_spill] sm:$0xff] }
 0x28f   : > { %v3859_v13 = vsel %vm8660_vm14, 1.0, %v8630_v37  ;;  %vm8661_vm15 = vcmp.le.f32.partialorder %v6465_v33, %v8639_v53  ;;  %vm8662_vm7 = vcmp.le.f32.partialorder %v6468_v29, %v8640_v50  ;;  %v3862_v30 = vsel %vm2522_vm4, 1.0, %v8630_v37  ;;  %v8669_v33 = vld [vmem:[#allocation87_spill] sm:$0xff]  ;;  %v8680_v53 = vld [vmem:[#allocation96_spill] sm:$0xff] }
 0x290   : > { %v3860_v43 = vsel %vm8661_vm15, 1.0, %v8630_v37  ;;  %v3861_v17 = vsel %vm8662_vm7, 1.0, %v8630_v37  ;;  %v3863_v42 = vsel %vm2523_vm3, 1.0, %v8630_v37  ;;  %v3864_v49 = vsel %vm2524_vm5, 1.0, %v8630_v37 }
 0x291   : > { %v3868_v50 = vsel %vm2528_vm2, 1.0, %v8630_v37  ;;  %v3869_v7 = vsel %vm2529_vm1, 1.0, %v8630_v37  ;;  %v3865_v24 = vsel %vm2525_vm6, 1.0, %v8630_v37  ;;  %v3866_v28 = vsel %vm2526_vm9, 1.0, %v8630_v37 }
 0x292   : > { %v3867_v0 = vsel %vm2527_vm10, 1.0, %v8630_v37  ;;  %v2596_v15 = vadd.f32 %v3840_v38, %v8664_v40  ;;  %v2597_v14 = vadd.f32 %v3841_v9, %v8665_v39  ;;  %v6675_v3 = vadd.f32 %v3842_v5, %v8666_v59  ;;  %v8671_v37 = vld [vmem:[#allocation115_spill] sm:$0xff]  ;;  %v8674_v5 = vld [vmem:[#allocation90_spill] sm:$0xff] }
 0x293   : > { %v6678_v6 = vadd.f32 %v3843_v2, %v8667_v32  ;;  %v6681_v44 = vadd.f32 %v3844_v45, %v8668_v51  ;;  %v6684_v29 = vadd.f32 %v3845_v23, %v8669_v33  ;;  %v6687_v56 = vadd.f32 %v3846_v4, %v8670_v12  ;;  %v8685_v23 = vld [vmem:[#allocation98_spill] sm:$0xff] }
 0x294   : > { %v2624_v38 = vadd.f32 %v3868_v50, %v8671_v37  ;;  %v2625_v9 = vadd.f32 %v3869_v7, %v8672_v25  ;;  %v6692_v61 = vadd.f32 %v3847_v10, %v8673_v46  ;;  %v6695_v31 = vadd.f32 %v3848_v55, %v8674_v5  ;;  %v8686_v10 = vld [vmem:[#allocation99_spill] sm:$0xff]  ;;  %v8695_v33 = vld [vmem:[#allocation106_spill] sm:$0xff] }
 0x295   : > { %v6698_v35 = vadd.f32 %v3849_v62, %v8675_v60  ;;  %v6701_v27 = vadd.f32 %v3850_v47, %v8676_v20  ;;  %v6704_v2 = vadd.f32 %v3851_v22, %v8677_v41  ;;  %v6707_v52 = vadd.f32 %v3852_v21, %v8678_v54  ;;  %v8687_v62 = vld [vmem:[#allocation100_spill] sm:$0xff]  ;;  %v8689_v50 = vld [vmem:[#allocation111_spill] sm:$0xff]  ;;  %v8698_v46 = vld [vmem:[#allocation114_spill] sm:$0xff] }
 0x296   : > { %v6710_v11 = vadd.f32 %v3853_v34, %v8679_v8  ;;  %v6713_v19 = vadd.f32 %v3854_v57, %v8680_v53  ;;  %v8681_v26 = vstv %s5579_s23  ;;  %v6722_v45 = vadd.f32 %v3855_v48, %v8684_v1  ;;  %v8688_v34 = vld [vmem:[#allocation110_spill] sm:$0xff]  ;;  %v8696_v25 = vld [vmem:[#allocation107_spill] sm:$0xff] }
 0x297   : > { %vm6717_vm1 = vcmp.eq.s32.totalorder %v8681_v26, 1  ;;  %v6725_v4 = vadd.f32 %v3856_v63, %v8685_v23  ;;  %v6728_v55 = vadd.f32 %v3857_v58, %v8686_v10  ;;  %v6731_v47 = vadd.f32 %v3858_v36, %v8687_v62  ;;  %v8691_v48 = vld [vmem:[#allocation102_spill] sm:$0xff]  ;;  %v8692_v63 = vld [vmem:[#allocation103_spill] sm:$0xff]  ;;  %v8693_v58 = vld [vmem:[#allocation104_spill] sm:$0xff] }
 0x298   : > { %v2656_v22 = vmax.f32 %v2624_v38, 0.0  ;;  %v2657_v21 = vmax.f32 %v2625_v9, 0.0  ;;  %v2658_v57 = vmax.f32 %v8688_v34, 0.0  ;;  %v2659_v7 = vmax.f32 %v8689_v50, 0.0  ;;  %v8694_v36 = vld [vmem:[#allocation105_spill] sm:$0xff]  ;;  %v8697_v9 = vld [vmem:[#allocation108_spill] sm:$0xff] }
 0x299   : > { %v6736_v40 = vadd.f32 %v3859_v13, %v8690_v18  ;;  %v6739_v39 = vadd.f32 %v3860_v43, %v8691_v48  ;;  %v6742_v59 = vadd.f32 %v3861_v17, %v8692_v63  ;;  %v6745_v32 = vadd.f32 %v3862_v30, %v8693_v58  ;;  %v8699_v41 = vld [vmem:[#allocation54_spill] sm:$0xff]  ;;  %v8705_v62 = vld [vmem:[#allocation37_spill] sm:$0xff]  ;;  %v8711_v18 = vld [vmem:[#allocation64_spill] sm:$0xff] }
 0x29a   : > { %v6748_v51 = vadd.f32 %v3863_v42, %v8694_v36  ;;  %v6751_v12 = vadd.f32 %v3864_v49, %v8695_v33  ;;  %v2628_v37 = vmax.f32 %v2596_v15, 0.0  ;;  %v2629_v38 = vmax.f32 %v2597_v14, 0.0  ;;  %v8700_v49 = vld [vmem:[#allocation77_spill] sm:$0xff]  ;;  %v8701_v15 = vld [vmem:[#allocation78_spill] sm:$0xff] }
 0x29b   : > { %v6754_v13 = vadd.f32 %v3865_v24, %v8696_v25  ;;  %v6757_v43 = vadd.f32 %v3866_v28, %v8697_v9  ;;  %v6760_v17 = vadd.f32 %v3867_v0, %v8698_v46  ;;  %v2630_v30 = vmax.f32 %v6675_v3, 0.0  ;;  %v8702_v3 = vld [vmem:[#allocation62_spill] sm:$0xff]  ;;  %v8712_v58 = vld [vmem:[#allocation9_spill] sm:$0xff] }
 0x29c   : > { %v2688_v5 = vmin.f32 %v2656_v22, 255.0  ;;  %v2689_v60 = vmin.f32 %v2657_v21, 255.0  ;;  %v2690_v42 = vmin.f32 %v2658_v57, 255.0  ;;  %v2691_v20 = vmin.f32 %v2659_v7, 255.0 }
 0x29d   : > { %vm2815_vm2 = vcmp.eq.bf16.partialorder %v8700_v49, %v8699_v41  ;;  %vm2816_vm3 = vcmp.eq.bf16.partialorder %v8701_v15, %v8699_v41  ;;  %v2631_v24 = vmax.f32 %v6678_v6, 0.0  ;;  %v2632_v28 = vmax.f32 %v6681_v44, 0.0 }
 0x29e   : > { %v2633_v14 = vmax.f32 %v6684_v29, 0.0  ;;  %v2634_v0 = vmax.f32 %v6687_v56, 0.0  ;;  %vm2801_vm4 = vcmp.eq.bf16.partialorder %v8702_v3, %v8699_v41  ;;  %v2635_v54 = vmax.f32 %v6692_v61, 0.0  ;;  %v8703_v29 = vld [vmem:[#allocation38_spill] sm:$0xff] }
 0x29f   : > { %v2636_v8 = vmax.f32 %v6695_v31, 0.0  ;;  %v2660_v53 = vmin.f32 %v2628_v37, 255.0  ;;  %v2661_v26 = vmin.f32 %v2629_v38, 255.0  ;;  %v2637_v1 = vmax.f32 %v6698_v35, 0.0  ;;  %v8707_v31 = vld [vmem:[#allocation40_spill] sm:$0xff] }
 0x2a0   : > { %v2638_v23 = vmax.f32 %v6701_v27, 0.0  ;;  %v2639_v6 = vmax.f32 %v6704_v2, 0.0  ;;  %v2640_v44 = vmax.f32 %v6707_v52, 0.0  ;;  %v8704_v10 = vcvt.s32.f32 %v8703_v29  ;;  %v8709_v27 = vld [vmem:[#allocation39_spill] sm:$0xff]  ;;  %v8714_v37 = vld [vmem:[#allocation12_spill] sm:$0xff] }
 0x2a1   : > { %v8706_v22 = vcvt.s32.f32 %v8705_v62  ;;  %v8708_v21 = vcvt.s32.f32 %v8707_v31  ;;  %v8710_v34 = vcvt.s32.f32 %v8709_v27  ;;  %v2641_v52 = vmax.f32 %v6710_v11, 0.0  ;;  %v8723_v31 = vld [vmem:[#allocation66_spill] sm:$0xff] }
 0x2a2   : > { %v2756_v56 = vsel %vm6717_vm1, %v8704_v10, %v2688_v5  ;;  %v2642_v57 = vmax.f32 %v6713_v19, 0.0  ;;  %v2643_v50 = vmax.f32 %v6722_v45, 0.0  ;;  %v2644_v7 = vmax.f32 %v6725_v4, 0.0  ;;  %v8724_v27 = vld [vmem:[#allocation14_spill] sm:$0xff] }
 0x2a3   : > { %v2757_v61 = vsel %vm6717_vm1, %v8706_v22, %v2689_v60  ;;  %v2758_v35 = vsel %vm6717_vm1, %v8708_v21, %v2690_v42  ;;  %v2759_v2 = vsel %vm6717_vm1, %v8710_v34, %v2691_v20  ;;  %vm2802_vm5 = vcmp.eq.bf16.partialorder %v8711_v18, %v8699_v41 }
 0x2a4   : > { %v2662_v48 = vmin.f32 %v2630_v30, 255.0  ;;  %v2663_v63 = vmin.f32 %v2631_v24, 255.0  ;;  %v8713_v36 = vcvt.s32.f32 %v8712_v58  ;;  %v8715_v38 = vcvt.s32.f32 %v8714_v37 }
 0x2a5   : > { %v2645_v19 = vmax.f32 %v6728_v55, 0.0  ;;  %v2646_v45 = vmax.f32 %v6731_v47, 0.0  ;;  %v6811_v4 = vpack.c.bf16 %v2757_v61, %v2756_v56  ;;  %v6813_v25 = vpack.c.bf16 %v2759_v2, %v2758_v35  ;;  %v8717_v47 = vld [vmem:[#allocation65_spill] sm:$0xff] }
 0x2a6   : > { %v2728_v33 = vsel %vm6717_vm1, %v8713_v36, %v2660_v53  ;;  %v2729_v11 = vsel %vm6717_vm1, %v8715_v38, %v2661_v26  ;;  %v2647_v9 = vmax.f32 %v6736_v40, 0.0  ;;  %v2648_v46 = vmax.f32 %v6739_v39, 0.0  ;;  %v8718_v40 = vld [vmem:[#allocation10_spill] sm:$0xff] }
 0x2a7   : > { %v2649_v30 = vmax.f32 %v6742_v59, 0.0  ;;  %v2650_v5 = vmax.f32 %v6745_v32, 0.0  ;;  %v2651_v60 = vmax.f32 %v6748_v51, 0.0  ;;  %v2652_v42 = vmax.f32 %v6751_v12, 0.0  ;;  %v8720_v59 = vld [vmem:[#allocation11_spill] sm:$0xff] }
 0x2a8   : > { %v2653_v55 = vmax.f32 %v6754_v13, 0.0  ;;  %v6822_v20 = vpack.c.bf16 %v2729_v11, %v2728_v33  ;;  %vm2803_vm6 = vcmp.eq.bf16.partialorder %v8717_v47, %v8699_v41  ;;  %v2664_v24 = vmin.f32 %v2632_v28, 255.0 }
 0x2a9   : > { %v2665_v53 = vmin.f32 %v2633_v14, 255.0  ;;  %v8719_v26 = vcvt.s32.f32 %v8718_v40  ;;  %v8721_v32 = vcvt.s32.f32 %v8720_v59  ;;  %v2654_v12 = vmax.f32 %v6757_v43, 0.0  ;;  %v8734_v59 = vld [vmem:[#allocation18_spill] sm:$0xff] }
 0x2aa   : > { %8716 = vst [vmem:[#allocation112_spill] sm:$0xff] %v6822_v20  ;;  %v2655_v13 = vmax.f32 %v6760_v17, 0.0  ;;  %v6840_v28 = vsel %vm2815_vm2, %v6811_v4, 0  ;;  %v6846_v14 = vsel %vm2816_vm3, %v6813_v25, 0  ;;  %v2666_v29 = vmin.f32 %v2634_v0, 255.0 }
 0x2ab   : > { %v2730_v39 = vsel %vm6717_vm1, %v8719_v26, %v2662_v48  ;;  %v2731_v51 = vsel %vm6717_vm1, %v8721_v32, %v2663_v63  ;;  %v2667_v10 = vmin.f32 %v2635_v54, 255.0  ;;  %v2668_v56 = vmin.f32 %v2636_v8, 255.0  ;;  %v8726_v54 = vld [vmem:[#allocation13_spill] sm:$0xff]  ;;  %v8728_v63 = vld [vmem:[#allocation56_spill] sm:$0xff] }
 0x2ac   : > { %v2669_v62 = vmin.f32 %v2637_v1, 255.0  ;;  %v2670_v22 = vmin.f32 %v2638_v23, 255.0  ;;  %v2671_v43 = vmin.f32 %v2639_v6, 255.0  ;;  %v6848_v61 = vpack.c.bf16 %v2731_v51, %v2730_v39  ;;  %v8736_v32 = vld [vmem:[#allocation17_spill] sm:$0xff] }
 0x2ad   : > { %v2817_v17 = vsel %vm2801_vm4, %v6822_v20, 0  ;;  %vm2804_vm9 = vcmp.eq.bf16.partialorder %v8723_v31, %v8699_v41  ;;  %v2672_v21 = vmin.f32 %v2640_v44, 255.0  ;;  %v2673_v35 = vmin.f32 %v2641_v52, 255.0 }
 0x2ae   : > { %8722 = vst [vmem:[#allocation113_spill] sm:$0xff] %v6848_v61  ;;  %v8725_v34 = vcvt.s32.f32 %v8724_v27  ;;  %v8727_v8 = vcvt.s32.f32 %v8726_v54  ;;  %v2674_v23 = vmin.f32 %v2642_v57, 255.0  ;;  %v2675_v6 = vmin.f32 %v2643_v50, 255.0  ;;  %v8729_v57 = vld [vmem:[#allocation67_spill] sm:$0xff] }
 0x2af   : > { %v2676_v2 = vmin.f32 %v2644_v7, 255.0  ;;  %v2677_v48 = vmin.f32 %v2645_v19, 255.0  ;;  %vm2910_vm10 = vcmp.eq.bf16.partialorder %v8702_v3, %v8728_v63  ;;  %v2678_v58 = vmin.f32 %v2646_v45, 255.0  ;;  %v8730_v19 = vld [vmem:[#allocation16_spill] sm:$0xff] }
 0x2b0   : > { %v2732_v0 = vsel %vm6717_vm1, %v8725_v34, %v2664_v24  ;;  %v2733_v1 = vsel %vm6717_vm1, %v8727_v8, %v2665_v53  ;;  %v2679_v44 = vmin.f32 %v2647_v9, 255.0  ;;  %v2833_v52 = vunpack.c.l.bf16 %v2817_v17  ;;  %v8732_v9 = vld [vmem:[#allocation15_spill] sm:$0xff]  ;;  %v8743_v8 = vld [vmem:[#allocation22_spill] sm:$0xff] }
 0x2b1   : > { %v2834_v36 = vunpack.c.h.bf16 %v2817_v17  ;;  %v2680_v33 = vmin.f32 %v2648_v46, 255.0  ;;  %v2681_v37 = vmin.f32 %v2649_v30, 255.0  ;;  %v6866_v38 = vpack.c.bf16 %v2733_v1, %v2732_v0 }
 0x2b2   : > { %v2818_v11 = vsel %vm2802_vm5, %v6848_v61, 0  ;;  %vm2805_vm8 = vcmp.eq.bf16.partialorder %v8729_v57, %v8699_v41  ;;  %v2682_v50 = vmin.f32 %v2650_v5, 255.0  ;;  %v2683_v7 = vmin.f32 %v2651_v60, 255.0 }
 0x2b3   : > { %v8731_v24 = vcvt.s32.f32 %v8730_v19  ;;  %v8733_v46 = vcvt.s32.f32 %v8732_v9  ;;  %v2684_v53 = vmin.f32 %v2652_v42, 255.0  ;;  %v2685_v40 = vmin.f32 %v2653_v55, 255.0 }
 0x2b4   : > { %v2686_v26 = vmin.f32 %v2654_v12, 255.0  ;;  %v2687_v39 = vmin.f32 %v2655_v13, 255.0  ;;  %vm2911_vm0 = vcmp.eq.bf16.partialorder %v8711_v18, %v8728_v63  ;;  %v8735_v5 = vcvt.s32.f32 %v8734_v59  ;;  %v8752_v59 = vld [vmem:[#allocation70_spill] sm:$0xff] }
 0x2b5   : > { %v2734_v45 = vsel %vm6717_vm1, %v8731_v24, %v2666_v29  ;;  %v2735_v30 = vsel %vm6717_vm1, %v8733_v46, %v2667_v10  ;;  %v8737_v51 = vcvt.s32.f32 %v8736_v32  ;;  %v2835_v17 = vunpack.c.l.bf16 %v2818_v11  ;;  %v8738_v10 = vld [vmem:[#allocation20_spill] sm:$0xff] }
 0x2b6   : > { %v2736_v60 = vsel %vm6717_vm1, %v8735_v5, %v2668_v56  ;;  %v2865_v27 = vadd.f32 %v2834_v36, %v2833_v52  ;;  %v8739_v42 = vcvt.s32.f32 %v8738_v10  ;;  %v6896_v12 = vpack.c.bf16 %v2735_v30, %v2734_v45  ;;  %v8740_v56 = vld [vmem:[#allocation68_spill] sm:$0xff]  ;;  %v8745_v36 = vld [vmem:[#allocation21_spill] sm:$0xff] }
 0x2b7   : > { %v2737_v29 = vsel %vm6717_vm1, %v8737_v51, %v2669_v62  ;;  %v2819_v13 = vsel %vm2803_vm6, %v6866_v38, 0  ;;  %vm2924_vm11 = vcmp.eq.bf16.partialorder %v8700_v49, %v8728_v63  ;;  %vm2806_vm12 = vcmp.eq.bf16.partialorder %v8740_v56, %v8699_v41  ;;  %v8741_v62 = vld [vmem:[#allocation19_spill] sm:$0xff]  ;;  %v8747_v45 = vld [vmem:[#allocation24_spill] sm:$0xff] }
 0x2b8   : > { %v2738_v55 = vsel %vm6717_vm1, %v8739_v42, %v2670_v22  ;;  %v8742_v34 = vcvt.s32.f32 %v8741_v62  ;;  %v2836_v54 = vunpack.c.h.bf16 %v2818_v11  ;;  %v2866_v22 = vadd.f32 %v2865_v27, %v2835_v17  ;;  %v8749_v11 = vld [vmem:[#allocation23_spill] sm:$0xff]  ;;  %v8755_v17 = vld [vmem:[#allocation25_spill] sm:$0xff] }
 0x2b9   : > { %vm2925_vm13 = vcmp.eq.bf16.partialorder %v8701_v15, %v8728_v63  ;;  %v8744_v1 = vcvt.s32.f32 %v8743_v8  ;;  %v8746_v19 = vcvt.s32.f32 %v8745_v36  ;;  %v8748_v9 = vcvt.s32.f32 %v8747_v45  ;;  %v8764_v45 = vld [vmem:[#allocation30_spill] sm:$0xff] }
 0x2ba   : > { %v2739_v0 = vsel %vm6717_vm1, %v8742_v34, %v2671_v43  ;;  %v8750_v46 = vcvt.s32.f32 %v8749_v11  ;;  %vm2912_vm14 = vcmp.eq.bf16.partialorder %v8717_v47, %v8728_v63  ;;  %vm2808_vm7 = vcmp.eq.bf16.partialorder %v8752_v59, %v8699_v41  ;;  %v8758_v34 = vld [vmem:[#allocation71_spill] sm:$0xff] }
 0x2bb   : > { %v2740_v52 = vsel %vm6717_vm1, %v8744_v1, %v2672_v21  ;;  %v2741_v24 = vsel %vm6717_vm1, %v8746_v19, %v2673_v35  ;;  %v2742_v43 = vsel %vm6717_vm1, %v8748_v9, %v2674_v23  ;;  %v8751_v21 = vld [vmem:[#allocation69_spill] sm:$0xff]  ;;  %v8753_v35 = vld [vmem:[#allocation26_spill] sm:$0xff]  ;;  %v2837_v23 = vunpack.c.l.bf16 %v2819_v13 }
 0x2bc   : > { %v2743_v30 = vsel %vm6717_vm1, %v8750_v46, %v2675_v6  ;;  %vm2807_vm15 = vcmp.eq.bf16.partialorder %v8751_v21, %v8699_v41  ;;  %v8754_v5 = vcvt.s32.f32 %v8753_v35  ;;  %v2867_v51 = vadd.f32 %v2866_v22, %v2836_v54  ;;  %v8759_v54 = vld [vmem:[#allocation72_spill] sm:$0xff]  ;;  %v8766_v46 = vld [vmem:[#allocation29_spill] sm:$0xff] }
 0x2bd   : > { %v6942_v6 = vsel %vm2924_vm11, %v6811_v4, 0  ;;  %v8756_v27 = vcvt.s32.f32 %v8755_v17  ;;  %v6948_v42 = vpack.c.bf16 %v2737_v29, %v2736_v60  ;;  %v6955_v62 = vsel %vm2925_vm13, %v6813_v25, 0  ;;  %v8760_v22 = vld [vmem:[#allocation28_spill] sm:$0xff]  ;;  %v8762_v60 = vld [vmem:[#allocation27_spill] sm:$0xff] }
 0x2be   : > { %v2744_v32 = vsel %vm6717_vm1, %v8754_v5, %v2676_v2  ;;  %v2820_v2 = vsel %vm2804_vm9, %v6896_v12, 0  ;;  %8757 = vst [vmem:[#allocation63_spill] sm:$0xff] %v6955_v62  ;;  %vm2809_vm2 = vcmp.eq.bf16.partialorder %v8758_v34, %v8699_v41  ;;  %vm2810_vm3 = vcmp.eq.bf16.partialorder %v8759_v54, %v8699_v41  ;;  %v8768_v17 = vld [vmem:[#allocation32_spill] sm:$0xff] }
 0x2bf   : > { %v2745_v10 = vsel %vm6717_vm1, %v8756_v27, %v2677_v48  ;;  %v8761_v8 = vcvt.s32.f32 %v8760_v22  ;;  %v8763_v29 = vcvt.s32.f32 %v8762_v60  ;;  %v2838_v36 = vunpack.c.h.bf16 %v2819_v13  ;;  %v8771_v13 = vld [vmem:[#allocation74_spill] sm:$0xff] }
 0x2c0   : > { %v2868_v19 = vadd.f32 %v2867_v51, %v2837_v23  ;;  %v8765_v9 = vcvt.s32.f32 %v8764_v45  ;;  %v8767_v35 = vcvt.s32.f32 %v8766_v46  ;;  %v8769_v27 = vcvt.s32.f32 %v8768_v17  ;;  %v8776_v45 = vld [vmem:[#allocation33_spill] sm:$0xff] }
 0x2c1   : > { %v2746_v48 = vsel %vm6717_vm1, %v8761_v8, %v2678_v58  ;;  %v2747_v1 = vsel %vm6717_vm1, %v8763_v29, %v2679_v44  ;;  %v2926_v44 = vsel %vm2910_vm10, %v6822_v20, 0  ;;  %vm2913_vm4 = vcmp.eq.bf16.partialorder %v8723_v31, %v8728_v63 }
 0x2c2   : > { %v2748_v11 = vsel %vm6717_vm1, %v8765_v9, %v2680_v33  ;;  %v2749_v5 = vsel %vm6717_vm1, %v8767_v35, %v2681_v37  ;;  %v2750_v58 = vsel %vm6717_vm1, %v8769_v27, %v2682_v50  ;;  %v8770_v33 = vld [vmem:[#allocation73_spill] sm:$0xff]  ;;  %vm2812_vm6 = vcmp.eq.bf16.partialorder %v8771_v13, %v8699_v41  ;;  %v8772_v37 = vld [vmem:[#allocation31_spill] sm:$0xff]  ;;  %v8774_v50 = vld [vmem:[#allocation34_spill] sm:$0xff] }
 0x2c3   : > { %vm2811_vm5 = vcmp.eq.bf16.partialorder %v8770_v33, %v8699_v41  ;;  %v8773_v23 = vcvt.s32.f32 %v8772_v37  ;;  %v8775_v22 = vcvt.s32.f32 %v8774_v50  ;;  %v2839_v60 = vunpack.c.l.bf16 %v2820_v2  ;;  %v8778_v35 = vld [vmem:[#allocation36_spill] sm:$0xff] }
 0x2c4   : > { %v2869_v29 = vadd.f32 %v2868_v19, %v2838_v36  ;;  %v8777_v9 = vcvt.s32.f32 %v8776_v45  ;;  %v8779_v17 = vcvt.s32.f32 %v8778_v35  ;;  %v7007_v37 = vpack.c.bf16 %v2739_v0, %v2738_v55  ;;  %v8782_v36 = vld [vmem:[#allocation76_spill] sm:$0xff] }
 0x2c5   : > { %v2751_v51 = vsel %vm6717_vm1, %v8773_v23, %v2683_v7  ;;  %v2752_v8 = vsel %vm6717_vm1, %v8775_v22, %v2684_v53  ;;  %v2821_v7 = vsel %vm2805_vm8, %v6948_v42, 0  ;;  %v8781_v53 = vld [vmem:[#allocation75_spill] sm:$0xff]  ;;  %vm2814_vm10 = vcmp.eq.bf16.partialorder %v8782_v36, %v8699_v41 }
 0x2c6   : > { %v2753_v46 = vsel %vm6717_vm1, %v8777_v9, %v2685_v40  ;;  %v2754_v27 = vsel %vm6717_vm1, %v8779_v17, %v2686_v26  ;;  %8780 = vst [vmem:[#allocation42_spill] sm:$0xff] %v7007_v37  ;;  %vm2813_vm9 = vcmp.eq.bf16.partialorder %v8781_v53, %v8699_v41  ;;  %v2840_v19 = vunpack.c.h.bf16 %v2820_v2  ;;  %v8783_v22 = vld [vmem:[#allocation35_spill] sm:$0xff] }
 0x2c7   : > { %v2870_v40 = vadd.f32 %v2869_v29, %v2839_v60  ;;  %v2942_v23 = vunpack.c.l.bf16 %v2926_v44  ;;  %v2943_v50 = vunpack.c.h.bf16 %v2926_v44  ;;  %v8784_v45 = vcvt.s32.f32 %v8783_v22 }
 0x2c8   : > { %v7021_v55 = vpack.c.bf16 %v2741_v24, %v2740_v52  ;;  %v7023_v0 = vpack.c.bf16 %v2743_v30, %v2742_v43  ;;  %v2927_v9 = vsel %vm2911_vm0, %v6848_v61, 0  ;;  %vm2914_vm8 = vcmp.eq.bf16.partialorder %v8729_v57, %v8728_v63 }
 0x2c9   : > { %v2755_v26 = vsel %vm6717_vm1, %v8784_v45, %v2687_v39  ;;  %v7031_v2 = vpack.c.bf16 %v2745_v10, %v2744_v32  ;;  %v7033_v44 = vpack.c.bf16 %v2747_v1, %v2746_v48  ;;  %v2841_v60 = vunpack.c.l.bf16 %v2821_v7 }
 0x2ca   : > { %v2871_v29 = vadd.f32 %v2870_v40, %v2840_v19  ;;  %vm3016_vm1 = vcmp.eq.bf16.partialorder %v8702_v3, %v8787_v16  ;;  %v7037_v39 = vpack.c.bf16 %v2749_v5, %v2748_v11  ;;  %v7039_v52 = vpack.c.bf16 %v2751_v51, %v2750_v58 }
 0x2cb   : > { %8785 = vst [vmem:[#allocation41_spill] sm:$0xff] %v7031_v2  ;;  %8786 = vst [vmem:[#allocation47_spill] sm:$0xff] %v7033_v44  ;;  %v7041_v24 = vpack.c.bf16 %v2753_v46, %v2752_v8  ;;  %v2822_v43 = vsel %vm2806_vm12, %v7007_v37, 0  ;;  %v2842_v30 = vunpack.c.h.bf16 %v2821_v7  ;;  %v2944_v10 = vunpack.c.l.bf16 %v2927_v9 }
 0x2cc   : > { %8788 = vst [vmem:[#allocation44_spill] sm:$0xff] %v7037_v39  ;;  %8789 = vst [vmem:[#allocation45_spill] sm:$0xff] %v7039_v52  ;;  %v2872_v32 = vadd.f32 %v2871_v29, %v2841_v60  ;;  %v2974_v48 = vadd.f32 %v2943_v50, %v2942_v23  ;;  %v7047_v1 = vpack.c.bf16 %v2755_v26, %v2754_v27  ;;  %v2823_v11 = vsel %vm2807_vm15, %v7021_v55, 0 }
 0x2cd   : > { %8790 = vst [vmem:[#allocation43_spill] sm:$0xff] %v7041_v24  ;;  %v2824_v5 = vsel %vm2808_vm7, %v7023_v0, 0  ;;  %v2928_v58 = vsel %vm2912_vm14, %v6866_v38, 0  ;;  %vm2915_vm0 = vcmp.eq.bf16.partialorder %v8740_v56, %v8728_v63  ;;  %v2843_v51 = vunpack.c.l.bf16 %v2822_v43 }
 0x2ce   : > { %8791 = vst [vmem:[#allocation48_spill] sm:$0xff] %v7047_v1  ;;  %v2873_v8 = vadd.f32 %v2872_v32, %v2842_v30  ;;  %v2945_v46 = vunpack.c.h.bf16 %v2927_v9  ;;  %v2975_v35 = vadd.f32 %v2974_v48, %v2944_v10  ;;  %vm3017_vm11 = vcmp.eq.bf16.partialorder %v8711_v18, %v8787_v16 }
 0x2cf   : > { %v7069_v17 = vsel %vm2809_vm2, %v7031_v2, 0  ;;  %v7075_v27 = vsel %vm2810_vm3, %v7033_v44, 0  ;;  %v2844_v7 = vunpack.c.h.bf16 %v2822_v43  ;;  %vm3030_vm12 = vcmp.eq.bf16.partialorder %v8700_v49, %v8787_v16 }
 0x2d0   : > { %v2874_v19 = vadd.f32 %v2873_v8, %v2843_v51  ;;  %v2946_v40 = vunpack.c.l.bf16 %v2928_v58  ;;  %v2976_v23 = vadd.f32 %v2975_v35, %v2945_v46  ;;  %vm3031_vm13 = vcmp.eq.bf16.partialorder %v8701_v15, %v8787_v16 }
 0x2d1   : > { %v7085_v50 = vsel %vm2811_vm5, %v7037_v39, 0  ;;  %v7091_v22 = vsel %vm2812_vm6, %v7039_v52, 0  ;;  %v2845_v45 = vunpack.c.l.bf16 %v2823_v11  ;;  %v2929_v26 = vsel %vm2913_vm4, %v6896_v12, 0 }
 0x2d2   : > { %vm2916_vm14 = vcmp.eq.bf16.partialorder %v8751_v21, %v8728_v63  ;;  %v2875_v9 = vadd.f32 %v2874_v19, %v2844_v7  ;;  %v2947_v60 = vunpack.c.h.bf16 %v2928_v58  ;;  %v2977_v29 = vadd.f32 %v2976_v23, %v2946_v40 }
 0x2d3   : > { %v7100_v43 = vsel %vm3030_vm12, %v6811_v4, 0  ;;  %vm3018_vm15 = vcmp.eq.bf16.partialorder %v8717_v47, %v8787_v16  ;;  %v7108_v30 = vsel %vm2813_vm9, %v7041_v24, 0  ;;  %v7114_v32 = vsel %vm2814_vm10, %v7047_v1, 0 }
 0x2d4   : > { %8792 = vst [vmem:[#allocation46_spill] sm:$0xff] %v7100_v43  ;;  %v2846_v10 = vunpack.c.h.bf16 %v2823_v11  ;;  %v7117_v48 = vsel %vm3031_vm13, %v6813_v25, 0  ;;  %v2847_v58 = vunpack.c.l.bf16 %v2824_v5  ;;  %v2876_v51 = vadd.f32 %v2875_v9, %v2845_v45 }
 0x2d5   : > { %8793 = vst [vmem:[#allocation49_spill] sm:$0xff] %v7117_v48  ;;  %v2948_v8 = vunpack.c.l.bf16 %v2929_v26  ;;  %v2978_v46 = vadd.f32 %v2977_v29, %v2947_v60  ;;  %vm2917_vm7 = vcmp.eq.bf16.partialorder %v8752_v59, %v8728_v63  ;;  %v2848_v35 = vunpack.c.h.bf16 %v2824_v5 }
 0x2d6   : > { %v2849_v7 = vunpack.c.l.bf16 %v7069_v17  ;;  %v2850_v19 = vunpack.c.h.bf16 %v7069_v17  ;;  %v2930_v41 = vsel %vm2914_vm8, %v6948_v42, 0  ;;  %vm2918_vm2 = vcmp.eq.bf16.partialorder %v8758_v34, %v8728_v63 }
 0x2d7   : > { %v2877_v11 = vadd.f32 %v2876_v51, %v2846_v10  ;;  %v2949_v40 = vunpack.c.h.bf16 %v2929_v26  ;;  %v2979_v23 = vadd.f32 %v2978_v46, %v2948_v8  ;;  %v3032_v5 = vsel %vm3016_vm1, %v6822_v20, 0 }
 0x2d8   : > { %vm3019_vm3 = vcmp.eq.bf16.partialorder %v8723_v31, %v8787_v16  ;;  %v2851_v17 = vunpack.c.l.bf16 %v7075_v27  ;;  %v2852_v45 = vunpack.c.h.bf16 %v7075_v27  ;;  %v2853_v9 = vunpack.c.l.bf16 %v7085_v50 }
 0x2d9   : > { %vm2919_vm4 = vcmp.eq.bf16.partialorder %v8759_v54, %v8728_v63  ;;  %v2878_v29 = vadd.f32 %v2877_v11, %v2847_v58  ;;  %v2950_v10 = vunpack.c.l.bf16 %v2930_v41  ;;  %v2980_v51 = vadd.f32 %v2979_v23, %v2949_v40 }
 0x2da   : > { %vm2920_vm5 = vcmp.eq.bf16.partialorder %v8770_v33, %v8728_v63  ;;  %v2931_v27 = vsel %vm2915_vm0, %v7007_v37, 0  ;;  %v3048_v46 = vunpack.c.l.bf16 %v3032_v5  ;;  %v3049_v60 = vunpack.c.h.bf16 %v3032_v5 }
 0x2db   : > { %v2879_v48 = vadd.f32 %v2878_v29, %v2848_v35  ;;  %v2951_v43 = vunpack.c.h.bf16 %v2930_v41  ;;  %v2981_v62 = vadd.f32 %v2980_v51, %v2950_v10  ;;  %v3033_v58 = vsel %vm3017_vm11, %v6848_v61, 0 }
 0x2dc   : > { %vm3020_vm6 = vcmp.eq.bf16.partialorder %v8729_v57, %v8787_v16  ;;  %vm2921_vm9 = vcmp.eq.bf16.partialorder %v8771_v13, %v8728_v63  ;;  %vm2922_vm10 = vcmp.eq.bf16.partialorder %v8781_v53, %v8728_v63  ;;  %v2952_v5 = vunpack.c.l.bf16 %v2931_v27 }
 0x2dd   : > { %v2880_v41 = vadd.f32 %v2879_v48, %v2849_v7  ;;  %v2982_v29 = vadd.f32 %v2981_v62, %v2951_v43  ;;  %vm2923_vm8 = vcmp.eq.bf16.partialorder %v8782_v36, %v8728_v63  ;;  %v2932_v51 = vsel %vm2916_vm14, %v7021_v55, 0 }
 0x2de   : > { %v3050_v8 = vunpack.c.l.bf16 %v3033_v58  ;;  %v3080_v23 = vadd.f32 %v3049_v60, %v3048_v46  ;;  %v2953_v35 = vunpack.c.h.bf16 %v2931_v27  ;;  %v3034_v62 = vsel %vm3018_vm15, %v6866_v38, 0  ;;  %v8794_v46 = vld [vmem:[#allocation57_spill] sm:$0xff] }
 0x2df   : > { %v2881_v40 = vadd.f32 %v2880_v41, %v2850_v19  ;;  %v2983_v48 = vadd.f32 %v2982_v29, %v2952_v5  ;;  %vm3021_vm1 = vcmp.eq.bf16.partialorder %v8740_v56, %v8787_v16  ;;  %v3051_v10 = vunpack.c.h.bf16 %v3033_v58 }
 0x2e0   : > { %v3081_v11 = vadd.f32 %v3080_v23, %v3050_v8  ;;  %v2933_v19 = vsel %vm2917_vm7, %v7023_v0, 0  ;;  %v2954_v60 = vunpack.c.l.bf16 %v2932_v51  ;;  %vm3122_vm0 = vcmp.eq.bf16.partialorder %v8702_v3, %v8794_v46 }
 0x2e1   : > { %v2882_v26 = vadd.f32 %v2881_v40, %v2851_v17  ;;  %v2984_v27 = vadd.f32 %v2983_v48, %v2953_v35  ;;  %v2934_v41 = vsel %vm2918_vm2, %v7031_v2, 0  ;;  %v2955_v5 = vunpack.c.h.bf16 %v2932_v51 }
 0x2e2   : > { %v3052_v29 = vunpack.c.l.bf16 %v3034_v62  ;;  %v3082_v58 = vadd.f32 %v3081_v11, %v3051_v10  ;;  %v3035_v40 = vsel %vm3019_vm3, %v6896_v12, 0  ;;  %vm3136_vm11 = vcmp.eq.bf16.partialorder %v8700_v49, %v8794_v46 }
 0x2e3   : > { %v2883_v8 = vadd.f32 %v2882_v26, %v2852_v45  ;;  %v2985_v17 = vadd.f32 %v2984_v27, %v2954_v60  ;;  %vm3022_vm12 = vcmp.eq.bf16.partialorder %v8751_v21, %v8787_v16  ;;  %v2935_v23 = vsel %vm2919_vm4, %v7033_v44, 0 }
 0x2e4   : > { %v3053_v35 = vunpack.c.h.bf16 %v3034_v62  ;;  %v3083_v11 = vadd.f32 %v3082_v58, %v3052_v29  ;;  %vm3137_vm13 = vcmp.eq.bf16.partialorder %v8701_v15, %v8794_v46  ;;  %v7207_v26 = vsel %vm2920_vm5, %v7037_v39, 0 }
 0x2e5   : > { %v2884_v45 = vadd.f32 %v2883_v8, %v2853_v9  ;;  %v2956_v10 = vunpack.c.l.bf16 %v2933_v19  ;;  %v2986_v51 = vadd.f32 %v2985_v17, %v2955_v5  ;;  %vm3123_vm14 = vcmp.eq.bf16.partialorder %v8711_v18, %v8794_v46 }
 0x2e6   : > { %v2957_v48 = vunpack.c.h.bf16 %v2933_v19  ;;  %v3054_v60 = vunpack.c.l.bf16 %v3035_v40  ;;  %v3084_v27 = vadd.f32 %v3083_v11, %v3053_v35  ;;  %v7212_v62 = vsel %vm3136_vm11, %v6811_v4, 0 }
 0x2e7   : > { %8795 = vst [vmem:[#allocation50_spill] sm:$0xff] %v7212_v62  ;;  %v8796_v29 = vunpack.c.h.bf16 %v7085_v50  ;;  %v2987_v58 = vadd.f32 %v2986_v51, %v2956_v10  ;;  %v3036_v8 = vsel %vm3020_vm6, %v6948_v42, 0  ;;  %v7221_v5 = vsel %vm3137_vm13, %v6813_v25, 0 }
 0x2e8   : > { %8797 = vst [vmem:[#allocation51_spill] sm:$0xff] %v7221_v5  ;;  %vm3023_vm15 = vcmp.eq.bf16.partialorder %v8752_v59, %v8787_v16  ;;  %v7229_v19 = vsel %vm2921_vm9, %v7039_v52, 0  ;;  %v7235_v50 = vsel %vm2922_vm10, %v7041_v24, 0  ;;  %v3055_v17 = vunpack.c.h.bf16 %v3035_v40 }
 0x2e9   : > { %v2885_v9 = vadd.f32 %v2884_v45, %v8796_v29  ;;  %v3085_v35 = vadd.f32 %v3084_v27, %v3054_v60  ;;  %v8798_v11 = vunpack.c.l.bf16 %v7091_v22  ;;  %v7243_v10 = vsel %vm2923_vm8, %v7047_v1, 0 }
 0x2ea   : > { %v2958_v51 = vunpack.c.l.bf16 %v2934_v41  ;;  %v2988_v29 = vadd.f32 %v2987_v58, %v2957_v48  ;;  %vm3124_vm7 = vcmp.eq.bf16.partialorder %v8717_v47, %v8794_v46  ;;  %v2959_v7 = vunpack.c.h.bf16 %v2934_v41 }
 0x2eb   : > { %v2886_v45 = vadd.f32 %v2885_v9, %v8798_v11  ;;  %v2960_v43 = vunpack.c.l.bf16 %v2935_v23  ;;  %v3056_v5 = vunpack.c.l.bf16 %v3036_v8  ;;  %v3086_v62 = vadd.f32 %v3085_v35, %v3055_v17 }
 0x2ec   : > { %v8799_v40 = vunpack.c.h.bf16 %v7091_v22  ;;  %v2961_v27 = vunpack.c.h.bf16 %v2935_v23  ;;  %v2989_v9 = vadd.f32 %v2988_v29, %v2958_v51  ;;  %v3037_v63 = vsel %vm3021_vm1, %v7007_v37, 0 }
 0x2ed   : > { %vm3024_vm2 = vcmp.eq.bf16.partialorder %v8758_v34, %v8787_v16  ;;  %v2962_v48 = vunpack.c.l.bf16 %v7207_v26  ;;  %v2963_v41 = vunpack.c.h.bf16 %v7207_v26  ;;  %v3057_v58 = vunpack.c.h.bf16 %v3036_v8 }
 0x2ee   : > { %v2887_v60 = vadd.f32 %v2886_v45, %v8799_v40  ;;  %v3087_v11 = vadd.f32 %v3086_v62, %v3056_v5  ;;  %v8800_v17 = vunpack.c.l.bf16 %v7108_v30  ;;  %v2964_v23 = vunpack.c.l.bf16 %v7229_v19 }
 0x2ef   : > { %v2990_v35 = vadd.f32 %v2989_v9, %v2959_v7  ;;  %v3138_v45 = vsel %vm3122_vm0, %v6822_v20, 0  ;;  %vm3125_vm3 = vcmp.eq.bf16.partialorder %v8723_v31, %v8794_v46  ;;  %vm3025_vm4 = vcmp.eq.bf16.partialorder %v8759_v54, %v8787_v16 }
 0x2f0   : > { %v2888_v22 = vadd.f32 %v2887_v60, %v8800_v17  ;;  %v2965_v26 = vunpack.c.h.bf16 %v7229_v19  ;;  %v2966_v62 = vunpack.c.l.bf16 %v7235_v50  ;;  %v3058_v8 = vunpack.c.l.bf16 %v3037_v63 }
 0x2f1   : > { %v3088_v5 = vadd.f32 %v3087_v11, %v3057_v58  ;;  %v8801_v51 = vunpack.c.h.bf16 %v7108_v30  ;;  %v2967_v29 = vunpack.c.h.bf16 %v7235_v50  ;;  %v2991_v40 = vadd.f32 %v2990_v35, %v2960_v43 }
 0x2f2   : > { %v3038_v60 = vsel %vm3022_vm12, %v7021_v55, 0  ;;  %v3059_v9 = vunpack.c.h.bf16 %v3037_v63  ;;  %v3154_v20 = vunpack.c.l.bf16 %v3138_v45  ;;  %v3155_v37 = vunpack.c.h.bf16 %v3138_v45 }
 0x2f3   : > { %v2889_v7 = vadd.f32 %v2888_v22, %v8801_v51  ;;  %v3089_v17 = vadd.f32 %v3088_v5, %v3058_v8  ;;  %v8802_v19 = vunpack.c.l.bf16 %v7114_v32  ;;  %v2968_v58 = vunpack.c.l.bf16 %v7243_v10 }
 0x2f4   : > { %v2992_v11 = vadd.f32 %v2991_v40, %v2961_v27  ;;  %v3139_v30 = vsel %vm3123_vm14, %v6848_v61, 0  ;;  %vm3126_vm5 = vcmp.eq.bf16.partialorder %v8729_v57, %v8794_v46  ;;  %v2969_v43 = vunpack.c.h.bf16 %v7243_v10 }
 0x2f5   : > { %v2890_v1 = vadd.f32 %v2889_v7, %v8802_v19  ;;  %v2970_v50 = vunpack.c.l.bf16 %v6942_v6  ;;  %v3060_v63 = vunpack.c.l.bf16 %v3038_v60  ;;  %v3090_v22 = vadd.f32 %v3089_v17, %v3059_v9  ;;  %v8805_v17 = vld [vmem:[#allocation63_spill] sm:$0xff] }
 0x2f6   : > { %v8803_v35 = vunpack.c.h.bf16 %v7114_v32  ;;  %v2993_v27 = vadd.f32 %v2992_v11, %v2962_v48  ;;  %v3039_v5 = vsel %vm3023_vm15, %v7023_v0, 0  ;;  %vm3026_vm6 = vcmp.eq.bf16.partialorder %v8770_v33, %v8787_v16 }
 0x2f7   : > { %vm3027_vm9 = vcmp.eq.bf16.partialorder %v8771_v13, %v8787_v16  ;;  %v3061_v51 = vunpack.c.h.bf16 %v3038_v60  ;;  %v3091_v7 = vadd.f32 %v3090_v22, %v3060_v63  ;;  %v3156_v40 = vunpack.c.l.bf16 %v3139_v30 }
 0x2f8   : > { %v2891_v45 = vadd.f32 %v2890_v1, %v8803_v35  ;;  %v3186_v9 = vadd.f32 %v3155_v37, %v3154_v20  ;;  %v8804_v1 = vunpack.c.l.bf16 %v6840_v28  ;;  %v2994_v19 = vadd.f32 %v2993_v27, %v2963_v41 }
 0x2f9   : > { %v3140_v11 = vsel %vm3124_vm7, %v6866_v38, 0  ;;  %vm3127_vm10 = vcmp.eq.bf16.partialorder %v8740_v56, %v8794_v46  ;;  %vm3028_vm8 = vcmp.eq.bf16.partialorder %v8781_v53, %v8787_v16  ;;  %v3062_v60 = vunpack.c.l.bf16 %v3039_v5 }
 0x2fa   : > { %v2892_v32 = vadd.f32 %v2891_v45, %v8804_v1  ;;  %v3092_v63 = vadd.f32 %v3091_v7, %v3061_v51  ;;  %v3157_v20 = vunpack.c.h.bf16 %v3139_v30  ;;  %v3187_v37 = vadd.f32 %v3186_v9, %v3156_v40 }
 0x2fb   : > { %v8806_v22 = vunpack.c.h.bf16 %v6840_v28  ;;  %v2995_v45 = vadd.f32 %v2994_v19, %v2964_v23  ;;  %vm3029_vm1 = vcmp.eq.bf16.partialorder %v8782_v36, %v8787_v16  ;;  %v3040_v41 = vsel %vm3024_vm2, %v7031_v2, 0 }
 0x2fc   : > { %v3063_v27 = vunpack.c.h.bf16 %v3039_v5  ;;  %v3093_v1 = vadd.f32 %v3092_v63, %v3062_v60  ;;  %v3158_v48 = vunpack.c.l.bf16 %v3140_v11  ;;  %v3188_v8 = vadd.f32 %v3187_v37, %v3157_v20  ;;  %v8809_v63 = vld [vmem:[#allocation58_spill] sm:$0xff] }
 0x2fd   : > { %v2893_v35 = vadd.f32 %v2892_v32, %v8806_v22  ;;  %v8807_v51 = vunpack.c.l.bf16 %v6846_v14  ;;  %v2996_v7 = vadd.f32 %v2995_v45, %v2965_v26  ;;  %v3041_v28 = vsel %vm3025_vm4, %v7033_v44, 0 }
 0x2fe   : > { %v3141_v23 = vsel %vm3125_vm3, %v6896_v12, 0  ;;  %vm3128_vm0 = vcmp.eq.bf16.partialorder %v8751_v21, %v8794_v46  ;;  %v3064_v5 = vunpack.c.l.bf16 %v3040_v41  ;;  %v3094_v40 = vadd.f32 %v3093_v1, %v3063_v27 }
 0x2ff   : > { %v2894_v30 = vadd.f32 %v2893_v35, %v8807_v51  ;;  %v3159_v9 = vunpack.c.h.bf16 %v3140_v11  ;;  %v3189_v32 = vadd.f32 %v3188_v8, %v3158_v48  ;;  %v8808_v19 = vunpack.c.h.bf16 %v6846_v14 }
 0x300   : > { %v2997_v60 = vadd.f32 %v2996_v7, %v2966_v62  ;;  %vm3242_vm11 = vcmp.eq.bf16.partialorder %v8700_v49, %v8809_v63  ;;  %vm3243_vm12 = vcmp.eq.bf16.partialorder %v8701_v15, %v8809_v63  ;;  %vm3228_vm13 = vcmp.eq.bf16.partialorder %v8702_v3, %v8809_v63 }
 0x301   : > { %v7332_v26 = vadd.f32 %v2894_v30, %v8808_v19  ;;  %v3065_v20 = vunpack.c.h.bf16 %v3040_v41  ;;  %v3095_v37 = vadd.f32 %v3094_v40, %v3064_v5  ;;  %v3160_v22 = vunpack.c.l.bf16 %v3141_v23 }
 0x302   : > { %v3190_v35 = vadd.f32 %v3189_v32, %v3159_v9  ;;  %v2998_v11 = vadd.f32 %v2997_v60, %v2967_v29  ;;  %v3066_v8 = vunpack.c.l.bf16 %v3041_v28  ;;  %v3142_v14 = vsel %vm3126_vm5, %v6948_v42, 0  ;;  %v8812_v32 = vld [vmem:[#allocation48_spill] sm:$0xff] }
 0x303   : > { %v3161_v62 = vunpack.c.h.bf16 %v3141_v23  ;;  %vm3129_vm14 = vcmp.eq.bf16.partialorder %v8752_v59, %v8794_v46  ;;  %v3096_v48 = vadd.f32 %v3095_v37, %v3065_v20  ;;  %v7347_v27 = vsel %vm3242_vm11, %v6811_v4, 0 }
 0x304   : > { %v3191_v45 = vadd.f32 %v3190_v35, %v3160_v22  ;;  %8810 = vst [vmem:[#allocation52_spill] sm:$0xff] %v7347_v27  ;;  %v7350_v41 = vsel %vm3243_vm12, %v6813_v25, 0  ;;  %v2973_v29 = vunpack.c.h.bf16 %v8805_v17  ;;  %v2999_v1 = vadd.f32 %v2998_v11, %v2968_v58 }
 0x305   : > { %8811 = vst [vmem:[#allocation53_spill] sm:$0xff] %v7350_v41  ;;  %v3042_v51 = vsel %vm3026_vm6, %v7037_v39, 0  ;;  %v3043_v30 = vsel %vm3027_vm9, %v7039_v52, 0  ;;  %vm3229_vm15 = vcmp.eq.bf16.partialorder %v8711_v18, %v8809_v63  ;;  %v3067_v7 = vunpack.c.h.bf16 %v3041_v28  ;;  %v8813_v28 = vld [vmem:[#allocation42_spill] sm:$0xff] }
 0x306   : > { %v3097_v23 = vadd.f32 %v3096_v48, %v3066_v8  ;;  %v3162_v5 = vunpack.c.l.bf16 %v3142_v14  ;;  %v3192_v40 = vadd.f32 %v3191_v45, %v3161_v62  ;;  %vm3130_vm7 = vcmp.eq.bf16.partialorder %v8758_v34, %v8794_v46 }
 0x307   : > { %v3000_v58 = vadd.f32 %v2999_v1, %v2969_v43  ;;  %v3044_v9 = vsel %vm3028_vm8, %v7041_v24, 0  ;;  %v7377_v19 = vsel %vm3029_vm1, %v8812_v32, 0  ;;  %v3143_v60 = vsel %vm3127_vm10, %v8813_v28, 0 }
 0x308   : > { %vm3131_vm2 = vcmp.eq.bf16.partialorder %v8759_v54, %v8794_v46  ;;  %vm3132_vm3 = vcmp.eq.bf16.partialorder %v8770_v33, %v8794_v46  ;;  %v3068_v10 = vunpack.c.l.bf16 %v3042_v51  ;;  %v3098_v43 = vadd.f32 %v3097_v23, %v3067_v7 }
 0x309   : > { %v3163_v20 = vunpack.c.h.bf16 %v3142_v14  ;;  %v3193_v37 = vadd.f32 %v3192_v40, %v3162_v5  ;;  %v3001_v16 = vadd.f32 %v3000_v58, %v2970_v50  ;;  %v3069_v22 = vunpack.c.h.bf16 %v3042_v51  ;;  %v8816_v40 = vld [vmem:[#allocation46_spill] sm:$0xff] }
 0x30a   : > { %v3070_v35 = vunpack.c.l.bf16 %v3043_v30  ;;  %v3071_v11 = vunpack.c.h.bf16 %v3043_v30  ;;  %vm3230_vm4 = vcmp.eq.bf16.partialorder %v8717_v47, %v8809_v63  ;;  %v3072_v8 = vunpack.c.l.bf16 %v3044_v9 }
 0x30b   : > { %v3099_v62 = vadd.f32 %v3098_v43, %v3068_v10  ;;  %v3164_v48 = vunpack.c.l.bf16 %v3143_v60  ;;  %v3194_v45 = vadd.f32 %v3193_v37, %v3163_v20  ;;  %v8814_v1 = vunpack.c.h.bf16 %v6942_v6  ;;  %v8817_v10 = vld [vmem:[#allocation112_spill] sm:$0xff]  ;;  %v8818_v20 = vld [vmem:[#allocation49_spill] sm:$0xff] }
 0x30c   : > { %v3073_v27 = vunpack.c.h.bf16 %v3044_v9  ;;  %v3074_v14 = vunpack.c.l.bf16 %v7377_v19  ;;  %v3144_v50 = vsel %vm3128_vm0, %v7021_v55, 0  ;;  %vm3231_vm5 = vcmp.eq.bf16.partialorder %v8723_v31, %v8809_v63 }
 0x30d   : > { %v3002_v41 = vadd.f32 %v3001_v16, %v8814_v1  ;;  %v3075_v51 = vunpack.c.h.bf16 %v7377_v19  ;;  %v3100_v30 = vadd.f32 %v3099_v62, %v3069_v22  ;;  %v3165_v7 = vunpack.c.h.bf16 %v3143_v60 }
 0x30e   : > { %v3195_v23 = vadd.f32 %v3194_v45, %v3164_v48  ;;  %v8815_v5 = vunpack.c.l.bf16 %v8805_v17  ;;  %v3076_v58 = vunpack.c.l.bf16 %v8816_v40  ;;  %v3077_v9 = vunpack.c.h.bf16 %v8816_v40 }
 0x30f   : > { %v3244_v43 = vsel %vm3228_vm13, %v8817_v10, 0  ;;  %v3101_v16 = vadd.f32 %v3100_v30, %v3070_v35  ;;  %v3166_v1 = vunpack.c.l.bf16 %v3144_v50  ;;  %vm3133_vm6 = vcmp.eq.bf16.partialorder %v8771_v13, %v8794_v46 }
 0x310   : > { %v3003_v6 = vadd.f32 %v3002_v41, %v8815_v5  ;;  %v3196_v19 = vadd.f32 %v3195_v23, %v3165_v7  ;;  %v3145_v17 = vsel %vm3129_vm14, %v7023_v0, 0  ;;  %v3167_v41 = vunpack.c.h.bf16 %v3144_v50 }
 0x311   : > { %v3102_v60 = vadd.f32 %v3101_v16, %v3071_v11  ;;  %v3260_v48 = vunpack.c.l.bf16 %v3244_v43  ;;  %v3261_v45 = vunpack.c.h.bf16 %v3244_v43  ;;  %vm3134_vm9 = vcmp.eq.bf16.partialorder %v8781_v53, %v8794_v46 }
 0x312   : > { %v7410_v22 = vadd.f32 %v3003_v6, %v2973_v29  ;;  %v3197_v62 = vadd.f32 %v3196_v19, %v3166_v1  ;;  %vm3135_vm10 = vcmp.eq.bf16.partialorder %v8782_v36, %v8794_v46  ;;  %v3245_v29 = vsel %vm3229_vm15, %v6848_v61, 0 }
 0x313   : > { %vm3232_vm8 = vcmp.eq.bf16.partialorder %v8729_v57, %v8809_v63  ;;  %v3103_v35 = vadd.f32 %v3102_v60, %v3072_v8  ;;  %v3146_v11 = vsel %vm3130_vm7, %v7031_v2, 0  ;;  %v3168_v50 = vunpack.c.l.bf16 %v3145_v17 }
 0x314   : > { %v3198_v30 = vadd.f32 %v3197_v62, %v3167_v41  ;;  %v3147_v7 = vsel %vm3131_vm2, %v7033_v44, 0  ;;  %v7441_v23 = vsel %vm3132_vm3, %v7037_v39, 0  ;;  %v7447_v8 = vsel %vm3133_vm6, %v7039_v52, 0 }
 0x315   : > { %v3169_v6 = vunpack.c.h.bf16 %v3145_v17  ;;  %v3104_v43 = vadd.f32 %v3103_v35, %v3073_v27  ;;  %v3262_v1 = vunpack.c.l.bf16 %v3245_v29  ;;  %v3292_v19 = vadd.f32 %v3261_v45, %v3260_v48 }
 0x316   : > { %v3199_v16 = vadd.f32 %v3198_v30, %v3168_v50  ;;  %v2896_v41 = vrot.slane %v7332_v26, 4  ;;  %v7454_v60 = vsel %vm3134_vm9, %v7041_v24, 0  ;;  %v3170_v62 = vunpack.c.l.bf16 %v3146_v11 }
 0x317   : > { %v3246_v5 = vsel %vm3230_vm4, %v6866_v38, 0  ;;  %vm3233_vm1 = vcmp.eq.bf16.partialorder %v8740_v56, %v8809_v63  ;;  %v3105_v27 = vadd.f32 %v3104_v43, %v3074_v14  ;;  %v3263_v48 = vunpack.c.h.bf16 %v3245_v29 }
 0x318   : > { %v3200_v17 = vadd.f32 %v3199_v16, %v3169_v6  ;;  %v3293_v45 = vadd.f32 %v3292_v19, %v3262_v1  ;;  %v7466_v35 = vsel %vm3135_vm10, %v8812_v32, 0  ;;  %v3171_v50 = vunpack.c.h.bf16 %v3146_v11  ;;  %v8819_v16 = vld [vmem:[#allocation60_spill] sm:$0xff] }
 0x319   : > { %v3172_v30 = vunpack.c.l.bf16 %v3147_v7  ;;  %v3247_v37 = vsel %vm3231_vm5, %v6896_v12, 0  ;;  %vm3234_vm0 = vcmp.eq.bf16.partialorder %v8751_v21, %v8809_v63  ;;  %v3106_v14 = vadd.f32 %v3105_v27, %v3075_v51 }
 0x31a   : > { %v3201_v6 = vadd.f32 %v3200_v17, %v3170_v62  ;;  %v3264_v29 = vunpack.c.l.bf16 %v3246_v5  ;;  %v3294_v43 = vadd.f32 %v3293_v45, %v3263_v48  ;;  %vm3334_vm11 = vcmp.eq.bf16.partialorder %v8702_v3, %v8819_v16 }
 0x31b   : > { %v2897_v46 = vadd.f32 %v2896_v41, %v7332_v26  ;;  %v3173_v1 = vunpack.c.h.bf16 %v3147_v7  ;;  %v3174_v11 = vunpack.c.l.bf16 %v7441_v23  ;;  %v3175_v19 = vunpack.c.h.bf16 %v7441_v23 }
 0x31c   : > { %vm3235_vm12 = vcmp.eq.bf16.partialorder %v8752_v59, %v8809_v63  ;;  %vm3236_vm13 = vcmp.eq.bf16.partialorder %v8758_v34, %v8809_v63  ;;  %vm3237_vm14 = vcmp.eq.bf16.partialorder %v8759_v54, %v8809_v63  ;;  %v3107_v51 = vadd.f32 %v3106_v14, %v3076_v58 }
 0x31d   : > { %v3202_v62 = vadd.f32 %v3201_v6, %v3171_v50  ;;  %v3265_v27 = vunpack.c.h.bf16 %v3246_v5  ;;  %v3295_v17 = vadd.f32 %v3294_v43, %v3264_v29  ;;  %v3176_v26 = vunpack.c.l.bf16 %v7447_v8 }
 0x31e   : > { %v3177_v7 = vunpack.c.h.bf16 %v7447_v8  ;;  %v3266_v41 = vunpack.c.l.bf16 %v3247_v37  ;;  %vm3348_vm15 = vcmp.eq.bf16.partialorder %v8700_v49, %v8819_v16  ;;  %vm3238_vm7 = vcmp.eq.bf16.partialorder %v8770_v33, %v8809_v63 }
 0x31f   : > { %v3108_v23 = vadd.f32 %v3107_v51, %v3077_v9  ;;  %v3203_v48 = vadd.f32 %v3202_v62, %v3172_v30  ;;  %v3296_v45 = vadd.f32 %v3295_v17, %v3265_v27  ;;  %vm3349_vm2 = vcmp.eq.bf16.partialorder %v8701_v15, %v8819_v16 }
 0x320   : > { %vm3335_vm3 = vcmp.eq.bf16.partialorder %v8711_v18, %v8819_v16  ;;  %v2898_v58 = vrot.slane %v2897_v46, 2  ;;  %v3178_v5 = vunpack.c.l.bf16 %v7454_v60  ;;  %v3248_v8 = vsel %vm3232_vm8, %v6948_v42, 0 }
 0x321   : > { %v3267_v50 = vunpack.c.h.bf16 %v3247_v37  ;;  %v8820_v40 = vunpack.c.l.bf16 %v8818_v20  ;;  %v3204_v30 = vadd.f32 %v3203_v48, %v3173_v1  ;;  %v3297_v14 = vadd.f32 %v3296_v45, %v3266_v41  ;;  %v8824_v41 = vld [vmem:[#allocation50_spill] sm:$0xff]  ;;  %v8825_v45 = vld [vmem:[#allocation51_spill] sm:$0xff] }
 0x322   : > { %v7505_v6 = vsel %vm3348_vm15, %v6811_v4, 0  ;;  %v3179_v29 = vunpack.c.h.bf16 %v7454_v60  ;;  %v3180_v43 = vunpack.c.l.bf16 %v7466_v35  ;;  %v7511_v62 = vsel %vm3349_vm2, %v6813_v25, 0 }
 0x323   : > { %v3109_v9 = vadd.f32 %v3108_v23, %v8820_v40  ;;  %8821 = vst [vmem:[#allocation80_spill] sm:$0xff] %v7505_v6  ;;  %8822 = vst [vmem:[#allocation81_spill] sm:$0xff] %v7511_v62  ;;  %v8823_v27 = vunpack.c.h.bf16 %v8818_v20  ;;  %v3205_v17 = vadd.f32 %v3204_v30, %v3174_v11  ;;  %v3268_v23 = vunpack.c.l.bf16 %v3248_v8 }
 0x324   : > { %v3298_v1 = vadd.f32 %v3297_v14, %v3267_v50  ;;  %vm3336_vm4 = vcmp.eq.bf16.partialorder %v8717_v47, %v8819_v16  ;;  %v3249_v51 = vsel %vm3233_vm1, %v8813_v28, 0  ;;  %v2899_v20 = vadd.f32 %v2898_v58, %v2897_v46 }
 0x325   : > { %v7515_v37 = vadd.f32 %v3109_v9, %v8823_v27  ;;  %v3206_v9 = vadd.f32 %v3205_v17, %v3175_v19  ;;  %v3269_v27 = vunpack.c.h.bf16 %v3248_v8  ;;  %vm3239_vm5 = vcmp.eq.bf16.partialorder %v8771_v13, %v8809_v63 }
 0x326   : > { %v3299_v11 = vadd.f32 %v3298_v1, %v3268_v23  ;;  %vm3240_vm6 = vcmp.eq.bf16.partialorder %v8781_v53, %v8809_v63  ;;  %v3250_v30 = vsel %vm3234_vm0, %v7021_v55, 0  ;;  %v3270_v40 = vunpack.c.l.bf16 %v3249_v51 }
 0x327   : > { %v3207_v14 = vadd.f32 %v3206_v9, %v3176_v26  ;;  %v3350_v46 = vsel %vm3334_vm11, %v8817_v10, 0  ;;  %vm3337_vm9 = vcmp.eq.bf16.partialorder %v8723_v31, %v8819_v16  ;;  %vm3241_vm10 = vcmp.eq.bf16.partialorder %v8782_v36, %v8809_v63 }
 0x328   : > { %v3300_v60 = vadd.f32 %v3299_v11, %v3269_v27  ;;  %v3251_v19 = vsel %vm3235_vm12, %v7023_v0, 0  ;;  %v7551_v26 = vsel %vm3236_vm13, %v7031_v2, 0  ;;  %v7557_v58 = vsel %vm3237_vm14, %v7033_v44, 0 }
 0x329   : > { %v2900_v8 = vrot.slane %v2899_v20, 1  ;;  %v3208_v17 = vadd.f32 %v3207_v14, %v3177_v7  ;;  %v3271_v23 = vunpack.c.h.bf16 %v3249_v51  ;;  %v7563_v9 = vsel %vm3238_vm7, %v7037_v39, 0 }
 0x32a   : > { %v3301_v1 = vadd.f32 %v3300_v60, %v3270_v40  ;;  %v3272_v27 = vunpack.c.l.bf16 %v3250_v30  ;;  %v3366_v11 = vunpack.c.l.bf16 %v3350_v46  ;;  %v3367_v50 = vunpack.c.h.bf16 %v3350_v46 }
 0x32b   : > { %v3005_v48 = vrot.slane %v7410_v22, 4  ;;  %v3209_v62 = vadd.f32 %v3208_v17, %v3178_v5  ;;  %v3351_v7 = vsel %vm3335_vm3, %v6848_v61, 0  ;;  %vm3338_vm8 = vcmp.eq.bf16.partialorder %v8729_v57, %v8819_v16 }
 0x32c   : > { %v3302_v6 = vadd.f32 %v3301_v1, %v3271_v23  ;;  %v7576_v51 = vsel %vm3239_vm5, %v7039_v52, 0  ;;  %v7582_v5 = vsel %vm3240_vm6, %v7041_v24, 0  ;;  %v7588_v60 = vsel %vm3241_vm10, %v8812_v32, 0 }
 0x32d   : > { %v3273_v40 = vunpack.c.h.bf16 %v3250_v30  ;;  %v7590_v14 = vadd.f32 %v2900_v8, %v2899_v20  ;;  %v3210_v46 = vadd.f32 %v3209_v62, %v3179_v29  ;;  %v3274_v17 = vunpack.c.l.bf16 %v3251_v19 }
 0x32e   : > { %v3303_v23 = vadd.f32 %v3302_v6, %v3272_v27  ;;  %v3275_v1 = vunpack.c.h.bf16 %v3251_v19  ;;  %v3276_v61 = vunpack.c.l.bf16 %v7551_v26  ;;  %v3368_v52 = vunpack.c.l.bf16 %v3351_v7 }
 0x32f   : > { %8826 = vst [vmem:[#allocation79_spill] sm:$0xff] %v7590_v14  ;;  %v3398_v39 = vadd.f32 %v3367_v50, %v3366_v11  ;;  %v3006_v24 = vadd.f32 %v3005_v48, %v7410_v22  ;;  %v3211_v44 = vadd.f32 %v3210_v46, %v3180_v43  ;;  %v3352_v63 = vsel %vm3336_vm4, %v6866_v38, 0 }
 0x330   : > { %v3304_v2 = vadd.f32 %v3303_v23, %v3273_v40  ;;  %vm3339_vm1 = vcmp.eq.bf16.partialorder %v8740_v56, %v8819_v16  ;;  %v3277_v29 = vunpack.c.h.bf16 %v7551_v26  ;;  %v3278_v6 = vunpack.c.l.bf16 %v7557_v58 }
 0x331   : > { %v3369_v62 = vunpack.c.h.bf16 %v3351_v7  ;;  %v3399_v20 = vadd.f32 %v3398_v39, %v3368_v52  ;;  %v8827_v22 = vunpack.c.h.bf16 %v7466_v35  ;;  %v3279_v48 = vunpack.c.h.bf16 %v7557_v58 }
 0x332   : > { %v3305_v30 = vadd.f32 %v3304_v2, %v3274_v17  ;;  %v3280_v19 = vunpack.c.l.bf16 %v7563_v9  ;;  %v3281_v8 = vunpack.c.h.bf16 %v7563_v9  ;;  %v3370_v27 = vunpack.c.l.bf16 %v3352_v63  ;;  %v8829_v2 = vld [vmem:[#allocation59_spill] sm:$0xff] }
 0x333   : > { %v3212_v43 = vadd.f32 %v3211_v44, %v8827_v22  ;;  %v3400_v11 = vadd.f32 %v3399_v20, %v3369_v62  ;;  %vm3340_vm0 = vcmp.eq.bf16.partialorder %v8751_v21, %v8819_v16  ;;  %v3007_v26 = vrot.slane %v3006_v24, 2 }
 0x334   : > { %v8828_v39 = vunpack.c.l.bf16 %v8824_v41  ;;  %v3306_v7 = vadd.f32 %v3305_v30, %v3275_v1  ;;  %v3353_v44 = vsel %vm3337_vm9, %v6896_v12, 0  ;;  %vm3440_vm11 = vcmp.eq.bf16.partialorder %v8702_v3, %v8829_v2 }
 0x335   : > { %v3282_v35 = vunpack.c.l.bf16 %v7576_v51  ;;  %v3283_v58 = vunpack.c.h.bf16 %v7576_v51  ;;  %v3371_v9 = vunpack.c.h.bf16 %v3352_v63  ;;  %v3401_v40 = vadd.f32 %v3400_v11, %v3370_v27 }
 0x336   : > { %v3213_v52 = vadd.f32 %v3212_v43, %v8828_v39  ;;  %vm3341_vm12 = vcmp.eq.bf16.partialorder %v8752_v59, %v8819_v16  ;;  %vm3342_vm13 = vcmp.eq.bf16.partialorder %v8758_v34, %v8819_v16  ;;  %v8830_v46 = vunpack.c.h.bf16 %v8824_v41 }
 0x337   : > { %v3307_v23 = vadd.f32 %v3306_v7, %v3276_v61  ;;  %vm3454_vm14 = vcmp.eq.bf16.partialorder %v8700_v49, %v8829_v2  ;;  %vm3455_vm15 = vcmp.eq.bf16.partialorder %v8701_v15, %v8829_v2  ;;  %vm3343_vm7 = vcmp.eq.bf16.partialorder %v8759_v54, %v8819_v16 }
 0x338   : > { %v3214_v17 = vadd.f32 %v3213_v52, %v8830_v46  ;;  %v3284_v1 = vunpack.c.l.bf16 %v7582_v5  ;;  %v3372_v62 = vunpack.c.l.bf16 %v3353_v44  ;;  %v3402_v20 = vadd.f32 %v3401_v40, %v3371_v9  ;;  %v8835_v46 = vld [vmem:[#allocation52_spill] sm:$0xff] }
 0x339   : > { %v3008_v22 = vadd.f32 %v3007_v26, %v3006_v24  ;;  %v8831_v41 = vunpack.c.l.bf16 %v8825_v45  ;;  %v3308_v61 = vadd.f32 %v3307_v23, %v3277_v29  ;;  %v3354_v30 = vsel %vm3338_vm8, %v6948_v42, 0 }
 0x33a   : > { %vm3441_vm2 = vcmp.eq.bf16.partialorder %v8711_v18, %v8829_v2  ;;  %v3373_v27 = vunpack.c.h.bf16 %v3353_v44  ;;  %v3403_v11 = vadd.f32 %v3402_v20, %v3372_v62  ;;  %v7644_v39 = vsel %vm3454_vm14, %v6811_v4, 0 }
 0x33b   : > { %v3215_v43 = vadd.f32 %v3214_v17, %v8831_v41  ;;  %8832 = vst [vmem:[#allocation82_spill] sm:$0xff] %v7644_v39  ;;  %v7647_v52 = vsel %vm3455_vm15, %v6813_v25, 0  ;;  %v8834_v24 = vunpack.c.h.bf16 %v8825_v45  ;;  %v3309_v9 = vadd.f32 %v3308_v61, %v3278_v6 }
 0x33c   : > { %8833 = vst [vmem:[#allocation83_spill] sm:$0xff] %v7647_v52  ;;  %v3111_v40 = vrot.slane %v7515_v37, 4  ;;  %v3374_v17 = vunpack.c.l.bf16 %v3354_v30  ;;  %v3404_v23 = vadd.f32 %v3403_v11, %v3373_v27  ;;  %v3009_v62 = vrot.slane %v3008_v22, 1 }
 0x33d   : > { %v7651_v26 = vadd.f32 %v3215_v43, %v8834_v24  ;;  %v3310_v41 = vadd.f32 %v3309_v9, %v3279_v48  ;;  %v3355_v45 = vsel %vm3339_vm1, %v8813_v28, 0  ;;  %vm3442_vm3 = vcmp.eq.bf16.partialorder %v8717_v47, %v8829_v2  ;;  %v8836_v43 = vld [vmem:[#allocation53_spill] sm:$0xff] }
 0x33e   : > { %v3375_v24 = vunpack.c.h.bf16 %v3354_v30  ;;  %v3405_v50 = vadd.f32 %v3404_v23, %v3374_v17  ;;  %vm3344_vm4 = vcmp.eq.bf16.partialorder %v8770_v33, %v8819_v16  ;;  %vm3345_vm5 = vcmp.eq.bf16.partialorder %v8771_v13, %v8819_v16  ;;  %v8838_v23 = vld [vmem:[#allocation47_spill] sm:$0xff] }
 0x33f   : > { %v3311_v44 = vadd.f32 %v3310_v41, %v3280_v19  ;;  %vm3346_vm6 = vcmp.eq.bf16.partialorder %v8781_v53, %v8819_v16  ;;  %v3112_v48 = vadd.f32 %v3111_v40, %v7515_v37  ;;  %v3356_v27 = vsel %vm3340_vm0, %v7021_v55, 0  ;;  %v8839_v41 = vld [vmem:[#allocation44_spill] sm:$0xff] }
 0x340   : > { %v3376_v11 = vunpack.c.l.bf16 %v3355_v45  ;;  %v3406_v30 = vadd.f32 %v3405_v50, %v3375_v24  ;;  %v7677_v9 = vadd.f32 %v3009_v62, %v3008_v22  ;;  %vm3347_vm9 = vcmp.eq.bf16.partialorder %v8782_v36, %v8819_v16  ;;  %v8837_v50 = vld [vmem:[#allocation41_spill] sm:$0xff] }
 0x341   : > { %v3312_v19 = vadd.f32 %v3311_v44, %v3281_v8  ;;  %v3456_v17 = vsel %vm3440_vm11, %v8817_v10, 0  ;;  %vm3443_vm10 = vcmp.eq.bf16.partialorder %v8723_v31, %v8829_v2  ;;  %v3357_v37 = vsel %vm3341_vm12, %v7023_v0, 0 }
 0x342   : > { %v7695_v8 = vsel %vm3342_vm13, %v8837_v50, 0  ;;  %v3377_v22 = vunpack.c.h.bf16 %v3355_v45  ;;  %v3407_v40 = vadd.f32 %v3406_v30, %v3376_v11  ;;  %v7701_v62 = vsel %vm3343_vm7, %v8838_v23, 0  ;;  %v8840_v11 = vld [vmem:[#allocation45_spill] sm:$0xff] }
 0x343   : > { %v3313_v44 = vadd.f32 %v3312_v19, %v3282_v35  ;;  %v7707_v24 = vsel %vm3344_vm4, %v8839_v41, 0  ;;  %v3378_v61 = vunpack.c.l.bf16 %v3356_v27  ;;  %v3113_v6 = vrot.slane %v3112_v48, 2  ;;  %v8841_v19 = vld [vmem:[#allocation113_spill] sm:$0xff] }
 0x344   : > { %v3408_v20 = vadd.f32 %v3407_v40, %v3377_v22  ;;  %v3472_v7 = vunpack.c.l.bf16 %v3456_v17  ;;  %v3473_v29 = vunpack.c.h.bf16 %v3456_v17  ;;  %vm3444_vm8 = vcmp.eq.bf16.partialorder %v8729_v57, %v8829_v2  ;;  %v8842_v22 = vld [vmem:[#allocation43_spill] sm:$0xff] }
 0x345   : > { %v3314_v45 = vadd.f32 %v3313_v44, %v3283_v58  ;;  %v7719_v30 = vsel %vm3345_vm5, %v8840_v11, 0  ;;  %v3457_v17 = vsel %vm3441_vm2, %v8841_v19, 0  ;;  %v7729_v40 = vsel %vm3346_vm6, %v8842_v22, 0 }
 0x346   : > { %v7735_v51 = vsel %vm3347_vm9, %v8812_v32, 0  ;;  %v3379_v58 = vunpack.c.h.bf16 %v3356_v27  ;;  %v3409_v44 = vadd.f32 %v3408_v20, %v3378_v61  ;;  %v3380_v63 = vunpack.c.l.bf16 %v3357_v37 }
 0x347   : > { %v3315_v35 = vadd.f32 %v3314_v45, %v3284_v1  ;;  %v3381_v52 = vunpack.c.h.bf16 %v3357_v37  ;;  %v3382_v39 = vunpack.c.l.bf16 %v7695_v8  ;;  %v3114_v11 = vadd.f32 %v3113_v6, %v3112_v48  ;;  %v8845_v37 = vld [vmem:[#allocation61_spill] sm:$0xff] }
 0x348   : > { %v3410_v41 = vadd.f32 %v3409_v44, %v3379_v58  ;;  %v3474_v53 = vunpack.c.l.bf16 %v3457_v17  ;;  %v3504_v22 = vadd.f32 %v3473_v29, %v3472_v7  ;;  %v3217_v13 = vrot.slane %v7651_v26, 4 }
 0x349   : > { %v8843_v14 = vunpack.c.h.bf16 %v7582_v5  ;;  %v3383_v32 = vunpack.c.h.bf16 %v7695_v8  ;;  %v3458_v1 = vsel %vm3442_vm3, %v6866_v38, 0  ;;  %vm3445_vm1 = vcmp.eq.bf16.partialorder %v8740_v56, %v8829_v2 }
 0x34a   : > { %v3384_v20 = vunpack.c.l.bf16 %v7701_v62  ;;  %v3411_v6 = vadd.f32 %v3410_v41, %v3380_v63  ;;  %v3475_v61 = vunpack.c.h.bf16 %v3457_v17  ;;  %v3505_v29 = vadd.f32 %v3504_v22, %v3474_v53 }
 0x34b   : > { %v3316_v16 = vadd.f32 %v3315_v35, %v8843_v14  ;;  %v8844_v7 = vunpack.c.l.bf16 %v7588_v60  ;;  %v3385_v5 = vunpack.c.h.bf16 %v7701_v62  ;;  %v3386_v14 = vunpack.c.l.bf16 %v7707_v24 }
 0x34c   : > { %v3387_v27 = vunpack.c.h.bf16 %v7707_v24  ;;  %vm3546_vm0 = vcmp.eq.bf16.partialorder %v8702_v3, %v8845_v37  ;;  %vm3446_vm11 = vcmp.eq.bf16.partialorder %v8751_v21, %v8829_v2  ;;  %vm3447_vm12 = vcmp.eq.bf16.partialorder %v8752_v59, %v8829_v2 }
 0x34d   : > { %v3317_v48 = vadd.f32 %v3316_v16, %v8844_v7  ;;  %v3115_v63 = vrot.slane %v3114_v11, 1  ;;  %v3412_v53 = vadd.f32 %v3411_v6, %v3381_v52  ;;  %v3476_v8 = vunpack.c.l.bf16 %v3458_v1 }
 0x34e   : > { %v3506_v41 = vadd.f32 %v3505_v29, %v3475_v61  ;;  %vm3448_vm13 = vcmp.eq.bf16.partialorder %v8758_v34, %v8829_v2  ;;  %v3218_v62 = vadd.f32 %v3217_v13, %v7651_v26  ;;  %v8846_v24 = vunpack.c.h.bf16 %v7588_v60 }
 0x34f   : > { %v3459_v45 = vsel %vm3443_vm10, %v6896_v12, 0  ;;  %v3477_v17 = vunpack.c.h.bf16 %v3458_v1  ;;  %vm3547_vm14 = vcmp.eq.bf16.partialorder %v8711_v18, %v8845_v37  ;;  %v3413_v52 = vadd.f32 %v3412_v53, %v3382_v39 }
 0x350   : > { %v3318_v35 = vadd.f32 %v3317_v48, %v8846_v24  ;;  %v3507_v22 = vadd.f32 %v3506_v41, %v3476_v8  ;;  %vm3560_vm15 = vcmp.eq.bf16.partialorder %v8700_v49, %v8845_v37  ;;  %vm3561_vm7 = vcmp.eq.bf16.partialorder %v8701_v15, %v8845_v37 }
 0x351   : > { %v8847_v13 = vunpack.c.l.bf16 %v8835_v46  ;;  %v3388_v26 = vunpack.c.l.bf16 %v7719_v30  ;;  %v3389_v58 = vunpack.c.h.bf16 %v7719_v30  ;;  %v3390_v44 = vunpack.c.l.bf16 %v7729_v40 }
 0x352   : > { %v3414_v16 = vadd.f32 %v3413_v52, %v3383_v32  ;;  %v3460_v39 = vsel %vm3444_vm8, %v6948_v42, 0  ;;  %v3478_v1 = vunpack.c.l.bf16 %v3459_v45  ;;  %v3508_v49 = vadd.f32 %v3507_v22, %v3477_v17 }
 0x353   : > { %v3319_v60 = vadd.f32 %v3318_v35, %v8847_v13  ;;  %v3219_v6 = vrot.slane %v3218_v62, 2  ;;  %v8848_v15 = vunpack.c.h.bf16 %v8835_v46  ;;  %v7789_v29 = vsel %vm3560_vm15, %v6811_v4, 0  ;;  %v8850_v35 = vld [vmem:[#allocation80_spill] sm:$0xff] }
 0x354   : > { %v7792_v7 = vsel %vm3561_vm7, %v6813_v25, 0  ;;  %vm3548_vm2 = vcmp.eq.bf16.partialorder %v8717_v47, %v8845_v37  ;;  %v7796_v32 = vadd.f32 %v3115_v63, %v3114_v11  ;;  %v3415_v30 = vadd.f32 %v3414_v16, %v3384_v20 }
 0x355   : > { %v3320_v61 = vadd.f32 %v3319_v60, %v8848_v15  ;;  %v3479_v48 = vunpack.c.h.bf16 %v3459_v45  ;;  %v3509_v53 = vadd.f32 %v3508_v49, %v3478_v1  ;;  %v8849_v8 = vunpack.c.l.bf16 %v8836_v43 }
 0x356   : > { %v3391_v46 = vunpack.c.h.bf16 %v7729_v40  ;;  %v3392_v24 = vunpack.c.l.bf16 %v7735_v51  ;;  %v3393_v4 = vunpack.c.h.bf16 %v7735_v51  ;;  %v3394_v25 = vunpack.c.l.bf16 %v8850_v35  ;;  %v8856_v51 = vld [vmem:[#allocation74_spill] sm:$0xff] }
 0x357   : > { %v3321_v41 = vadd.f32 %v3320_v61, %v8849_v8  ;;  %v3416_v17 = vadd.f32 %v3415_v30, %v3385_v5  ;;  %v3480_v52 = vunpack.c.l.bf16 %v3460_v39  ;;  %v3510_v22 = vadd.f32 %v3509_v53, %v3479_v48 }
 0x358   : > { %v3220_v13 = vadd.f32 %v3219_v6, %v3218_v62  ;;  %v8851_v11 = vunpack.c.h.bf16 %v8836_v43  ;;  %vm3449_vm3 = vcmp.eq.bf16.partialorder %v8759_v54, %v8829_v2  ;;  %v3461_v40 = vsel %vm3445_vm1, %v8813_v28, 0 }
 0x359   : > { %v3117_v63 = vpack.c.bf16 %v7796_v32, %v7796_v32  ;;  %v3417_v45 = vadd.f32 %v3416_v17, %v3386_v14  ;;  %v3481_v60 = vunpack.c.h.bf16 %v3460_v39  ;;  %v3511_v5 = vadd.f32 %v3510_v22, %v3480_v52 }
 0x35a   : > { %v3322_v20 = vadd.f32 %v3321_v41, %v8851_v11  ;;  %v3462_v43 = vsel %vm3446_vm11, %v7021_v55, 0  ;;  %v3463_v62 = vsel %vm3447_vm12, %v7023_v0, 0  ;;  %v3562_v1 = vsel %vm3546_vm0, %v8817_v10, 0 }
 0x35b   : > { %vm3549_vm4 = vcmp.eq.bf16.partialorder %v8723_v31, %v8845_v37  ;;  %v3418_v14 = vadd.f32 %v3417_v45, %v3387_v27  ;;  %v7832_v39 = vsel %vm3448_vm13, %v8837_v50, 0  ;;  %v3482_v49 = vunpack.c.l.bf16 %v3461_v40 }
 0x35c   : > { %v3323_v16 = vrot.slane %v3322_v20, 4  ;;  %v3512_v6 = vadd.f32 %v3511_v5, %v3481_v60  ;;  %v3221_v15 = vrot.slane %v3220_v13, 1  ;;  %v3483_v32 = vunpack.c.h.bf16 %v3461_v40 }
 0x35d   : > { %v3563_v3 = vsel %vm3547_vm14, %v8841_v19, 0  ;;  %v3419_v10 = vadd.f32 %v3418_v14, %v3388_v26  ;;  %v3578_v48 = vunpack.c.l.bf16 %v3562_v1  ;;  %v3579_v27 = vunpack.c.h.bf16 %v3562_v1  ;;  %v8853_v14 = vld [vmem:[#allocation79_spill] sm:$0xff] }
 0x35e   : > { %v3324_v61 = vadd.f32 %v3323_v16, %v3322_v20  ;;  %v3513_v30 = vadd.f32 %v3512_v6, %v3482_v49  ;;  %v7842_v8 = vsel %vm3449_vm3, %v8838_v23, 0  ;;  %v3484_v41 = vunpack.c.l.bf16 %v3462_v43 }
 0x35f   : > { %v3485_v17 = vunpack.c.h.bf16 %v3462_v43  ;;  %vm3550_vm5 = vcmp.eq.bf16.partialorder %v8729_v57, %v8845_v37  ;;  %v3420_v52 = vadd.f32 %v3419_v10, %v3389_v58  ;;  %vm3450_vm6 = vcmp.eq.bf16.partialorder %v8770_v33, %v8829_v2  ;;  %v8859_v57 = vld [vmem:[#allocation45_spill] sm:$0xff] }
 0x360   : > { %v3325_v53 = vrot.slane %v3324_v61, 2  ;;  %v3486_v18 = vunpack.c.l.bf16 %v3463_v62  ;;  %v3487_v19 = vunpack.c.h.bf16 %v3463_v62  ;;  %v3514_v26 = vadd.f32 %v3513_v30, %v3483_v32 }
 0x361   : > { %v3222_v22 = vadd.f32 %v3221_v15, %v3220_v13  ;;  %v3564_v20 = vsel %vm3548_vm2, %v6866_v38, 0  ;;  %v3580_v40 = vunpack.c.l.bf16 %v3563_v3  ;;  %v3421_v45 = vadd.f32 %v3420_v52, %v3390_v44 }
 0x362   : > { %v3326_v11 = vadd.f32 %v3325_v53, %v3324_v61  ;;  %v3515_v60 = vadd.f32 %v3514_v26, %v3484_v41  ;;  %v3581_v5 = vunpack.c.h.bf16 %v3563_v3  ;;  %v3610_v16 = vadd.f32 %v3579_v27, %v3578_v48 }
 0x363   : > { %vm3648_vm9 = vcmask 1040384   ;;  %vm3649_vm10 = vsmask.f32 256  ;;  %vm3657_vm8 = vcmask 1041408   ;;  %vm3551_vm1 = vcmp.eq.bf16.partialorder %v8740_v56, %v8845_v37 }
 0x364   : > { %v3327_v43 = vrot.slane %v3326_v11, 1  ;;  %v3422_v58 = vadd.f32 %v3421_v45, %v3391_v46  ;;  %v3516_v13 = vadd.f32 %v3515_v60, %v3485_v17  ;;  %v3611_v62 = vadd.f32 %v3610_v16, %v3580_v40  ;;  %vm3650_vm0 = vmand %vm3648_vm9, %vm3649_vm10  ;;  %v8855_v17 = vld [vmem:[#allocation81_spill] sm:$0xff] }
 0x365   : > { %vm3658_vm11 = vsmask.f32 1280  ;;  %v3223_v47 = vpack.c.bf16 %v3222_v22, %v3222_v22  ;;  %v3582_v1 = vunpack.c.l.bf16 %v3564_v20  ;;  %v8852_v44 = vpack.c.bf16 %v7677_v9, %v7677_v9 }
 0x366   : > { %v3328_v38 = vadd.f32 %v3327_v43, %v3326_v11  ;;  %v8854_v49 = vpack.c.bf16 %v8853_v14, %v8853_v14  ;;  %vm3659_vm12 = vmand %vm3657_vm8, %vm3658_vm11  ;;  %v3423_v46 = vadd.f32 %v3422_v58, %v3392_v24  ;;  %v3517_v15 = vadd.f32 %v3516_v13, %v3486_v18  ;;  %v8858_v13 = vld [vmem:[#allocation75_spill] sm:$0xff] }
 0x367   : > { %v3612_v61 = vadd.f32 %v3611_v62, %v3581_v5  ;;  %v3488_v10 = vunpack.c.l.bf16 %v7832_v39  ;;  %v3565_v9 = vsel %vm3549_vm4, %v6896_v12, 0  ;;  %v3583_v53 = vunpack.c.h.bf16 %v3564_v20 }
 0x368   : > { %v3651_v6 = vsel %vm3650_vm0, %v8854_v49, %v8852_v44  ;;  %v3329_v3 = vpack.c.bf16 %v3328_v38, %v3328_v38  ;;  %v3424_v48 = vadd.f32 %v3423_v46, %v3393_v4  ;;  %v3518_v27 = vadd.f32 %v3517_v15, %v3487_v19  ;;  %v8857_v4 = vld [vmem:[#allocation44_spill] sm:$0xff] }
 0x369   : > { %v3655_v32 = vsel %vm3648_vm9, %v3651_v6, %v3117_v63  ;;  %v3613_v41 = vadd.f32 %v3612_v61, %v3582_v1  ;;  %v3395_v24 = vunpack.c.h.bf16 %v8850_v35  ;;  %v3396_v52 = vunpack.c.l.bf16 %v8855_v17  ;;  %v8860_v61 = vld [vmem:[#allocation43_spill] sm:$0xff] }
 0x36a   : > { %v3660_v30 = vsel %vm3659_vm12, %v3655_v32, %v3223_v47  ;;  %v3489_v63 = vunpack.c.h.bf16 %v7832_v39  ;;  %v3425_v31 = vadd.f32 %v3424_v48, %v3394_v25  ;;  %v3519_v12 = vadd.f32 %v3518_v27, %v3488_v10 }
 0x36b   : > { %v7876_v18 = vsel %vm3657_vm8, %v3660_v30, %v3329_v3  ;;  %v3584_v26 = vunpack.c.l.bf16 %v3565_v9  ;;  %v3614_v22 = vadd.f32 %v3613_v41, %v3583_v53  ;;  %vm3451_vm13 = vcmp.eq.bf16.partialorder %v8856_v51, %v8829_v2 }
 0x36c   : > { %v3466_v19 = vsel %vm3450_vm6, %v8857_v4, 0  ;;  %v3490_v11 = vunpack.c.l.bf16 %v7842_v8  ;;  %v3566_v39 = vsel %vm3550_vm5, %v6948_v42, 0  ;;  %v3426_v35 = vadd.f32 %v3425_v31, %v3395_v24 }
 0x36d   : > { %v3520_v25 = vadd.f32 %v3519_v12, %v3489_v63  ;;  %v3585_v20 = vunpack.c.h.bf16 %v3565_v9  ;;  %v3615_v40 = vadd.f32 %v3614_v22, %v3584_v26  ;;  %vm3552_vm14 = vcmp.eq.bf16.partialorder %v8751_v21, %v8845_v37 }
 0x36e   : > { %v3397_v45 = vunpack.c.h.bf16 %v8855_v17  ;;  %v3491_v60 = vunpack.c.h.bf16 %v7842_v8  ;;  %v3427_v5 = vadd.f32 %v3426_v35, %v3396_v52  ;;  %v3586_v43 = vunpack.c.l.bf16 %v3566_v39 }
 0x36f   : > { %v3521_v16 = vadd.f32 %v3520_v25, %v3490_v11  ;;  %v3616_v58 = vadd.f32 %v3615_v40, %v3585_v20  ;;  %vm3452_vm15 = vcmp.eq.bf16.partialorder %v8858_v13, %v8829_v2  ;;  %v3467_v42 = vsel %vm3451_vm13, %v8859_v57, 0 }
 0x370   : > { %v3492_v62 = vunpack.c.l.bf16 %v3466_v19  ;;  %v3567_v47 = vsel %vm3551_vm1, %v8813_v28, 0  ;;  %v3428_v38 = vadd.f32 %v3427_v5, %v3397_v45  ;;  %v3587_v1 = vunpack.c.h.bf16 %v3566_v39 }
 0x371   : > { %v3522_v8 = vadd.f32 %v3521_v16, %v3491_v60  ;;  %v3617_v44 = vadd.f32 %v3616_v58, %v3586_v43  ;;  %vm3553_vm7 = vcmp.eq.bf16.partialorder %v8752_v59, %v8845_v37  ;;  %v3493_v14 = vunpack.c.h.bf16 %v3466_v19  ;;  %v8862_v58 = vld [vmem:[#allocation82_spill] sm:$0xff] }
 0x372   : > { %v3429_v49 = vrot.slane %v3428_v38, 4  ;;  %v3588_v46 = vunpack.c.l.bf16 %v3567_v47  ;;  %vm3453_vm2 = vcmp.eq.bf16.partialorder %v8782_v36, %v8829_v2  ;;  %v3468_v32 = vsel %vm3452_vm15, %v8860_v61, 0  ;;  %v8861_v2 = vld [vmem:[#allocation48_spill] sm:$0xff] }
 0x373   : > { %v3523_v6 = vadd.f32 %v3522_v8, %v3492_v62  ;;  %v3618_v15 = vadd.f32 %v3617_v44, %v3587_v1  ;;  %v3494_v3 = vunpack.c.l.bf16 %v3467_v42  ;;  %v3568_v56 = vsel %vm3552_vm14, %v7021_v55, 0 }
 0x374   : > { %v3430_v28 = vadd.f32 %v3429_v49, %v3428_v38  ;;  %v3589_v9 = vunpack.c.h.bf16 %v3567_v47  ;;  %v3495_v30 = vunpack.c.h.bf16 %v3467_v42  ;;  %v3569_v48 = vsel %vm3553_vm7, %v7023_v0, 0 }
 0x375   : > { %v3524_v10 = vadd.f32 %v3523_v6, %v3493_v14  ;;  %v3619_v59 = vadd.f32 %v3618_v15, %v3588_v46  ;;  %v3590_v41 = vunpack.c.l.bf16 %v3568_v56  ;;  %vm3554_vm3 = vcmp.eq.bf16.partialorder %v8758_v34, %v8845_v37  ;;  %v8863_v14 = vld [vmem:[#allocation83_spill] sm:$0xff] }
 0x376   : > { %v3431_v27 = vrot.slane %v3430_v28, 2  ;;  %v3469_v17 = vsel %vm3453_vm2, %v8861_v2, 0  ;;  %v3496_v52 = vunpack.c.l.bf16 %v3468_v32  ;;  %v3591_v55 = vunpack.c.h.bf16 %v3568_v56 }
 0x377   : > { %v3525_v53 = vadd.f32 %v3524_v10, %v3494_v3  ;;  %v3620_v24 = vadd.f32 %v3619_v59, %v3589_v9  ;;  %v3497_v12 = vunpack.c.h.bf16 %v3468_v32  ;;  %v3592_v26 = vunpack.c.l.bf16 %v3569_v48 }
 0x378   : > { %v3432_v63 = vadd.f32 %v3431_v27, %v3430_v28  ;;  %vm3666_vm4 = vcmask 1042432   ;;  %vm3667_vm5 = vsmask.f32 2304  ;;  %v3498_v11 = vunpack.c.l.bf16 %v3469_v17 }
 0x379   : > { %v3526_v21 = vadd.f32 %v3525_v53, %v3495_v30  ;;  %v3621_v31 = vadd.f32 %v3620_v24, %v3590_v41  ;;  %vm3555_vm6 = vcmp.eq.bf16.partialorder %v8759_v54, %v8845_v37  ;;  %v3570_v39 = vsel %vm3554_vm3, %v8837_v50, 0  ;;  %vm3668_vm9 = vmand %vm3666_vm4, %vm3667_vm5 }
 0x37a   : > { %v3433_v22 = vrot.slane %v3432_v63, 1  ;;  %v3593_v20 = vunpack.c.h.bf16 %v3569_v48  ;;  %v3499_v45 = vunpack.c.h.bf16 %v3469_v17  ;;  %v3594_v16 = vunpack.c.l.bf16 %v3570_v39 }
 0x37b   : > { %v3527_v19 = vadd.f32 %v3526_v21, %v3496_v52  ;;  %v3622_v0 = vadd.f32 %v3621_v31, %v3591_v55  ;;  %v3500_v42 = vunpack.c.l.bf16 %v8862_v58  ;;  %vm3556_vm10 = vcmp.eq.bf16.partialorder %v8770_v33, %v8845_v37 }
 0x37c   : > { %v3434_v35 = vadd.f32 %v3433_v22, %v3432_v63  ;;  %v3571_v54 = vsel %vm3555_vm6, %v8838_v23, 0  ;;  %v3595_v50 = vunpack.c.h.bf16 %v3570_v39  ;;  %v3501_v38 = vunpack.c.h.bf16 %v8862_v58 }
 0x37d   : > { %v3528_v25 = vadd.f32 %v3527_v19, %v3497_v12  ;;  %v3623_v40 = vadd.f32 %v3622_v0, %v3592_v26  ;;  %v3596_v1 = vunpack.c.l.bf16 %v3571_v54  ;;  %v3502_v49 = vunpack.c.l.bf16 %v8863_v14 }
 0x37e   : > { %v3435_v60 = vpack.c.bf16 %v3434_v35, %v3434_v35  ;;  %v3572_v6 = vsel %vm3556_vm10, %v8857_v4, 0  ;;  %vm3557_vm8 = vcmp.eq.bf16.partialorder %v8856_v51, %v8845_v37  ;;  %v3597_v33 = vunpack.c.h.bf16 %v3571_v54 }
 0x37f   : > { %v3529_v5 = vadd.f32 %v3528_v25, %v3498_v11  ;;  %v3624_v43 = vadd.f32 %v3623_v40, %v3593_v20  ;;  %v3503_v15 = vunpack.c.h.bf16 %v8863_v14  ;;  %v3598_v3 = vunpack.c.l.bf16 %v3572_v6 }
 0x380   : > { %v3669_v47 = vsel %vm3668_vm9, %v7876_v18, %v3435_v60  ;;  %v3573_v56 = vsel %vm3557_vm8, %v8859_v57, 0  ;;  %vm3558_vm1 = vcmp.eq.bf16.partialorder %v8858_v13, %v8845_v37  ;;  %v3599_v10 = vunpack.c.h.bf16 %v3572_v6 }
 0x381   : > { %v3530_v34 = vadd.f32 %v3529_v5, %v3499_v45  ;;  %v3625_v62 = vadd.f32 %v3624_v43, %v3594_v16  ;;  %v3600_v59 = vunpack.c.l.bf16 %v3573_v56  ;;  %v3574_v51 = vsel %vm3558_vm1, %v8860_v61, 0 }
 0x382   : > { %vm3559_vm0 = vcmp.eq.bf16.partialorder %v8782_v36, %v8845_v37  ;;  %v3601_v27 = vunpack.c.h.bf16 %v3573_v56  ;;  %v3602_v24 = vunpack.c.l.bf16 %v3574_v51  ;;  %v3603_v13 = vunpack.c.h.bf16 %v3574_v51 }
 0x383   : > { %v3531_v8 = vadd.f32 %v3530_v34, %v3500_v42  ;;  %v3626_v44 = vadd.f32 %v3625_v62, %v3595_v50  ;;  %v3575_v17 = vsel %vm3559_vm0, %v8861_v2, 0  ;;  %v3606_v19 = vunpack.c.l.bf16 %v7789_v29 }
 0x384   : > { %v3604_v55 = vunpack.c.l.bf16 %v3575_v17  ;;  %v3605_v26 = vunpack.c.h.bf16 %v3575_v17  ;;  %v3607_v37 = vunpack.c.h.bf16 %v7789_v29  ;;  %v3608_v2 = vunpack.c.l.bf16 %v7792_v7 }
 0x385   : > { %v3532_v46 = vadd.f32 %v3531_v8, %v3501_v38  ;;  %v3627_v23 = vadd.f32 %v3626_v44, %v3596_v1  ;;  %v3609_v35 = vunpack.c.h.bf16 %v7792_v7  ;;  %vm3675_vm11 = vcmask 1043456  }
 0x386   : > { %vm3676_vm12 = vsmask.f32 3328 }
 0x387   : > { %v3533_v32 = vadd.f32 %v3532_v46, %v3502_v49  ;;  %v3628_v18 = vadd.f32 %v3627_v23, %v3597_v33  ;;  %vm3677_vm13 = vmand %vm3675_vm11, %vm3676_vm12 }
 0x389   : > { %v3534_v28 = vadd.f32 %v3533_v32, %v3503_v15  ;;  %v3629_v9 = vadd.f32 %v3628_v18, %v3598_v3 }
 0x38b   : > { %v3535_v4 = vrot.slane %v3534_v28, 4  ;;  %v3630_v30 = vadd.f32 %v3629_v9, %v3599_v10 }
 0x38d   : > { %v3536_v48 = vadd.f32 %v3535_v4, %v3534_v28  ;;  %v3631_v53 = vadd.f32 %v3630_v30, %v3600_v59 }
 0x38f   : > { %v3537_v41 = vrot.slane %v3536_v48, 2  ;;  %v3632_v57 = vadd.f32 %v3631_v53, %v3601_v27 }
 0x391   : > { %v3538_v52 = vadd.f32 %v3537_v41, %v3536_v48  ;;  %v3633_v63 = vadd.f32 %v3632_v57, %v3602_v24 }
 0x393   : > { %v3539_v21 = vrot.slane %v3538_v52, 1  ;;  %v3634_v31 = vadd.f32 %v3633_v63, %v3603_v13 }
 0x395   : > { %v3540_v12 = vadd.f32 %v3539_v21, %v3538_v52  ;;  %v3635_v61 = vadd.f32 %v3634_v31, %v3604_v55 }
 0x397   : > { %v3541_v22 = vpack.c.bf16 %v3540_v12, %v3540_v12  ;;  %v3636_v36 = vadd.f32 %v3635_v61, %v3605_v26 }
 0x399   : > { %v3637_v0 = vadd.f32 %v3636_v36, %v3606_v19  ;;  %v3673_v11 = vsel %vm3666_vm4, %v3669_v47, %v3541_v22 }
 0x39b   : > { %v3638_v39 = vadd.f32 %v3637_v0, %v3607_v37 }
 0x39d   : > { %v3639_v25 = vadd.f32 %v3638_v39, %v3608_v2 }
 0x39f   : > { %v3640_v20 = vadd.f32 %v3639_v25, %v3609_v35 }
 0x3a1   : > { %v3641_v40 = vrot.slane %v3640_v20, 4 }
 0x3a3   : > { %v3642_v45 = vadd.f32 %v3641_v40, %v3640_v20 }
 0x3a5   : > { %v3643_v60 = vrot.slane %v3642_v45, 2 }
 0x3a7   : > { %v3644_v5 = vadd.f32 %v3643_v60, %v3642_v45 }
 0x3a9   : > { %v3645_v16 = vrot.slane %v3644_v5, 1 }
 0x3ab   : > { %v3646_v29 = vadd.f32 %v3645_v16, %v3644_v5 }
 0x3ad   : > { %v3647_v43 = vpack.c.bf16 %v3646_v29, %v3646_v29 }
 0x3af   : > { %v3678_v58 = vsel %vm3677_vm13, %v3673_v11, %v3647_v43 }
 0x3b0   : > { %v3679_v42 = vunpack.c.l.bf16 %v3678_v58 }
 0x3b2   : > { %v3878_v54 = vtrunc.f32 %v3679_v42 }
 0x3b4   : > { %v3879_v7 = vcvt.f32.s32 %v3878_v54 }
 0x3b6   : > { %v3681_v34 = vpack.c.b16 %v3879_v7, %v3879_v7 }
 0x3b8   : > { %v3682_v50 = vpack.c.b8 %v3681_v34, %v3681_v34 }
 0x3ba   : > { %3683 = vst [vmem:[%s131_s17] sm:$0x3] %v3682_v50 }
 0x3bb   : > { %3974 = shalt.err (!%p3971_p8)
}
 0x3bc   : > { %s3975_s21 = scalar_lea.hbm %s7954_s28, 32  ;;  %s3979_s5 = scalar_lea.hbm %s7998_s1, 256 }
 0x3bd   : > { %p3976_p13 = scmp.ne.s32.totalorder %s7954_s28, %s3975_s21  ;;  %p3980_p6 = scmp.lt.u32.totalorder %s7954_s28, %s7998_s1 }
 0x3be   : > { %p3981_p10 = scmp.lt.u32.totalorder %s3979_s5, %s3975_s21  ;;  %p3983_p12 = scmp.lt.u32.totalorder %s3975_s21, %s7954_s28 }
 0x3bf   : > { %p3977_p0 = pnand %p3976_p13, %p8864_p4 }
 0x3c0   : > { %p3982_p11 = por %p3981_p10, %p3980_p6 }
 0x3c1   : > { %p3978_p2 = pneg %p3977_p0 }
 0x3c2   : > { %p3984_p9 = por %p3983_p12, %p3982_p11 }
 0x3c4   : > { %p3985_p1 = pnand %p3984_p9, %p3978_p2 }
 0x3c6   : > { %3988 = shalt.err (!%p3985_p1)
}
 0x3c7   : > { %3882 = dma.vmem_to_hbm [thread:$0]  (%p8864_p4), %s7956_s25, 32, %s7954_s28, %s3685_s29  }
 0x3c8 PF: > { %p3893_p3 = scmp.ge.s32.totalorder %s4027_s9, 2  ;;  %s3710_s14 = sand.u32 1, %s4015_s6  }
 0x3c9   : > { %p8865_p5 = scmp.ne.s32.totalorder %s8264_s19, 0  ;;  %s3711_s16 = scalar_lea.sflag [#allocation5], %s3710_s14 }
 0x3cb   : > { %p3889_p7 = pnand %p3893_p3, %p8865_p5 }
 0x3cd   : > { %4010 = dma.done.wait (!%p3889_p7), %s3711_s16, 32  }
 0x3ce   : > { %4012 = vsyncadd (!%p3889_p7), %s3711_s16, 4294967264  ;;  %p14_p8 = scmp.ge.s32.totalorder %s4069_s12, 10   ;;  %s8866_s6 = smov %s4019_s7 }
 0x3cf   : > { %s8867_s7 = smov %s4023_s8  ;;  %s8868_s8 = smov %s4081_s15 }
 0x3d0   : > { %s8869_s9 = smov %s4069_s12  ;;  %16 = sbr.rel (!%p14_p8) target bundleno = 5 (0x5), region = 69 }
 0x3d7   :  { %3716 = vsyncpa [#allocation4], 1 }
 0x3d8   :  { %3718 = vsyncpa [#allocation4 + $0x1], 1 }
 0x3d9   :  { %3719 = vsyncpa [#allocation5], 1 }
 0x3da   :  { %3721 = vsyncpa [#allocation5 + $0x1], 1 }

</bundles_post_ra>
